<compile_context>
chip_gen: v7x
topology: tpu7x:2x2x1
jax: 0.10.0
libtpu: 0.0.40
codegen_flags: <defaults>
</compile_context>

<pallas_src>
import jax
import jax.numpy as jnp
from jax import lax
from jax.experimental import pallas as pl
from jax.experimental.pallas import tpu as pltpu

JITTER = 1e-8
_N_SPLITS = 2            # leading "parallel" grid axis: shards the N reduction on v7x's 2 TCs


# --------------------------------------------------------------------------
# Tiling along the N (data) axis.
# --------------------------------------------------------------------------
def _pick_tiling(n, n_splits=_N_SPLITS):
    per_split = -(-n // n_splits)                           # ceil(n / n_splits)
    tn = min(512, ((per_split + 127) // 128) * 128)         # lane-dense, capped (vreg pressure)
    chunk = n_splits * tn
    n_pad = -(-n // chunk) * chunk
    return tn, n_pad


# --------------------------------------------------------------------------
# Fused Pallas kernel
# --------------------------------------------------------------------------
def _make_fused_kernel(D, n_valid, tn, padded):
    """Builds the fused SNSGP kernel body (closes over static shape info)."""

    def kernel(consts_ref,        # SMEM (1+D,): [prefac, -0.5/ls_d^2 ...]
               xm_ref,            # (m, D)   inducing points
               xmt_ref,           # (D, m)   inducing points, transposed
               lm_ref,            # (m, D)   precomputed inducing local lengthscales
               lmt_ref,           # (D, m)   same, transposed
               xt_ref,            # (D, tn)  tile of X^T (N on the lane axis)
               xb_ref,            # (nlp, D) latent points
               al_ref,            # (nlp, D) local-GP alpha, pre-scaled by local_std^2
               y_ref,             # (1, tn)  tile of (y - mean)^T
               kmm_ref,           # out (m, m)  raw K_mm (no jitter), per-core slot
               kk_ref,            # out (m, m)  partial sum of K_mn K_mn^T, per-core slot
               kmny_ref):         # out (m, 1)  partial sum of K_mn @ y, per-core slot
        c = pl.program_id(0)
        j = pl.program_id(1)

        xm = xm_ref[...]
        xmt = xmt_ref[...]
        lm = lm_ref[...]
        lmt = lmt_ref[...]
        xt = xt_ref[...]
        xb = xb_ref[...]
        al = al_ref[...]
        yrow = y_ref[...]

        prefac = consts_ref[0]                               # 2^D * global_gp_std^4

        # prod_d l1_d : (m, 1), tile-invariant, computed once per kernel invocation.
        l1_prod = lm[:, 0:1]
        for d in range(1, D):
            l1_prod = l1_prod * lm[:, d:d + 1]

        # ---- local length-scale GP prediction for a row of inputs (VPU + EUP) ----
        def ls_row(xrow, d):
            diff = xb[:, d:d + 1] - xrow                     # (nlp, n)
            ks = jnp.exp((diff * diff) * consts_ref[1 + d])  # exp(-0.5*dist/ls_d^2)
            return jnp.exp(jnp.sum(ks * al[:, d:d + 1], axis=0, keepdims=True))  # (1, n)

        # ---- nonstationary Gibbs kernel block K(Xm, X2); X2 given as (D, n) ----
        # Common-denominator form: K = sqrt(prefac * num / den) * exp(-sd_num / den),
        #   num    = prod_d l1_d l2_d  (factored as l1_prod * l2_prod)
        #   den    = prod_d (l1_d^2 + l2_d^2)
        #   sd_num = sum_d diff_d^2 * prod_{k!=d} (l1_k^2 + l2_k^2)
        def gibbs(x2t, l2_fn, approx):
            den = None
            sd_num = None
            l2_prod = None
            for d in range(D):                               # static unroll, D small
                l1 = lm[:, d:d + 1]                          # (m, 1)  precomputed
                l2 = l2_fn(d)                                # (1, n)
                l2_prod = l2 if l2_prod is None else l2_prod * l2
                lsq = l1 * l1 + l2 * l2                      # (m, n)
                diff = xm[:, d:d + 1] - x2t[d:d + 1, :]
                dsq = diff * diff
                if den is None:
                    den, sd_num = lsq, dsq
                else:
                    sd_num = sd_num * lsq + dsq * den
                    den = den * lsq
            num = (prefac * l1_prod) * l2_prod               # (m, n)
            if approx:
                inv_den = pl.reciprocal(den, approx=True)    # single EUP recip per block
                return jnp.sqrt(num * inv_den) * jnp.exp(-(sd_num * inv_den))
            # exact path (used only for the tiny (m, m) K_mm block)
            return jnp.sqrt(num / den) * jnp.exp(-(sd_num / den))

        @pl.when(j == 0)
        def _init():
            kk_ref[...] = jnp.zeros_like(kk_ref)
            kmny_ref[...] = jnp.zeros_like(kmny_ref)
            kmm_ref[...] = gibbs(xmt, lambda d: lmt[d:d + 1, :], approx=False)

        kmn = gibbs(xt, lambda d: ls_row(xt[d:d + 1, :], d), approx=True)   # (m, tn)
        if padded:                                           # mask padded columns
            blk = c * pl.num_programs(1) + j
            col = lax.broadcasted_iota(jnp.int32, (1, tn), 1) + blk * tn
            kmn = jnp.where(col < n_valid, kmn, 0.0)

        # K_mn K_mn^T partial sum on the MXU (contract over the N-tile axis).
        kk_ref[...] += lax.dot_general(
            kmn, kmn, dimension_numbers=(((1,), (1,)), ((), ())),
            precision=lax.Precision.HIGHEST,
            preferred_element_type=jnp.float32)
        # K_mn @ y partial sum (VPU multiply + lane reduce; MXU offload is marginal here).
        kmny_ref[...] += jnp.sum(kmn * yrow, axis=-1, keepdims=True)

    return kernel


def snsgp_fused_pallas(Xm, X, X_bar, alpha_scaled, lXm, yc, consts):
    m, D = Xm.shape
    N = X.shape[0]
    nlp = X_bar.shape[0]

    tn, n_pad = _pick_tiling(N)
    padded = (n_pad != N)
    steps = n_pad // (_N_SPLITS * tn)
    grid = (_N_SPLITS, steps)

    xt = X.T                                                 # (D, N): N on the lane axis
    yrow = yc.reshape(1, N)
    if padded:
        xt = jnp.pad(xt, ((0, 0), (0, n_pad - N)))
        yrow = jnp.pad(yrow, ((0, 0), (0, n_pad - N)))

    kernel = _make_fused_kernel(D, N, tn, padded)

    kmm, kk, kmny = pl.pallas_call(
        kernel,
        grid=grid,
        in_specs=[
            pl.BlockSpec(memory_space=pltpu.MemorySpace.SMEM),         # scalar constants
            pl.BlockSpec((m, D), lambda c, j: (0, 0)),                 # Xm
            pl.BlockSpec((D, m), lambda c, j: (0, 0)),                 # Xm^T
            pl.BlockSpec((m, D), lambda c, j: (0, 0)),                 # l(Xm)  (precomputed)
            pl.BlockSpec((D, m), lambda c, j: (0, 0)),                 # l(Xm)^T
            pl.BlockSpec((D, tn), lambda c, j: (0, c * steps + j)),    # X^T, tiled along N
            pl.BlockSpec((nlp, D), lambda c, j: (0, 0)),               # X_bar
            pl.BlockSpec((nlp, D), lambda c, j: (0, 0)),               # alpha * local_std^2
            pl.BlockSpec((1, tn), lambda c, j: (0, c * steps + j)),    # centered y^T, tiled
        ],
        out_specs=[
            pl.BlockSpec((None, m, m), lambda c, j: (c, 0, 0)),        # raw K_mm (slot c)
            pl.BlockSpec((None, m, m), lambda c, j: (c, 0, 0)),        # partial Kmn Kmn^T
            pl.BlockSpec((None, m, 1), lambda c, j: (c, 0, 0)),        # partial Kmn @ y
        ],
        out_shape=[
            jax.ShapeDtypeStruct((_N_SPLITS, m, m), jnp.float32),
            jax.ShapeDtypeStruct((_N_SPLITS, m, m), jnp.float32),
            jax.ShapeDtypeStruct((_N_SPLITS, m, 1), jnp.float32),
        ],
        compiler_params=pltpu.CompilerParams(
            dimension_semantics=("parallel", "arbitrary")),            # N axis is a reduction
    )(consts, Xm, Xm.T, lXm, lXm.T, xt, X_bar, alpha_scaled, yrow)

    return kmm[0], jnp.sum(kk, axis=0), jnp.sum(kmny, axis=0)


# --------------------------------------------------------------------------
# SNSGP forward (mirrors the PyTorch module's forward())
# --------------------------------------------------------------------------
def snsgp_forward(X, y, X_bar, Xm, params, jitter=JITTER):
    X = jnp.asarray(X, jnp.float32)
    y = jnp.asarray(y, jnp.float32)
    X_bar = jnp.asarray(X_bar, jnp.float32)
    Xm = jnp.asarray(Xm, jnp.float32)

    N, D = X.shape
    m = Xm.shape[0]
    nlp = X_bar.shape[0]

    raw_mean = jnp.mean(y)
    yc = y - raw_mean                                            # y - y.mean()

    # ---- local GPs over X_bar: one tiny nlp x nlp system per input dim (batched) ----
    # TODO(synk): batched Cholesky / cho_solve have no Pallas primitive; plain JAX (XLA).
    ls2 = jnp.square(params["local_gp_ls"])                      # (D,)
    std2 = jnp.square(params["local_gp_std"])                    # (D,)
    noise2 = jnp.square(params["local_gp_noise_std"])            # (D,)

    diffb = X_bar[:, None, :] - X_bar[None, :, :]                # (nlp, nlp, D)
    distb = jnp.square(diffb)
    distb = jnp.where(distb == 0.0, 1e-20, distb)                # torch: dist[dist==0]=1e-20
    k_loc = std2 * jnp.exp(-0.5 * distb / ls2)                   # (nlp, nlp, D)
    k_loc = jnp.moveaxis(k_loc, -1, 0)                           # (D, nlp, nlp)
    k_loc = k_loc + noise2[:, None, None] * jnp.eye(nlp, dtype=jnp.float32)
    chol = jnp.linalg.cholesky(k_loc)
    rhs = jnp.log(jnp.abs(params["local_ls"])).T[:, :, None]     # (D, nlp, 1)
    alpha = jax.vmap(lambda c, b: jax.scipy.linalg.cho_solve((c, True), b))(chol, rhs)
    alpha = alpha[:, :, 0].T                                     # (nlp, D)
    alpha_scaled = alpha * std2[None, :]                         # fold local_std^2 into alpha

    # ---- hoisted (tile-invariant) inducing-point local lengthscales l(Xm) : (m, D) ----
    diffm = Xm[:, None, :] - X_bar[None, :, :]                   # (m, nlp, D)
    distm = jnp.square(diffm)
    distm = jnp.where(distm == 0.0, 1e-20, distm)
    k_star_m = std2 * jnp.exp(-0.5 * distm / ls2)                # (m, nlp, D)
    lXm = jnp.exp(jnp.einsum("ijd,jd->id", k_star_m, alpha))     # (m, D)

    # ---- scalar constants packed once into SMEM ----
    gstd2 = params["global_gp_std"][0] ** 2
    gnoise = params["global_gp_noise_std"]                       # (1,)
    prefac = (2.0 ** D) * gstd2 * gstd2                          # 2^D * global_std^4
    nh_ls = -0.5 / ls2                                           # (D,)
    consts = jnp.concatenate(
        [jnp.reshape(prefac, (1,)), nh_ls]).astype(jnp.float32)

    # ---- fused Pallas kernel: K_mm, sum Kmn Kmn^T, Kmn @ y in one pass over X ----
    kmm_raw, kk_sum, Kmn_y = snsgp_fused_pallas(
        Xm, X, X_bar, alpha_scaled, lXm, yc, consts)

    # ---- tiny m x m linear algebra + log-det terms (plain JAX / XLA) ----
    # TODO(synk): Cholesky / inv / det have no Pallas primitive; stay in XLA.
    eye_m = jnp.eye(m, dtype=jnp.float32)
    K_mm = kmm_raw + jitter * eye_m                              # reference: add_jitter(K_mm)
    inv_n2 = gnoise[0] ** -2
    K_inner = K_mm + inv_n2 * kk_sum + jitter * eye_m            # reference adds jitter again

    gn2 = gnoise ** 2                                            # (1,)
    d1 = N * jnp.log(gn2)                                        # (1,)
    d2 = jnp.sum(jnp.log(jnp.diagonal(jnp.linalg.cholesky(K_mm))))
    d3 = jnp.log(jnp.maximum(jnp.linalg.det(K_inner), 1e-20))
    K_tilde_logdet = d1 + d3 - d2                                # (1,)

    # y^T K_tilde_inv y without forming the N x N matrix:
    #   K_tilde_inv = noise^-2 I - noise^-4 K_mn^T K_inner^-1 K_mn
    K_inner_inv = jnp.linalg.inv(K_inner)                        # matches torch.linalg.inv
    yty = jnp.sum(yc * yc)
    quad = (gnoise ** -2) * yty - (Kmn_y.T @ K_inner_inv @ Kmn_y) / gnoise ** 4  # (1,1)

    # Reference literally uses y.shape[0] * 2 * pi (not N*log(2*pi)); keep its semantics.
    return 0.5 * (quad + K_tilde_logdet + yc.shape[0] * 2.0 * jnp.pi) / (N * D)


# --------------------------------------------------------------------------
if __name__ == "__main__":
    key = jax.random.PRNGKey(0)
    N, D, m, nlp = 1024, 4, 16, 8
    ks = jax.random.split(key, 10)

    X = jax.random.uniform(ks[0], (N, D), dtype=jnp.float32)
    y = jax.random.normal(ks[1], (N, 1), dtype=jnp.float32)
    X_bar = jax.random.uniform(ks[2], (nlp, D), dtype=jnp.float32)
    Xm = jax.random.uniform(ks[3], (m, D), dtype=jnp.float32)

    # Module initializes trainable params with normal(0, 1).
    params = {
        "local_gp_ls": jax.random.normal(ks[4], (D,), dtype=jnp.float32),
        "local_gp_std": jax.random.normal(ks[5], (D,), dtype=jnp.float32),
        "local_gp_noise_std": jax.random.normal(ks[6], (D,), dtype=jnp.float32),
        "local_ls": jax.random.normal(ks[7], (nlp, D), dtype=jnp.float32),
        "global_gp_std": jax.random.normal(ks[8], (1,), dtype=jnp.float32),
        "global_gp_noise_std": jax.random.normal(ks[9], (1,), dtype=jnp.float32),
    }

    out = jax.jit(snsgp_forward)(X, y, X_bar, Xm, params)
    jax.block_until_ready(out)
    assert out.shape == (1, 1)
    print("KERNEL_OK")
</pallas_src>

<mosaic_0001>
module attributes {stable_mosaic.version = 11 : i64} {
  func.func @kernel(%arg0: i32, %arg1: i32, %arg2: memref<5xf32, #tpu.memory_space<smem>>, %arg3: memref<16x4xf32, #tpu.memory_space<vmem>>, %arg4: memref<4x16xf32, #tpu.memory_space<vmem>>, %arg5: memref<16x4xf32, #tpu.memory_space<vmem>>, %arg6: memref<4x16xf32, #tpu.memory_space<vmem>>, %arg7: memref<4x512xf32, #tpu.memory_space<vmem>>, %arg8: memref<8x4xf32, #tpu.memory_space<vmem>>, %arg9: memref<8x4xf32, #tpu.memory_space<vmem>>, %arg10: memref<1x512xf32, #tpu.memory_space<vmem>>, %arg11: memref<1x16x16xf32, #tpu.memory_space<vmem>>, %arg12: memref<1x16x16xf32, #tpu.memory_space<vmem>>, %arg13: memref<1x16x1xf32, #tpu.memory_space<vmem>>) attributes {dimension_semantics = [#tpu.dimension_semantics<parallel>, #tpu.dimension_semantics<arbitrary>], iteration_bounds = array<i64: 2, 1>, scalar_prefetch = 0 : i64, scratch_operands = 0 : i64, tpu.core_type = #tpu.core_type<tc>, window_params = [{transform_indices = @transform_0, window_bounds = array<i64: 5>}, {pipeline_mode = #tpu.pipeline_mode<synchronous>, transform_indices = @transform_1, window_bounds = array<i64: 16, 4>}, {pipeline_mode = #tpu.pipeline_mode<synchronous>, transform_indices = @transform_2, window_bounds = array<i64: 4, 16>}, {pipeline_mode = #tpu.pipeline_mode<synchronous>, transform_indices = @transform_3, window_bounds = array<i64: 16, 4>}, {pipeline_mode = #tpu.pipeline_mode<synchronous>, transform_indices = @transform_4, window_bounds = array<i64: 4, 16>}, {transform_indices = @transform_5, window_bounds = array<i64: 4, 512>}, {pipeline_mode = #tpu.pipeline_mode<synchronous>, transform_indices = @transform_6, window_bounds = array<i64: 8, 4>}, {pipeline_mode = #tpu.pipeline_mode<synchronous>, transform_indices = @transform_7, window_bounds = array<i64: 8, 4>}, {transform_indices = @transform_8, window_bounds = array<i64: 1, 512>}, {transform_indices = @transform_9, window_bounds = array<i64: 1, 16, 16>}, {transform_indices = @transform_10, window_bounds = array<i64: 1, 16, 16>}, {transform_indices = @transform_11, window_bounds = array<i64: 1, 16, 1>}]} {
    %c0 = arith.constant 0 : index
    %c0_0 = arith.constant 0 : index
    %0 = vector.load %arg3[%c0, %c0_0] : memref<16x4xf32, #tpu.memory_space<vmem>>, vector<16x4xf32>
    %c0_1 = arith.constant 0 : index
    %c0_2 = arith.constant 0 : index
    %1 = vector.load %arg4[%c0_1, %c0_2] : memref<4x16xf32, #tpu.memory_space<vmem>>, vector<4x16xf32>
    %c0_3 = arith.constant 0 : index
    %c0_4 = arith.constant 0 : index
    %2 = vector.load %arg5[%c0_3, %c0_4] : memref<16x4xf32, #tpu.memory_space<vmem>>, vector<16x4xf32>
    %c0_5 = arith.constant 0 : index
    %c0_6 = arith.constant 0 : index
    %3 = vector.load %arg6[%c0_5, %c0_6] : memref<4x16xf32, #tpu.memory_space<vmem>>, vector<4x16xf32>
    %c0_7 = arith.constant 0 : index
    %c0_8 = arith.constant 0 : index
    %4 = vector.load %arg7[%c0_7, %c0_8] : memref<4x512xf32, #tpu.memory_space<vmem>>, vector<4x512xf32>
    %c0_9 = arith.constant 0 : index
    %c0_10 = arith.constant 0 : index
    %5 = vector.load %arg8[%c0_9, %c0_10] : memref<8x4xf32, #tpu.memory_space<vmem>>, vector<8x4xf32>
    %c0_11 = arith.constant 0 : index
    %c0_12 = arith.constant 0 : index
    %6 = vector.load %arg9[%c0_11, %c0_12] : memref<8x4xf32, #tpu.memory_space<vmem>>, vector<8x4xf32>
    %c0_13 = arith.constant 0 : index
    %c0_14 = arith.constant 0 : index
    %7 = vector.load %arg10[%c0_13, %c0_14] : memref<1x512xf32, #tpu.memory_space<vmem>>, vector<1x512xf32>
    %c0_15 = arith.constant 0 : index
    %8 = memref.load %arg2[%c0_15] : memref<5xf32, #tpu.memory_space<smem>>
    %9 = vector.extract_strided_slice %2 {offsets = [0, 0], sizes = [16, 1], strides = [1, 1]} : vector<16x4xf32> to vector<16x1xf32>
    %10 = vector.extract_strided_slice %2 {offsets = [0, 1], sizes = [16, 1], strides = [1, 1]} : vector<16x4xf32> to vector<16x1xf32>
    %11 = arith.mulf %9, %10 : vector<16x1xf32>
    %12 = vector.extract_strided_slice %2 {offsets = [0, 2], sizes = [16, 1], strides = [1, 1]} : vector<16x4xf32> to vector<16x1xf32>
    %13 = arith.mulf %11, %12 : vector<16x1xf32>
    %14 = vector.extract_strided_slice %2 {offsets = [0, 3], sizes = [16, 1], strides = [1, 1]} : vector<16x4xf32> to vector<16x1xf32>
    %15 = arith.mulf %13, %14 : vector<16x1xf32>
    %c0_i32 = arith.constant 0 : i32
    %16 = arith.cmpi eq, %arg1, %c0_i32 : i32
    %17 = arith.extui %16 : i1 to i32
    %c0_i32_16 = arith.constant 0 : i32
    %18 = arith.cmpi ne, %17, %c0_i32_16 : i32
    scf.if %18 {
      %cst_35 = arith.constant 0.000000e+00 : f32
      %176 = vector.broadcast %cst_35 : f32 to vector<16x16xf32>
      %c0_36 = arith.constant 0 : index
      %c0_37 = arith.constant 0 : index
      %c0_38 = arith.constant 0 : index
      %177 = vector.load %arg12[%c0_36, %c0_37, %c0_38] : memref<1x16x16xf32, #tpu.memory_space<vmem>>, vector<1x16x16xf32>
      %178 = vector.shape_cast %177 : vector<1x16x16xf32> to vector<16x16xf32>
      %179 = vector.shape_cast %176 : vector<16x16xf32> to vector<1x16x16xf32>
      tpu.vector_store %arg12[%c0_36, %c0_37, %c0_38], %179 {strides = array<i32>} : memref<1x16x16xf32, #tpu.memory_space<vmem>>, vector<1x16x16xf32>,
      %cst_39 = arith.constant 0.000000e+00 : f32
      %180 = vector.broadcast %cst_39 : f32 to vector<16x1xf32>
      %c0_40 = arith.constant 0 : index
      %c0_41 = arith.constant 0 : index
      %c0_42 = arith.constant 0 : index
      %181 = vector.load %arg13[%c0_40, %c0_41, %c0_42] : memref<1x16x1xf32, #tpu.memory_space<vmem>>, vector<1x16x1xf32>
      %182 = vector.shape_cast %181 : vector<1x16x1xf32> to vector<16x1xf32>
      %183 = vector.shape_cast %180 : vector<16x1xf32> to vector<1x16x1xf32>
      tpu.vector_store %arg13[%c0_40, %c0_41, %c0_42], %183 {strides = array<i32>} : memref<1x16x1xf32, #tpu.memory_space<vmem>>, vector<1x16x1xf32>,
      %184 = vector.extract_strided_slice %2 {offsets = [0, 0], sizes = [16, 1], strides = [1, 1]} : vector<16x4xf32> to vector<16x1xf32>
      %185 = vector.extract_strided_slice %3 {offsets = [0, 0], sizes = [1, 16], strides = [1, 1]} : vector<4x16xf32> to vector<1x16xf32>
      %186 = arith.mulf %184, %184 : vector<16x1xf32>
      %187 = arith.mulf %185, %185 : vector<1x16xf32>
      %188 = vector.broadcast %186 : vector<16x1xf32> to vector<16x16xf32>
      %189 = vector.broadcast %187 : vector<1x16xf32> to vector<16x16xf32>
      %190 = arith.addf %188, %189 : vector<16x16xf32>
      %191 = vector.extract_strided_slice %0 {offsets = [0, 0], sizes = [16, 1], strides = [1, 1]} : vector<16x4xf32> to vector<16x1xf32>
      %192 = vector.extract_strided_slice %1 {offsets = [0, 0], sizes = [1, 16], strides = [1, 1]} : vector<4x16xf32> to vector<1x16xf32>
      %193 = vector.broadcast %191 : vector<16x1xf32> to vector<16x16xf32>
      %194 = vector.broadcast %192 : vector<1x16xf32> to vector<16x16xf32>
      %195 = arith.subf %193, %194 : vector<16x16xf32>
      %196 = arith.mulf %195, %195 : vector<16x16xf32>
      %197 = vector.extract_strided_slice %2 {offsets = [0, 1], sizes = [16, 1], strides = [1, 1]} : vector<16x4xf32> to vector<16x1xf32>
      %198 = vector.extract_strided_slice %3 {offsets = [1, 0], sizes = [1, 16], strides = [1, 1]} : vector<4x16xf32> to vector<1x16xf32>
      %199 = arith.mulf %185, %198 : vector<1x16xf32>
      %200 = arith.mulf %197, %197 : vector<16x1xf32>
      %201 = arith.mulf %198, %198 : vector<1x16xf32>
      %202 = vector.broadcast %200 : vector<16x1xf32> to vector<16x16xf32>
      %203 = vector.broadcast %201 : vector<1x16xf32> to vector<16x16xf32>
      %204 = arith.addf %202, %203 : vector<16x16xf32>
      %205 = vector.extract_strided_slice %0 {offsets = [0, 1], sizes = [16, 1], strides = [1, 1]} : vector<16x4xf32> to vector<16x1xf32>
      %206 = vector.extract_strided_slice %1 {offsets = [1, 0], sizes = [1, 16], strides = [1, 1]} : vector<4x16xf32> to vector<1x16xf32>
      %207 = vector.broadcast %205 : vector<16x1xf32> to vector<16x16xf32>
      %208 = vector.broadcast %206 : vector<1x16xf32> to vector<16x16xf32>
      %209 = arith.subf %207, %208 : vector<16x16xf32>
      %210 = arith.mulf %209, %209 : vector<16x16xf32>
      %211 = arith.mulf %196, %204 : vector<16x16xf32>
      %212 = arith.mulf %210, %190 : vector<16x16xf32>
      %213 = arith.addf %211, %212 : vector<16x16xf32>
      %214 = arith.mulf %190, %204 : vector<16x16xf32>
      %215 = vector.extract_strided_slice %2 {offsets = [0, 2], sizes = [16, 1], strides = [1, 1]} : vector<16x4xf32> to vector<16x1xf32>
      %216 = vector.extract_strided_slice %3 {offsets = [2, 0], sizes = [1, 16], strides = [1, 1]} : vector<4x16xf32> to vector<1x16xf32>
      %217 = arith.mulf %199, %216 : vector<1x16xf32>
      %218 = arith.mulf %215, %215 : vector<16x1xf32>
      %219 = arith.mulf %216, %216 : vector<1x16xf32>
      %220 = vector.broadcast %218 : vector<16x1xf32> to vector<16x16xf32>
      %221 = vector.broadcast %219 : vector<1x16xf32> to vector<16x16xf32>
      %222 = arith.addf %220, %221 : vector<16x16xf32>
      %223 = vector.extract_strided_slice %0 {offsets = [0, 2], sizes = [16, 1], strides = [1, 1]} : vector<16x4xf32> to vector<16x1xf32>
      %224 = vector.extract_strided_slice %1 {offsets = [2, 0], sizes = [1, 16], strides = [1, 1]} : vector<4x16xf32> to vector<1x16xf32>
      %225 = vector.broadcast %223 : vector<16x1xf32> to vector<16x16xf32>
      %226 = vector.broadcast %224 : vector<1x16xf32> to vector<16x16xf32>
      %227 = arith.subf %225, %226 : vector<16x16xf32>
      %228 = arith.mulf %227, %227 : vector<16x16xf32>
      %229 = arith.mulf %213, %222 : vector<16x16xf32>
      %230 = arith.mulf %228, %214 : vector<16x16xf32>
      %231 = arith.addf %229, %230 : vector<16x16xf32>
      %232 = arith.mulf %214, %222 : vector<16x16xf32>
      %233 = vector.extract_strided_slice %2 {offsets = [0, 3], sizes = [16, 1], strides = [1, 1]} : vector<16x4xf32> to vector<16x1xf32>
      %234 = vector.extract_strided_slice %3 {offsets = [3, 0], sizes = [1, 16], strides = [1, 1]} : vector<4x16xf32> to vector<1x16xf32>
      %235 = arith.mulf %217, %234 : vector<1x16xf32>
      %236 = arith.mulf %233, %233 : vector<16x1xf32>
      %237 = arith.mulf %234, %234 : vector<1x16xf32>
      %238 = vector.broadcast %236 : vector<16x1xf32> to vector<16x16xf32>
      %239 = vector.broadcast %237 : vector<1x16xf32> to vector<16x16xf32>
      %240 = arith.addf %238, %239 : vector<16x16xf32>
      %241 = vector.extract_strided_slice %0 {offsets = [0, 3], sizes = [16, 1], strides = [1, 1]} : vector<16x4xf32> to vector<16x1xf32>
      %242 = vector.extract_strided_slice %1 {offsets = [3, 0], sizes = [1, 16], strides = [1, 1]} : vector<4x16xf32> to vector<1x16xf32>
      %243 = vector.broadcast %241 : vector<16x1xf32> to vector<16x16xf32>
      %244 = vector.broadcast %242 : vector<1x16xf32> to vector<16x16xf32>
      %245 = arith.subf %243, %244 : vector<16x16xf32>
      %246 = arith.mulf %245, %245 : vector<16x16xf32>
      %247 = arith.mulf %231, %240 : vector<16x16xf32>
      %248 = arith.mulf %246, %232 : vector<16x16xf32>
      %249 = arith.addf %247, %248 : vector<16x16xf32>
      %250 = arith.mulf %232, %240 : vector<16x16xf32>
      %251 = vector.broadcast %8 : f32 to vector<16x1xf32>
      %252 = arith.mulf %251, %15 : vector<16x1xf32>
      %253 = vector.broadcast %252 : vector<16x1xf32> to vector<16x16xf32>
      %254 = vector.broadcast %235 : vector<1x16xf32> to vector<16x16xf32>
      %255 = arith.mulf %253, %254 : vector<16x16xf32>
      %256 = arith.divf %255, %250 : vector<16x16xf32>
      %257 = math.sqrt %256 : vector<16x16xf32>
      %258 = arith.divf %249, %250 : vector<16x16xf32>
      %cst_43 = arith.constant 0.000000e+00 : f32
      %259 = vector.broadcast %cst_43 : f32 to vector<16x16xf32>
      %260 = arith.subf %259, %258 : vector<16x16xf32>
      %261 = math.exp %260 : vector<16x16xf32>
      %262 = arith.mulf %257, %261 : vector<16x16xf32>
      %c0_44 = arith.constant 0 : index
      %c0_45 = arith.constant 0 : index
      %c0_46 = arith.constant 0 : index
      %263 = vector.load %arg11[%c0_44, %c0_45, %c0_46] : memref<1x16x16xf32, #tpu.memory_space<vmem>>, vector<1x16x16xf32>
      %264 = vector.shape_cast %263 : vector<1x16x16xf32> to vector<16x16xf32>
      %265 = vector.shape_cast %262 : vector<16x16xf32> to vector<1x16x16xf32>
      tpu.vector_store %arg11[%c0_44, %c0_45, %c0_46], %265 {strides = array<i32>} : memref<1x16x16xf32, #tpu.memory_space<vmem>>, vector<1x16x16xf32>,
    } else {
    }
    %19 = vector.extract_strided_slice %2 {offsets = [0, 0], sizes = [16, 1], strides = [1, 1]} : vector<16x4xf32> to vector<16x1xf32>
    %20 = vector.extract_strided_slice %4 {offsets = [0, 0], sizes = [1, 512], strides = [1, 1]} : vector<4x512xf32> to vector<1x512xf32>
    %21 = vector.extract_strided_slice %5 {offsets = [0, 0], sizes = [8, 1], strides = [1, 1]} : vector<8x4xf32> to vector<8x1xf32>
    %22 = vector.broadcast %21 : vector<8x1xf32> to vector<8x512xf32>
    %23 = vector.broadcast %20 : vector<1x512xf32> to vector<8x512xf32>
    %24 = arith.subf %22, %23 : vector<8x512xf32>
    %25 = arith.mulf %24, %24 : vector<8x512xf32>
    %c1 = arith.constant 1 : index
    %26 = memref.load %arg2[%c1] : memref<5xf32, #tpu.memory_space<smem>>
    %27 = vector.broadcast %26 : f32 to vector<8x512xf32>
    %28 = arith.mulf %25, %27 : vector<8x512xf32>
    %29 = math.exp %28 : vector<8x512xf32>
    %30 = vector.extract_strided_slice %6 {offsets = [0, 0], sizes = [8, 1], strides = [1, 1]} : vector<8x4xf32> to vector<8x1xf32>
    %31 = vector.broadcast %30 : vector<8x1xf32> to vector<8x512xf32>
    %32 = arith.mulf %29, %31 : vector<8x512xf32>
    %cst = arith.constant dense<0.000000e+00> : vector<512xf32>
    %33 = vector.multi_reduction <add>, %32, %cst [0] : vector<8x512xf32> to vector<512xf32>
    %34 = vector.shape_cast %33 : vector<512xf32> to vector<1x512xf32>
    %35 = math.exp %34 : vector<1x512xf32>
    %36 = arith.mulf %19, %19 : vector<16x1xf32>
    %37 = arith.mulf %35, %35 : vector<1x512xf32>
    %38 = vector.broadcast %36 : vector<16x1xf32> to vector<16x512xf32>
    %39 = vector.broadcast %37 : vector<1x512xf32> to vector<16x512xf32>
    %40 = arith.addf %38, %39 : vector<16x512xf32>
    %41 = vector.extract_strided_slice %0 {offsets = [0, 0], sizes = [16, 1], strides = [1, 1]} : vector<16x4xf32> to vector<16x1xf32>
    %42 = vector.extract_strided_slice %4 {offsets = [0, 0], sizes = [1, 512], strides = [1, 1]} : vector<4x512xf32> to vector<1x512xf32>
    %43 = vector.broadcast %41 : vector<16x1xf32> to vector<16x512xf32>
    %44 = vector.broadcast %42 : vector<1x512xf32> to vector<16x512xf32>
    %45 = arith.subf %43, %44 : vector<16x512xf32>
    %46 = arith.mulf %45, %45 : vector<16x512xf32>
    %47 = vector.extract_strided_slice %2 {offsets = [0, 1], sizes = [16, 1], strides = [1, 1]} : vector<16x4xf32> to vector<16x1xf32>
    %48 = vector.extract_strided_slice %4 {offsets = [1, 0], sizes = [1, 512], strides = [1, 1]} : vector<4x512xf32> to vector<1x512xf32>
    %49 = vector.extract_strided_slice %5 {offsets = [0, 1], sizes = [8, 1], strides = [1, 1]} : vector<8x4xf32> to vector<8x1xf32>
    %50 = vector.broadcast %49 : vector<8x1xf32> to vector<8x512xf32>
    %51 = vector.broadcast %48 : vector<1x512xf32> to vector<8x512xf32>
    %52 = arith.subf %50, %51 : vector<8x512xf32>
    %53 = arith.mulf %52, %52 : vector<8x512xf32>
    %c2 = arith.constant 2 : index
    %54 = memref.load %arg2[%c2] : memref<5xf32, #tpu.memory_space<smem>>
    %55 = vector.broadcast %54 : f32 to vector<8x512xf32>
    %56 = arith.mulf %53, %55 : vector<8x512xf32>
    %57 = math.exp %56 : vector<8x512xf32>
    %58 = vector.extract_strided_slice %6 {offsets = [0, 1], sizes = [8, 1], strides = [1, 1]} : vector<8x4xf32> to vector<8x1xf32>
    %59 = vector.broadcast %58 : vector<8x1xf32> to vector<8x512xf32>
    %60 = arith.mulf %57, %59 : vector<8x512xf32>
    %cst_17 = arith.constant dense<0.000000e+00> : vector<512xf32>
    %61 = vector.multi_reduction <add>, %60, %cst_17 [0] : vector<8x512xf32> to vector<512xf32>
    %62 = vector.shape_cast %61 : vector<512xf32> to vector<1x512xf32>
    %63 = math.exp %62 : vector<1x512xf32>
    %64 = arith.mulf %35, %63 : vector<1x512xf32>
    %65 = arith.mulf %47, %47 : vector<16x1xf32>
    %66 = arith.mulf %63, %63 : vector<1x512xf32>
    %67 = vector.broadcast %65 : vector<16x1xf32> to vector<16x512xf32>
    %68 = vector.broadcast %66 : vector<1x512xf32> to vector<16x512xf32>
    %69 = arith.addf %67, %68 : vector<16x512xf32>
    %70 = vector.extract_strided_slice %0 {offsets = [0, 1], sizes = [16, 1], strides = [1, 1]} : vector<16x4xf32> to vector<16x1xf32>
    %71 = vector.extract_strided_slice %4 {offsets = [1, 0], sizes = [1, 512], strides = [1, 1]} : vector<4x512xf32> to vector<1x512xf32>
    %72 = vector.broadcast %70 : vector<16x1xf32> to vector<16x512xf32>
    %73 = vector.broadcast %71 : vector<1x512xf32> to vector<16x512xf32>
    %74 = arith.subf %72, %73 : vector<16x512xf32>
    %75 = arith.mulf %74, %74 : vector<16x512xf32>
    %76 = arith.mulf %46, %69 : vector<16x512xf32>
    %77 = arith.mulf %75, %40 : vector<16x512xf32>
    %78 = arith.addf %76, %77 : vector<16x512xf32>
    %79 = arith.mulf %40, %69 : vector<16x512xf32>
    %80 = vector.extract_strided_slice %2 {offsets = [0, 2], sizes = [16, 1], strides = [1, 1]} : vector<16x4xf32> to vector<16x1xf32>
    %81 = vector.extract_strided_slice %4 {offsets = [2, 0], sizes = [1, 512], strides = [1, 1]} : vector<4x512xf32> to vector<1x512xf32>
    %82 = vector.extract_strided_slice %5 {offsets = [0, 2], sizes = [8, 1], strides = [1, 1]} : vector<8x4xf32> to vector<8x1xf32>
    %83 = vector.broadcast %82 : vector<8x1xf32> to vector<8x512xf32>
    %84 = vector.broadcast %81 : vector<1x512xf32> to vector<8x512xf32>
    %85 = arith.subf %83, %84 : vector<8x512xf32>
    %86 = arith.mulf %85, %85 : vector<8x512xf32>
    %c3 = arith.constant 3 : index
    %87 = memref.load %arg2[%c3] : memref<5xf32, #tpu.memory_space<smem>>
    %88 = vector.broadcast %87 : f32 to vector<8x512xf32>
    %89 = arith.mulf %86, %88 : vector<8x512xf32>
    %90 = math.exp %89 : vector<8x512xf32>
    %91 = vector.extract_strided_slice %6 {offsets = [0, 2], sizes = [8, 1], strides = [1, 1]} : vector<8x4xf32> to vector<8x1xf32>
    %92 = vector.broadcast %91 : vector<8x1xf32> to vector<8x512xf32>
    %93 = arith.mulf %90, %92 : vector<8x512xf32>
    %cst_18 = arith.constant dense<0.000000e+00> : vector<512xf32>
    %94 = vector.multi_reduction <add>, %93, %cst_18 [0] : vector<8x512xf32> to vector<512xf32>
    %95 = vector.shape_cast %94 : vector<512xf32> to vector<1x512xf32>
    %96 = math.exp %95 : vector<1x512xf32>
    %97 = arith.mulf %64, %96 : vector<1x512xf32>
    %98 = arith.mulf %80, %80 : vector<16x1xf32>
    %99 = arith.mulf %96, %96 : vector<1x512xf32>
    %100 = vector.broadcast %98 : vector<16x1xf32> to vector<16x512xf32>
    %101 = vector.broadcast %99 : vector<1x512xf32> to vector<16x512xf32>
    %102 = arith.addf %100, %101 : vector<16x512xf32>
    %103 = vector.extract_strided_slice %0 {offsets = [0, 2], sizes = [16, 1], strides = [1, 1]} : vector<16x4xf32> to vector<16x1xf32>
    %104 = vector.extract_strided_slice %4 {offsets = [2, 0], sizes = [1, 512], strides = [1, 1]} : vector<4x512xf32> to vector<1x512xf32>
    %105 = vector.broadcast %103 : vector<16x1xf32> to vector<16x512xf32>
    %106 = vector.broadcast %104 : vector<1x512xf32> to vector<16x512xf32>
    %107 = arith.subf %105, %106 : vector<16x512xf32>
    %108 = arith.mulf %107, %107 : vector<16x512xf32>
    %109 = arith.mulf %78, %102 : vector<16x512xf32>
    %110 = arith.mulf %108, %79 : vector<16x512xf32>
    %111 = arith.addf %109, %110 : vector<16x512xf32>
    %112 = arith.mulf %79, %102 : vector<16x512xf32>
    %113 = vector.extract_strided_slice %2 {offsets = [0, 3], sizes = [16, 1], strides = [1, 1]} : vector<16x4xf32> to vector<16x1xf32>
    %114 = vector.extract_strided_slice %4 {offsets = [3, 0], sizes = [1, 512], strides = [1, 1]} : vector<4x512xf32> to vector<1x512xf32>
    %115 = vector.extract_strided_slice %5 {offsets = [0, 3], sizes = [8, 1], strides = [1, 1]} : vector<8x4xf32> to vector<8x1xf32>
    %116 = vector.broadcast %115 : vector<8x1xf32> to vector<8x512xf32>
    %117 = vector.broadcast %114 : vector<1x512xf32> to vector<8x512xf32>
    %118 = arith.subf %116, %117 : vector<8x512xf32>
    %119 = arith.mulf %118, %118 : vector<8x512xf32>
    %c4 = arith.constant 4 : index
    %120 = memref.load %arg2[%c4] : memref<5xf32, #tpu.memory_space<smem>>
    %121 = vector.broadcast %120 : f32 to vector<8x512xf32>
    %122 = arith.mulf %119, %121 : vector<8x512xf32>
    %123 = math.exp %122 : vector<8x512xf32>
    %124 = vector.extract_strided_slice %6 {offsets = [0, 3], sizes = [8, 1], strides = [1, 1]} : vector<8x4xf32> to vector<8x1xf32>
    %125 = vector.broadcast %124 : vector<8x1xf32> to vector<8x512xf32>
    %126 = arith.mulf %123, %125 : vector<8x512xf32>
    %cst_19 = arith.constant dense<0.000000e+00> : vector<512xf32>
    %127 = vector.multi_reduction <add>, %126, %cst_19 [0] : vector<8x512xf32> to vector<512xf32>
    %128 = vector.shape_cast %127 : vector<512xf32> to vector<1x512xf32>
    %129 = math.exp %128 : vector<1x512xf32>
    %130 = arith.mulf %97, %129 : vector<1x512xf32>
    %131 = arith.mulf %113, %113 : vector<16x1xf32>
    %132 = arith.mulf %129, %129 : vector<1x512xf32>
    %133 = vector.broadcast %131 : vector<16x1xf32> to vector<16x512xf32>
    %134 = vector.broadcast %132 : vector<1x512xf32> to vector<16x512xf32>
    %135 = arith.addf %133, %134 : vector<16x512xf32>
    %136 = vector.extract_strided_slice %0 {offsets = [0, 3], sizes = [16, 1], strides = [1, 1]} : vector<16x4xf32> to vector<16x1xf32>
    %137 = vector.extract_strided_slice %4 {offsets = [3, 0], sizes = [1, 512], strides = [1, 1]} : vector<4x512xf32> to vector<1x512xf32>
    %138 = vector.broadcast %136 : vector<16x1xf32> to vector<16x512xf32>
    %139 = vector.broadcast %137 : vector<1x512xf32> to vector<16x512xf32>
    %140 = arith.subf %138, %139 : vector<16x512xf32>
    %141 = arith.mulf %140, %140 : vector<16x512xf32>
    %142 = arith.mulf %111, %135 : vector<16x512xf32>
    %143 = arith.mulf %141, %112 : vector<16x512xf32>
    %144 = arith.addf %142, %143 : vector<16x512xf32>
    %145 = arith.mulf %112, %135 : vector<16x512xf32>
    %146 = vector.broadcast %8 : f32 to vector<16x1xf32>
    %147 = arith.mulf %146, %15 : vector<16x1xf32>
    %148 = vector.broadcast %147 : vector<16x1xf32> to vector<16x512xf32>
    %149 = vector.broadcast %130 : vector<1x512xf32> to vector<16x512xf32>
    %150 = arith.mulf %148, %149 : vector<16x512xf32>
    %151 = tpu.reciprocal %145 {approx = true} : vector<16x512xf32> -> vector<16x512xf32>
    %152 = arith.mulf %150, %151 : vector<16x512xf32>
    %153 = math.sqrt %152 : vector<16x512xf32>
    %154 = arith.mulf %144, %151 : vector<16x512xf32>
    %cst_20 = arith.constant 0.000000e+00 : f32
    %155 = vector.broadcast %cst_20 : f32 to vector<16x512xf32>
    %156 = arith.subf %155, %154 : vector<16x512xf32>
    %157 = math.exp %156 : vector<16x512xf32>
    %158 = arith.mulf %153, %157 : vector<16x512xf32>
    %c0_21 = arith.constant 0 : index
    %c0_22 = arith.constant 0 : index
    %c0_23 = arith.constant 0 : index
    %159 = vector.load %arg12[%c0_21, %c0_22, %c0_23] : memref<1x16x16xf32, #tpu.memory_space<vmem>>, vector<1x16x16xf32>
    %160 = vector.shape_cast %159 : vector<1x16x16xf32> to vector<16x16xf32>
    %cst_24 = arith.constant dense<0.000000e+00> : vector<16x16xf32>
    %161 = tpu.matmul %158, %158, %cst_24 {dimension_numbers = #tpu.dot_dimension_numbers<[1], [1], [0], [0], [0, 0, 1, 0], [], []>, precision = #tpu.contract_precision<fp32>} : vector<16x512xf32>, vector<16x512xf32>, vector<16x16xf32> -> vector<16x16xf32>
    %162 = arith.addf %160, %161 : vector<16x16xf32>
    %c0_25 = arith.constant 0 : index
    %c0_26 = arith.constant 0 : index
    %c0_27 = arith.constant 0 : index
    %163 = vector.load %arg12[%c0_25, %c0_26, %c0_27] : memref<1x16x16xf32, #tpu.memory_space<vmem>>, vector<1x16x16xf32>
    %164 = vector.shape_cast %163 : vector<1x16x16xf32> to vector<16x16xf32>
    %165 = vector.shape_cast %162 : vector<16x16xf32> to vector<1x16x16xf32>
    tpu.vector_store %arg12[%c0_25, %c0_26, %c0_27], %165 {strides = array<i32>} : memref<1x16x16xf32, #tpu.memory_space<vmem>>, vector<1x16x16xf32>,
    %c0_28 = arith.constant 0 : index
    %c0_29 = arith.constant 0 : index
    %c0_30 = arith.constant 0 : index
    %166 = vector.load %arg13[%c0_28, %c0_29, %c0_30] : memref<1x16x1xf32, #tpu.memory_space<vmem>>, vector<1x16x1xf32>
    %167 = vector.shape_cast %166 : vector<1x16x1xf32> to vector<16x1xf32>
    %168 = vector.broadcast %7 : vector<1x512xf32> to vector<16x512xf32>
    %169 = arith.mulf %158, %168 : vector<16x512xf32>
    %cst_31 = arith.constant dense<0.000000e+00> : vector<16xf32>
    %170 = vector.multi_reduction <add>, %169, %cst_31 [1] : vector<16x512xf32> to vector<16xf32>
    %171 = vector.shape_cast %170 : vector<16xf32> to vector<16x1xf32>
    %172 = arith.addf %167, %171 : vector<16x1xf32>
    %c0_32 = arith.constant 0 : index
    %c0_33 = arith.constant 0 : index
    %c0_34 = arith.constant 0 : index
    %173 = vector.load %arg13[%c0_32, %c0_33, %c0_34] : memref<1x16x1xf32, #tpu.memory_space<vmem>>, vector<1x16x1xf32>
    %174 = vector.shape_cast %173 : vector<1x16x1xf32> to vector<16x1xf32>
    %175 = vector.shape_cast %172 : vector<16x1xf32> to vector<1x16x1xf32>
    tpu.vector_store %arg13[%c0_32, %c0_33, %c0_34], %175 {strides = array<i32>} : memref<1x16x1xf32, #tpu.memory_space<vmem>>, vector<1x16x1xf32>,
    return
  }
  func.func @transform_0(%arg0: i32, %arg1: i32) -> i32 {
    %c0_i32 = arith.constant 0 : i32
    %c0_i32_0 = arith.constant 0 : i32
    return %c0_i32 : i32
  }
  func.func @transform_1(%arg0: i32, %arg1: i32) -> (i32, i32) {
    %c0_i32 = arith.constant 0 : i32
    %c0_i32_0 = arith.constant 0 : i32
    %c0_i32_1 = arith.constant 0 : i32
    return %c0_i32, %c0_i32_0 : i32, i32
  }
  func.func @transform_2(%arg0: i32, %arg1: i32) -> (i32, i32) {
    %c0_i32 = arith.constant 0 : i32
    %c0_i32_0 = arith.constant 0 : i32
    %c0_i32_1 = arith.constant 0 : i32
    return %c0_i32, %c0_i32_0 : i32, i32
  }
  func.func @transform_3(%arg0: i32, %arg1: i32) -> (i32, i32) {
    %c0_i32 = arith.constant 0 : i32
    %c0_i32_0 = arith.constant 0 : i32
    %c0_i32_1 = arith.constant 0 : i32
    return %c0_i32, %c0_i32_0 : i32, i32
  }
  func.func @transform_4(%arg0: i32, %arg1: i32) -> (i32, i32) {
    %c0_i32 = arith.constant 0 : i32
    %c0_i32_0 = arith.constant 0 : i32
    %c0_i32_1 = arith.constant 0 : i32
    return %c0_i32, %c0_i32_0 : i32, i32
  }
  func.func @transform_5(%arg0: i32, %arg1: i32) -> (i32, i32) {
    %c1_i32 = arith.constant 1 : i32
    %0 = arith.muli %arg0, %c1_i32 : i32
    %1 = arith.addi %0, %arg1 : i32
    %c0_i32 = arith.constant 0 : i32
    %c0_i32_0 = arith.constant 0 : i32
    return %c0_i32, %1 : i32, i32
  }
  func.func @transform_6(%arg0: i32, %arg1: i32) -> (i32, i32) {
    %c0_i32 = arith.constant 0 : i32
    %c0_i32_0 = arith.constant 0 : i32
    %c0_i32_1 = arith.constant 0 : i32
    return %c0_i32, %c0_i32_0 : i32, i32
  }
  func.func @transform_7(%arg0: i32, %arg1: i32) -> (i32, i32) {
    %c0_i32 = arith.constant 0 : i32
    %c0_i32_0 = arith.constant 0 : i32
    %c0_i32_1 = arith.constant 0 : i32
    return %c0_i32, %c0_i32_0 : i32, i32
  }
  func.func @transform_8(%arg0: i32, %arg1: i32) -> (i32, i32) {
    %c1_i32 = arith.constant 1 : i32
    %0 = arith.muli %arg0, %c1_i32 : i32
    %1 = arith.addi %0, %arg1 : i32
    %c0_i32 = arith.constant 0 : i32
    %c0_i32_0 = arith.constant 0 : i32
    return %c0_i32, %1 : i32, i32
  }
  func.func @transform_9(%arg0: i32, %arg1: i32) -> (i32, i32, i32) {
    %c0_i32 = arith.constant 0 : i32
    %c0_i32_0 = arith.constant 0 : i32
    %c0_i32_1 = arith.constant 0 : i32
    return %arg0, %c0_i32, %c0_i32_0 : i32, i32, i32
  }
  func.func @transform_10(%arg0: i32, %arg1: i32) -> (i32, i32, i32) {
    %c0_i32 = arith.constant 0 : i32
    %c0_i32_0 = arith.constant 0 : i32
    %c0_i32_1 = arith.constant 0 : i32
    return %arg0, %c0_i32, %c0_i32_0 : i32, i32, i32
  }
  func.func @transform_11(%arg0: i32, %arg1: i32) -> (i32, i32, i32) {
    %c0_i32 = arith.constant 0 : i32
    %c0_i32_0 = arith.constant 0 : i32
    %c0_i32_1 = arith.constant 0 : i32
    return %arg0, %c0_i32, %c0_i32_0 : i32, i32, i32
  }
}

</mosaic_0001>

<bundles_post_ra>
// kernel: square.6
= control target key start
LH: loop header
LB: loop body
LE: loop exit
PB: predicated region body
PF: predicated region fallthrough
CT: control target
= control target key end

     0   :  { %s34_s0 = inlined_call_operand.vmem [shape: f32[4], index: 0, kind: input, shape index: {}, may-alias: {0,1}]   ;;  %s35_s1 = inlined_call_operand.vmem [shape: f32[4], index: 1, kind: input, shape index: {}, may-alias: {0,1}]   ;;  %s36_s2 = inlined_call_operand.vmem [shape: f32[4], index: 2, kind: output, shape index: {}]  }
   0x1   :  { %v3_v0 = vld [vmem:[%s34_s0] sm:$0x1] }
   0x2   :  { %v4_v1 = vld [vmem:[%s35_s1] sm:$0x1] }
   0x3   :  { %v7_v2 = vmul.f32 %v4_v1, %v3_v0 }
   0x5   :  { %9 = vst [vmem:[%s36_s2] sm:$0x1] %v7_v2 }

// kernel: custom-call.17
= control target key start
LH: loop header
LB: loop body
LE: loop exit
PB: predicated region body
PF: predicated region fallthrough
CT: control target
= control target key end

     0   :  { %s469_s6 = smov 0   ;;  %s471_s7 = smov 0   ;;  %s549_s0 = inlined_call_operand.vmem [shape: f32[4,8,8], index: 0, kind: input, shape index: {}]   ;;  %s550_s1 = inlined_call_operand.vmem [shape: f32[4,8,8], index: 1, kind: output, shape index: {}]  }
   0x1   :  { %s473_s8 = smov 0  }
   0x2 LB: > { %s367_s9 = sadd.s32 4294967295, %s456_s8   ;;  %s26_s10 = sadd.s32 1, %s452_s7  ;;  %s456_s8 = sphi %s473_s8, %s7_s8   ;;  %s452_s7 = sphi %s471_s7, %s552_s7   ;;  %s448_s6 = sphi %s469_s6, %s551_s6  }
   0x3   : > { %p28_p0 = scmp.ge.s32.totalorder %s26_s10, 4  ;;  %p369_p1 = scmp.ge.s32.totalorder %s456_s8, 4 }
   0x4   : > { %s42_s11 = sand.u32 (!%p369_p1), 1, %s456_s8   ;;  %s371_s12 = sshll.u32 (!%p369_p1), %s452_s7, 3 }
   0x5   : > { %s554_s10 = smov (%p28_p0, %s26_s10), 0  ;;  %40 = sbr.rel (%p369_p1) target bundleno = 12 (0xc), region = 16 }
   0x6   : > { %s370_s13 = sshll.u32 (!%p369_p1), %s42_s11, 3  ;;  %s48_s16 = scalar_lea.vmem (!%p369_p1), %s549_s0, %s371_s12 }
   0x7   : > { %v76_v0 = vld [vmem:[%s48_s16] sm:$0xff] (!%p369_p1)  ;;  %s44_s17 = scalar_lea.vmem (!%p369_p1), [#allocation0], %s370_s13 }
   0x8   : > { %77 = vst [vmem:[%s44_s17] sm:$0xff] (!%p369_p1), %v76_v0 }
   0xc PF: > { %p372_p2 = scmp.ge.s32.totalorder %s456_s8, 1  ;;  %p82_p3 = scmp.lt.s32.totalorder %s456_s8, 5 }
   0xe   : > { %p83_p4 = pnand %p372_p2, %p82_p3 }
   0xf   : > { %s89_s18 = sand.u32 (!%p83_p4), 1, %s367_s9   ;;  %v458_v1 = vmov (!%p83_p4), 0.0   ;;  %vm101_vm0 = vcmask (!%p83_p4), 7168   ;;  %vm119_vm1 = vcmask (!%p83_p4), 15368   ;;  %vm136_vm2 = vcmask (!%p83_p4), 1047553   ;;  %s390_s22 = sshll.u32 (!%p83_p4), %s448_s6, 3 }
  0x10   : > { %86 = sbr.rel (%p83_p4) target bundleno = 1377 (0x561), region = 54  ;;  %s373_s19 = sshll.u32 (!%p83_p4), %s89_s18, 3  ;;  %vm137_vm3 = vmand (!%p83_p4), %vm119_vm1, %vm136_vm2  ;;  %vm141_vm4 = vcmask (!%p83_p4), 23568   ;;  %vm158_vm5 = vcmask (!%p83_p4), 1047554   ;;  %vm163_vm7 = vcmask (!%p83_p4), 31768   ;;  %vm180_vm8 = vcmask (!%p83_p4), 1047555  }
  0x11   : > { %s496_s20 = scalar_lea.vmem (!%p83_p4), [#allocation1], %s373_s19  ;;  %s500_s21 = scalar_lea.vmem (!%p83_p4), [#allocation0], %s373_s19  ;;  %vm159_vm6 = vmand (!%p83_p4), %vm141_vm4, %vm158_vm5  ;;  %vm185_vm10 = vcmask (!%p83_p4), 39968   ;;  %vm202_vm11 = vcmask (!%p83_p4), 1047556   ;;  %vm207_vm13 = vcmask (!%p83_p4), 48168   ;;  %vm224_vm14 = vcmask (!%p83_p4), 1047557  }
  0x12   : > { %100 = vst [vmem:[%s496_s20] sm:$0xff] (!%p83_p4), %v458_v1  ;;  %v103_v5 = vld [vmem:[%s500_s21] ss:$0 sm:$0xff] (!%p83_p4)  ;;  %v376_v17 = vld [vmem:[%s500_s21 + $0x1] ss:$0 sm:$0xff] (!%p83_p4)  ;;  %v378_v29 = vld [vmem:[%s500_s21 + $0x2] ss:$0 sm:$0xff] (!%p83_p4)  ;;  %s280_s25 = scalar_lea.vmem (!%p83_p4), %s550_s1, %s390_s22 }
  0x13   : > { %v504_v9 = vld [vmem:[%s500_s21] sm:$0xff] (!%p83_p4)  ;;  %vm181_vm9 = vmand (!%p83_p4), %vm163_vm7, %vm180_vm8  ;;  %vm246_vm1 = vcmask (!%p83_p4), 1047558   ;;  %vm268_vm4 = vcmask (!%p83_p4), 1047559  }
  0x14   : > { %v380_v41 = vld [vmem:[%s500_s21 + $0x3] ss:$0 sm:$0xff] (!%p83_p4)  ;;  %v382_v53 = vld [vmem:[%s500_s21 + $0x4] ss:$0 sm:$0xff] (!%p83_p4)  ;;  %vm203_vm12 = vmand (!%p83_p4), %vm185_vm10, %vm202_vm11 }
  0x15   : > { %v384_v1 = vld [vmem:[%s500_s21 + $0x5] ss:$0 sm:$0xff] (!%p83_p4)  ;;  %vm225_vm15 = vmand (!%p83_p4), %vm207_vm13, %vm224_vm14 }
  0x19   : > { %v102_v2 = vld [vmem:[%s496_s20] ss:$0 sm:$0xff] }
  0x1a   : > { %v104_v3 = vmul.f32 %v102_v2, %v102_v2  ;;  %v111_v4 = vmul.f32 0.0, %v102_v2 }
  0x1c   : > { %105 = vadd.xlane.f32.xlu0 %v104_v3 }
  0x20   : > { %112 = vadd.xlane.f32.xlu0 %v111_v4 }
  0xa9   : > { %v106_v6 = vpop.xlane.xlu0 %105 }
  0xaa   : > { %v107_v7 = vsub.f32 %v103_v5, %v106_v6 }
  0xac   : > { %418 = vrsqrt.f32 %v107_v7 }
  0xad   : > { %v113_v8 = vpop.xlane.xlu0 %112 }
  0xae   : > { %v114_v10 = vsub.f32 %v504_v9, %v113_v8 }
  0xb6   : > { %v419_v11 = vpop.eup %418 }
  0xb7   : > { %v115_v12 = vmul.f32 %v419_v11, %v114_v10 }
  0xb9   : > { %v116_v13 = vsel %vm101_vm0, %v115_v12, 0.0  ;;  %vm229_vm0 = vcmask 56368  }
  0xba   : > { %118 = vst [vmem:[%s496_s20] sm:$0xff] %v116_v13  ;;  %vm247_vm2 = vmand %vm229_vm0, %vm246_vm1 }
  0xc1   : > { %v375_v14 = vld [vmem:[%s496_s20 + $0x1] ss:$0 sm:$0xff] }
  0xc2   : > { %v124_v15 = vmul.f32 %v375_v14, %v375_v14  ;;  %v131_v16 = vmul.f32 %v375_v14, %v116_v13  ;;  %v386_v14 = vld [vmem:[%s500_s21 + $0x6] ss:$0 sm:$0xff] }
  0xc4   : > { %125 = vadd.xlane.f32.xlu1 %v124_v15 }
  0xc8   : > { %132 = vadd.xlane.f32.xlu1 %v131_v16 }
 0x151   : > { %v126_v18 = vpop.xlane.xlu1 %125 }
 0x152   : > { %v127_v19 = vsub.f32 %v376_v17, %v126_v18 }
 0x154   : > { %420 = vrsqrt.f32 %v127_v19 }
 0x155   : > { %v133_v20 = vpop.xlane.xlu1 %132 }
 0x156   : > { %v134_v21 = vsub.f32 %v504_v9, %v133_v20 }
 0x15e   : > { %v421_v22 = vpop.eup %420 }
 0x15f   : > { %v135_v23 = vmul.f32 %v421_v22, %v134_v21 }
 0x161   : > { %v138_v24 = vsel %vm137_vm3, %v135_v23, 0.0  ;;  %vm251_vm3 = vcmask 64568  }
 0x162   : > { %v139_v25 = vadd.f32 %v138_v24, %v116_v13  ;;  %vm269_vm5 = vmand %vm251_vm3, %vm268_vm4 }
 0x164   : > { %140 = vst [vmem:[%s496_s20] sm:$0xff] %v139_v25 }
 0x16b   : > { %v377_v26 = vld [vmem:[%s496_s20 + $0x2] ss:$0 sm:$0xff] }
 0x16c   : > { %v153_v27 = vmul.f32 %v377_v26, %v139_v25  ;;  %v146_v28 = vmul.f32 %v377_v26, %v377_v26  ;;  %v388_v26 = vld [vmem:[%s500_s21 + $0x7] ss:$0 sm:$0xff] }
 0x16e   : > { %154 = vadd.xlane.f32.xlu1 %v153_v27  ;;  %147 = vadd.xlane.f32.xlu0 %v146_v28 }
 0x1fb   : > { %v148_v30 = vpop.xlane.xlu0 %147  ;;  %v155_v32 = vpop.xlane.xlu1 %154 }
 0x1fc   : > { %v149_v31 = vsub.f32 %v378_v29, %v148_v30  ;;  %v156_v33 = vsub.f32 %v504_v9, %v155_v32 }
 0x1fe   : > { %422 = vrsqrt.f32 %v149_v31 }
 0x208   : > { %v423_v34 = vpop.eup %422 }
 0x209   : > { %v157_v35 = vmul.f32 %v423_v34, %v156_v33 }
 0x20b   : > { %v160_v36 = vsel %vm159_vm6, %v157_v35, 0.0 }
 0x20c   : > { %v161_v37 = vadd.f32 %v160_v36, %v139_v25 }
 0x20e   : > { %162 = vst [vmem:[%s496_s20] sm:$0xff] %v161_v37 }
 0x215   : > { %v379_v38 = vld [vmem:[%s496_s20 + $0x3] ss:$0 sm:$0xff] }
 0x216   : > { %v175_v39 = vmul.f32 %v379_v38, %v161_v37  ;;  %v168_v40 = vmul.f32 %v379_v38, %v379_v38 }
 0x218   : > { %176 = vadd.xlane.f32.xlu1 %v175_v39  ;;  %169 = vadd.xlane.f32.xlu0 %v168_v40 }
 0x2a5   : > { %v170_v42 = vpop.xlane.xlu0 %169  ;;  %v177_v44 = vpop.xlane.xlu1 %176 }
 0x2a6   : > { %v171_v43 = vsub.f32 %v380_v41, %v170_v42  ;;  %v178_v45 = vsub.f32 %v504_v9, %v177_v44 }
 0x2a8   : > { %424 = vrsqrt.f32 %v171_v43 }
 0x2b2   : > { %v425_v46 = vpop.eup %424 }
 0x2b3   : > { %v179_v47 = vmul.f32 %v425_v46, %v178_v45 }
 0x2b5   : > { %v182_v48 = vsel %vm181_vm9, %v179_v47, 0.0 }
 0x2b6   : > { %v183_v49 = vadd.f32 %v182_v48, %v161_v37 }
 0x2b8   : > { %184 = vst [vmem:[%s496_s20] sm:$0xff] %v183_v49 }
 0x2bf   : > { %v381_v50 = vld [vmem:[%s496_s20 + $0x4] ss:$0 sm:$0xff] }
 0x2c0   : > { %v197_v51 = vmul.f32 %v381_v50, %v183_v49  ;;  %v190_v52 = vmul.f32 %v381_v50, %v381_v50 }
 0x2c2   : > { %198 = vadd.xlane.f32.xlu1 %v197_v51  ;;  %191 = vadd.xlane.f32.xlu0 %v190_v52 }
 0x34f   : > { %v192_v54 = vpop.xlane.xlu0 %191  ;;  %v199_v56 = vpop.xlane.xlu1 %198 }
 0x350   : > { %v193_v55 = vsub.f32 %v382_v53, %v192_v54  ;;  %v200_v57 = vsub.f32 %v504_v9, %v199_v56 }
 0x352   : > { %426 = vrsqrt.f32 %v193_v55 }
 0x35c   : > { %v427_v58 = vpop.eup %426 }
 0x35d   : > { %v201_v59 = vmul.f32 %v427_v58, %v200_v57 }
 0x35f   : > { %v204_v60 = vsel %vm203_vm12, %v201_v59, 0.0 }
 0x360   : > { %v205_v61 = vadd.f32 %v204_v60, %v183_v49 }
 0x362   : > { %206 = vst [vmem:[%s496_s20] sm:$0xff] %v205_v61 }
 0x369   : > { %v383_v62 = vld [vmem:[%s496_s20 + $0x5] ss:$0 sm:$0xff] }
 0x36a   : > { %v219_v63 = vmul.f32 %v383_v62, %v205_v61  ;;  %v212_v0 = vmul.f32 %v383_v62, %v383_v62 }
 0x36c   : > { %220 = vadd.xlane.f32.xlu1 %v219_v63  ;;  %213 = vadd.xlane.f32.xlu0 %v212_v0 }
 0x3f9   : > { %v214_v2 = vpop.xlane.xlu0 %213  ;;  %v221_v4 = vpop.xlane.xlu1 %220 }
 0x3fa   : > { %v215_v3 = vsub.f32 %v384_v1, %v214_v2  ;;  %v222_v5 = vsub.f32 %v504_v9, %v221_v4 }
 0x3fc   : > { %428 = vrsqrt.f32 %v215_v3 }
 0x406   : > { %v429_v6 = vpop.eup %428 }
 0x407   : > { %v223_v7 = vmul.f32 %v429_v6, %v222_v5 }
 0x409   : > { %v226_v8 = vsel %vm225_vm15, %v223_v7, 0.0 }
 0x40a   : > { %v227_v10 = vadd.f32 %v226_v8, %v205_v61 }
 0x40c   : > { %228 = vst [vmem:[%s496_s20] sm:$0xff] %v227_v10 }
 0x413   : > { %v385_v11 = vld [vmem:[%s496_s20 + $0x6] ss:$0 sm:$0xff] }
 0x414   : > { %v241_v12 = vmul.f32 %v385_v11, %v227_v10  ;;  %v234_v13 = vmul.f32 %v385_v11, %v385_v11 }
 0x416   : > { %242 = vadd.xlane.f32.xlu1 %v241_v12  ;;  %235 = vadd.xlane.f32.xlu0 %v234_v13 }
 0x4a3   : > { %v236_v15 = vpop.xlane.xlu0 %235  ;;  %v243_v17 = vpop.xlane.xlu1 %242 }
 0x4a4   : > { %v237_v16 = vsub.f32 %v386_v14, %v236_v15  ;;  %v244_v18 = vsub.f32 %v504_v9, %v243_v17 }
 0x4a6   : > { %430 = vrsqrt.f32 %v237_v16 }
 0x4b0   : > { %v431_v19 = vpop.eup %430 }
 0x4b1   : > { %v245_v20 = vmul.f32 %v431_v19, %v244_v18 }
 0x4b3   : > { %v248_v21 = vsel %vm247_vm2, %v245_v20, 0.0 }
 0x4b4   : > { %v249_v22 = vadd.f32 %v248_v21, %v227_v10 }
 0x4b6   : > { %250 = vst [vmem:[%s496_s20] sm:$0xff] %v249_v22 }
 0x4bd   : > { %v387_v23 = vld [vmem:[%s496_s20 + $0x7] ss:$0 sm:$0xff] }
 0x4be   : > { %v263_v24 = vmul.f32 %v387_v23, %v249_v22  ;;  %v256_v25 = vmul.f32 %v387_v23, %v387_v23 }
 0x4c0   : > { %264 = vadd.xlane.f32.xlu1 %v263_v24  ;;  %257 = vadd.xlane.f32.xlu0 %v256_v25 }
 0x54d   : > { %v258_v27 = vpop.xlane.xlu0 %257  ;;  %v265_v29 = vpop.xlane.xlu1 %264 }
 0x54e   : > { %v259_v28 = vsub.f32 %v388_v26, %v258_v27  ;;  %v266_v30 = vsub.f32 %v504_v9, %v265_v29 }
 0x550   : > { %432 = vrsqrt.f32 %v259_v28 }
 0x55a   : > { %v433_v31 = vpop.eup %432 }
 0x55b   : > { %v267_v32 = vmul.f32 %v433_v31, %v266_v30 }
 0x55d   : > { %v270_v33 = vsel %vm269_vm5, %v267_v32, 0.0 }
 0x55e   : > { %v271_v34 = vadd.f32 %v270_v33, %v249_v22 }
 0x560   : > { %272 = vst [vmem:[%s496_s20] sm:$0xff] %v271_v34  ;;  %309 = vst [vmem:[%s280_s25] sm:$0xff] %v271_v34 }
 0x561 PF: > { %s7_s8 = sadd.s32 1, %s456_s8   ;;  %s551_s6 = smov %s452_s7 }
 0x562   : > { %p4_p5 = scmp.ge.s32.totalorder %s7_s8, 6   ;;  %s552_s7 = smov %s554_s10 }
 0x564   :  { %6 = sbr.rel (!%p4_p5) target bundleno = 2 (0x2), region = 132 }

// kernel: custom-call.18
= control target key start
LH: loop header
LB: loop body
LE: loop exit
PB: predicated region body
PF: predicated region fallthrough
CT: control target
= control target key end

     0   :  { %s385_s6 = smov 0   ;;  %s387_s7 = smov 0   ;;  %s443_s0 = inlined_call_operand.vmem [shape: f32[4,1,8,8], index: 0, kind: input, shape index: {}]   ;;  %s444_s1 = inlined_call_operand.vmem [shape: f32[4,1,8,8], index: 1, kind: output, shape index: {}]  }
   0x1   :  { %s389_s8 = smov 0  }
   0x2 LB: > { %s311_s9 = sadd.s32 4294967295, %s372_s8   ;;  %s33_s10 = sadd.s32 1, %s368_s7  ;;  %s372_s8 = sphi %s389_s8, %s7_s8   ;;  %s368_s7 = sphi %s387_s7, %s446_s7   ;;  %s364_s6 = sphi %s385_s6, %s445_s6  }
   0x3   : > { %p35_p0 = scmp.ge.s32.totalorder %s33_s10, 4  ;;  %p313_p1 = scmp.ge.s32.totalorder %s372_s8, 4 }
   0x4   : > { %s49_s11 = sand.u32 (!%p313_p1), 1, %s372_s8   ;;  %s315_s12 = sshll.u32 (!%p313_p1), %s368_s7, 3 }
   0x5   : > { %s448_s10 = smov (%p35_p0, %s33_s10), 0  ;;  %47 = sbr.rel (%p313_p1) target bundleno = 12 (0xc), region = 16 }
   0x6   : > { %s314_s13 = sshll.u32 (!%p313_p1), %s49_s11, 3  ;;  %s56_s16 = scalar_lea.vmem (!%p313_p1), %s443_s0, %s315_s12 }
   0x7   : > { %v84_v0 = vld [vmem:[%s56_s16] sm:$0xff] (!%p313_p1)  ;;  %s51_s17 = scalar_lea.vmem (!%p313_p1), [#allocation0], %s314_s13 }
   0x8   : > { %85 = vst [vmem:[%s51_s17] sm:$0xff] (!%p313_p1), %v84_v0 }
   0xc PF: > { %p316_p2 = scmp.ge.s32.totalorder %s372_s8, 1  ;;  %p90_p3 = scmp.lt.s32.totalorder %s372_s8, 5 }
   0xe   : > { %p91_p4 = pnand %p316_p2, %p90_p3 }
  0x10   : > { %94 = sbr.rel (%p91_p4) target bundleno = 1213 (0x4bd), region = 54 }
  0x17   : > { %s97_s18 = sand.u32 1, %s311_s9   ;;  %v108_v1 = vlaneseq  ;;  %v374_v10 = vmov -1.0   ;;  %s320_s21 = sshll.u32 %s364_s6, 3 }
  0x18   : > { %s317_s19 = sshll.u32 %s97_s18, 3  ;;  %s219_s24 = scalar_lea.vmem %s444_s1, %s320_s21 }
  0x19   : > { %v412_v2 = vand.u32 127, %v108_v1  ;;  %v112_v3 = vshrl.u32 %v108_v1, 7  ;;  %s99_s20 = scalar_lea.vmem [#allocation0], %s317_s19 }
  0x1a   : > { %v115_v4 = vld [vmem:[%s99_s20] sm:$0xff] }
  0x1b   : > { %vm110_vm0 = vcmp.lt.s32.totalorder %v412_v2, 8  ;;  %vm114_vm1 = vcmp.eq.s32.totalorder %v112_v3, %v412_v2  ;;  %vm119_vm2 = vcmp.ge.s32.totalorder %v112_v3, %v412_v2  ;;  %vm133_vm4 = vcmp.eq.s32.totalorder %v412_v2, 0 }
  0x1c   : > { %v116_v5 = vsel %vm114_vm1, %v115_v4, 0.0  ;;  %vm120_vm3 = vmand %vm119_vm2, %vm110_vm0  ;;  %vm130_vm5 = vcmp.eq.s32.totalorder %v412_v2, %v112_v3  ;;  %v134_v11 = vsel %vm133_vm4, 1.0, %v374_v10  ;;  %vm141_vm6 = vcmp.eq.s32.totalorder %v412_v2, 1 }
  0x1d   : > { %v121_v6 = vsel %vm120_vm3, %v115_v4, 0.0  ;;  %117 = vadd.xlane.f32.xlu0 %v116_v5  ;;  %v135_v12 = vsel %vm130_vm5, %v134_v11, 0.0  ;;  %vm151_vm7 = vcmp.eq.s32.totalorder %v412_v2, 2  ;;  %vm161_vm8 = vcmp.eq.s32.totalorder %v412_v2, 3 }
  0x1e   : > { %vm171_vm9 = vcmp.eq.s32.totalorder %v412_v2, 4  ;;  %vm181_vm10 = vcmp.eq.s32.totalorder %v412_v2, 5  ;;  %vm191_vm11 = vcmp.eq.s32.totalorder %v412_v2, 6  ;;  %vm201_vm12 = vcmp.eq.s32.totalorder %v412_v2, 7 }
  0xaa   : > { %v417_v7 = vpop.xlane.xlu0 %117 }
  0xab   : > { %348 = vrcp.f32 %v417_v7  ;;  %vm208_vm13 = vweird.f32 %v417_v7 }
  0xb5   : > { %v349_v8 = vpop.eup %348 }
  0xb6   : > { %v123_v9 = vmul.f32 %v349_v8, %v121_v6 }
  0xb8   : > { %124 = vst [vmem:[#allocation2] sm:$0xff] %v123_v9 }
  0xbf   : > { %v137_v13 = vld [vmem:[#allocation2 + $0x1] ss:$0 sm:$0xff]  ;;  %v147_v16 = vld [vmem:[#allocation2 + $0x2] ss:$0 sm:$0xff]  ;;  %v157_v21 = vld [vmem:[#allocation2 + $0x3] ss:$0 sm:$0xff] }
  0xc0   : > { %v138_v14 = vxor.u32 2147483648, %v137_v13  ;;  %v148_v18 = vxor.u32 2147483648, %v147_v16  ;;  %v158_v23 = vxor.u32 2147483648, %v157_v21  ;;  %v167_v26 = vld [vmem:[#allocation2 + $0x4] ss:$0 sm:$0xff] }
  0xc1   : > { %v168_v28 = vxor.u32 2147483648, %v167_v26  ;;  %v177_v31 = vld [vmem:[#allocation2 + $0x5] ss:$0 sm:$0xff]  ;;  %v187_v36 = vld [vmem:[#allocation2 + $0x6] ss:$0 sm:$0xff] }
  0xc2   : > { %v142_v15 = vmul.f32 %v138_v14, %v135_v12  ;;  %v178_v33 = vxor.u32 2147483648, %v177_v31  ;;  %v188_v38 = vxor.u32 2147483648, %v187_v36  ;;  %v197_v41 = vld [vmem:[#allocation2 + $0x7] ss:$0 sm:$0xff] }
  0xc3   : > { %v198_v43 = vxor.u32 2147483648, %v197_v41 }
  0xc4   : > { %143 = vadd.xlane.f32.xlu0 %v142_v15 }
 0x151   : > { %v144_v17 = vpop.xlane.xlu0 %143 }
 0x152   : > { %v145_v19 = vsel %vm141_vm6, %v144_v17, %v135_v12 }
 0x153   : > { %v152_v20 = vmul.f32 %v148_v18, %v145_v19 }
 0x155   : > { %153 = vadd.xlane.f32.xlu1 %v152_v20 }
 0x1e2   : > { %v154_v22 = vpop.xlane.xlu1 %153 }
 0x1e3   : > { %v155_v24 = vsel %vm151_vm7, %v154_v22, %v145_v19 }
 0x1e4   : > { %v162_v25 = vmul.f32 %v158_v23, %v155_v24 }
 0x1e6   : > { %163 = vadd.xlane.f32.xlu1 %v162_v25 }
 0x273   : > { %v164_v27 = vpop.xlane.xlu1 %163 }
 0x274   : > { %v165_v29 = vsel %vm161_vm8, %v164_v27, %v155_v24 }
 0x275   : > { %v172_v30 = vmul.f32 %v168_v28, %v165_v29 }
 0x277   : > { %173 = vadd.xlane.f32.xlu0 %v172_v30 }
 0x304   : > { %v174_v32 = vpop.xlane.xlu0 %173 }
 0x305   : > { %v175_v34 = vsel %vm171_vm9, %v174_v32, %v165_v29 }
 0x306   : > { %v182_v35 = vmul.f32 %v178_v33, %v175_v34 }
 0x308   : > { %183 = vadd.xlane.f32.xlu1 %v182_v35 }
 0x395   : > { %v184_v37 = vpop.xlane.xlu1 %183 }
 0x396   : > { %v185_v39 = vsel %vm181_vm10, %v184_v37, %v175_v34 }
 0x397   : > { %v192_v40 = vmul.f32 %v188_v38, %v185_v39 }
 0x399   : > { %193 = vadd.xlane.f32.xlu0 %v192_v40 }
 0x426   : > { %v194_v42 = vpop.xlane.xlu0 %193 }
 0x427   : > { %v195_v44 = vsel %vm191_vm11, %v194_v42, %v185_v39 }
 0x428   : > { %v202_v45 = vmul.f32 %v198_v43, %v195_v44 }
 0x42a   : > { %203 = vadd.xlane.f32.xlu1 %v202_v45 }
 0x4b7   : > { %v204_v46 = vpop.xlane.xlu1 %203 }
 0x4b8   : > { %v205_v47 = vsel %vm201_vm12, %v204_v46, %v195_v44 }
 0x4b9   : > { %v207_v48 = vmul.f32 %v349_v8, %v205_v47 }
 0x4bb   : > { %v209_v49 = vsel %vm208_vm13, %v205_v47, %v207_v48 }
 0x4bc   : > { %248 = vst [vmem:[%s219_s24] sm:$0xff] %v209_v49 }
 0x4bd PF: > { %s7_s8 = sadd.s32 1, %s372_s8   ;;  %s445_s6 = smov %s368_s7 }
 0x4be   : > { %p4_p5 = scmp.ge.s32.totalorder %s7_s8, 6   ;;  %s446_s7 = smov %s448_s10 }
 0x4c0   :  { %6 = sbr.rel (!%p4_p5) target bundleno = 2 (0x2), region = 125 }

// kernel: custom-call.22
= control target key start
LH: loop header
LB: loop body
LE: loop exit
PB: predicated region body
PF: predicated region fallthrough
CT: control target
= control target key end

     0   :  { %v592_v0 = vmov 0.0   ;;  %vm41_vm0 = vcmask 7168   ;;  %vm72_vm1 = vcmask 15368   ;;  %vm89_vm2 = vcmask 1047553   ;;  %s676_s0 = inlined_call_operand.vmem [shape: f32[16,16], index: 0, kind: input, shape index: {}]   ;;  %s677_s1 = inlined_call_operand.vmem [shape: f32[16,16], index: 1, kind: output, shape index: {}]  }
   0x1   :  { %38 = vst [vmem:[#allocation1] sm:$0xff] %v592_v0  ;;  %v606_v4 = vld [vmem:[%s676_s0] sm:$0xff]  ;;  %v612_v5 = vld [vmem:[%s676_s0 + $0x8] sm:$0xff]  ;;  %vm90_vm3 = vmand %vm72_vm1, %vm89_vm2  ;;  %vm107_vm4 = vcmask 23568   ;;  %vm124_vm5 = vcmask 1047554   ;;  %vm142_vm7 = vcmask 31768  }
   0x2   :  { %32 = vst [vmem:[#allocation0] sm:$0xff] %v606_v4  ;;  %34 = vst [vmem:[#allocation0 + $0x8] sm:$0xff] %v612_v5  ;;  %vm159_vm8 = vcmask 1047555   ;;  %vm177_vm10 = vcmask 39968   ;;  %vm194_vm11 = vcmask 1047556   ;;  %vm212_vm13 = vcmask 48168  }
   0x3   :  { %vm125_vm6 = vmand %vm107_vm4, %vm124_vm5  ;;  %vm229_vm14 = vcmask 1047557  }
   0x4   :  { %vm160_vm9 = vmand %vm142_vm7, %vm159_vm8 }
   0x5   :  { %vm195_vm12 = vmand %vm177_vm10, %vm194_vm11 }
   0x6   :  { %vm230_vm15 = vmand %vm212_vm13, %vm229_vm14 }
   0x8   :  { %v42_v1 = vld [vmem:[#allocation1] ss:$0 sm:$0xff] }
   0x9   :  { %v44_v2 = vmul.f32 %v42_v1, %v42_v1  ;;  %v63_v3 = vmul.f32 0.0, %v42_v1  ;;  %v43_v6 = vld [vmem:[#allocation0] ss:$0 sm:$0xff]  ;;  %v76_v22 = vld [vmem:[#allocation0 + $0x1] ss:$0 sm:$0xff] }
   0xa   :  { %v111_v40 = vld [vmem:[#allocation0 + $0x2] ss:$0 sm:$0xff]  ;;  %v146_v58 = vld [vmem:[#allocation0 + $0x3] ss:$0 sm:$0xff] }
   0xb   :  { %45 = vadd.xlane.f32.xlu0 %v44_v2  ;;  %64 = vadd.xlane.f32.xlu1 %v63_v3 }
   0xf   :  { %52 = vadd.xlane.f32.xlu0 %v63_v3 }
  0x98   :  { %v46_v7 = vpop.xlane.xlu0 %45  ;;  %v65_v13 = vpop.xlane.xlu1 %64 }
  0x99   :  { %v47_v8 = vsub.f32 %v43_v6, %v46_v7  ;;  %v66_v15 = vsub.f32 %v612_v5, %v65_v13 }
  0x9b   :  { %560 = vrsqrt.f32 %v47_v8 }
  0x9c   :  { %v53_v9 = vpop.xlane.xlu0 %52 }
  0x9d   :  { %v54_v10 = vsub.f32 %v606_v4, %v53_v9 }
  0xa5   :  { %v561_v11 = vpop.eup %560 }
  0xa6   :  { %v55_v12 = vmul.f32 %v561_v11, %v54_v10  ;;  %v67_v16 = vmul.f32 %v561_v11, %v66_v15 }
  0xa8   :  { %v56_v14 = vsel %vm41_vm0, %v55_v12, 0.0  ;;  %v68_v17 = vsel %vm41_vm0, %v67_v16, 0.0  ;;  %vm247_vm0 = vcmask 56368  }
  0xa9   :  { %58 = vst [vmem:[#allocation1] sm:$0xff] %v56_v14 }
  0xb0   :  { %v74_v18 = vld [vmem:[#allocation1 + $0x1] ss:$0 sm:$0xff] }
  0xb1   :  { %v84_v19 = vmul.f32 %v74_v18, %v56_v14  ;;  %v77_v20 = vmul.f32 %v74_v18, %v74_v18  ;;  %v98_v21 = vmul.f32 %v74_v18, %v68_v17 }
  0xb3   :  { %85 = vadd.xlane.f32.xlu0 %v84_v19  ;;  %78 = vadd.xlane.f32.xlu1 %v77_v20 }
  0xb7   :  { %99 = vadd.xlane.f32.xlu1 %v98_v21 }
 0x140   :  { %v79_v23 = vpop.xlane.xlu1 %78  ;;  %v86_v25 = vpop.xlane.xlu0 %85 }
 0x141   :  { %v80_v24 = vsub.f32 %v76_v22, %v79_v23  ;;  %v87_v26 = vsub.f32 %v606_v4, %v86_v25 }
 0x143   :  { %562 = vrsqrt.f32 %v80_v24 }
 0x144   :  { %v100_v31 = vpop.xlane.xlu1 %99 }
 0x145   :  { %v101_v32 = vsub.f32 %v612_v5, %v100_v31 }
 0x14d   :  { %v563_v27 = vpop.eup %562 }
 0x14e   :  { %v88_v28 = vmul.f32 %v563_v27, %v87_v26  ;;  %v102_v33 = vmul.f32 %v563_v27, %v101_v32  ;;  %v216_v32 = vld [vmem:[#allocation0 + $0x5] ss:$0 sm:$0xff] }
 0x150   :  { %v91_v29 = vsel %vm90_vm3, %v88_v28, 0.0  ;;  %v103_v34 = vsel %vm72_vm1, %v102_v33, 0.0  ;;  %vm264_vm1 = vcmask 1047558  }
 0x151   :  { %v92_v30 = vadd.f32 %v91_v29, %v56_v14  ;;  %v104_v38 = vadd.f32 %v103_v34, %v68_v17  ;;  %v181_v14 = vld [vmem:[#allocation0 + $0x4] ss:$0 sm:$0xff]  ;;  %vm265_vm3 = vmand %vm247_vm0, %vm264_vm1 }
 0x153   :  { %93 = vst [vmem:[#allocation1] sm:$0xff] %v92_v30 }
 0x15a   :  { %v109_v35 = vld [vmem:[#allocation1 + $0x2] ss:$0 sm:$0xff] }
 0x15b   :  { %v119_v36 = vmul.f32 %v109_v35, %v92_v30  ;;  %v112_v37 = vmul.f32 %v109_v35, %v109_v35  ;;  %v133_v39 = vmul.f32 %v109_v35, %v104_v38 }
 0x15d   :  { %120 = vadd.xlane.f32.xlu1 %v119_v36  ;;  %113 = vadd.xlane.f32.xlu0 %v112_v37 }
 0x161   :  { %134 = vadd.xlane.f32.xlu0 %v133_v39 }
 0x1ea   :  { %v114_v41 = vpop.xlane.xlu0 %113  ;;  %v121_v43 = vpop.xlane.xlu1 %120 }
 0x1eb   :  { %v115_v42 = vsub.f32 %v111_v40, %v114_v41  ;;  %v122_v44 = vsub.f32 %v606_v4, %v121_v43 }
 0x1ed   :  { %564 = vrsqrt.f32 %v115_v42 }
 0x1ee   :  { %v135_v49 = vpop.xlane.xlu0 %134 }
 0x1ef   :  { %v136_v50 = vsub.f32 %v612_v5, %v135_v49 }
 0x1f7   :  { %v565_v45 = vpop.eup %564 }
 0x1f8   :  { %v123_v46 = vmul.f32 %v565_v45, %v122_v44  ;;  %v137_v51 = vmul.f32 %v565_v45, %v136_v50  ;;  %v251_v50 = vld [vmem:[#allocation0 + $0x6] ss:$0 sm:$0xff] }
 0x1fa   :  { %v126_v47 = vsel %vm125_vm6, %v123_v46, 0.0  ;;  %v138_v52 = vsel %vm107_vm4, %v137_v51, 0.0  ;;  %vm282_vm4 = vcmask 64568   ;;  %vm317_vm6 = vcmask 72768  }
 0x1fb   :  { %v127_v48 = vadd.f32 %v126_v47, %v92_v30  ;;  %v139_v56 = vadd.f32 %v138_v52, %v104_v38 }
 0x1fd   :  { %128 = vst [vmem:[#allocation1] sm:$0xff] %v127_v48 }
 0x204   :  { %v144_v53 = vld [vmem:[#allocation1 + $0x3] ss:$0 sm:$0xff] }
 0x205   :  { %v154_v54 = vmul.f32 %v144_v53, %v127_v48  ;;  %v147_v55 = vmul.f32 %v144_v53, %v144_v53  ;;  %v168_v57 = vmul.f32 %v144_v53, %v139_v56 }
 0x207   :  { %155 = vadd.xlane.f32.xlu0 %v154_v54  ;;  %148 = vadd.xlane.f32.xlu1 %v147_v55 }
 0x20b   :  { %169 = vadd.xlane.f32.xlu1 %v168_v57 }
 0x294   :  { %v149_v59 = vpop.xlane.xlu1 %148  ;;  %v156_v61 = vpop.xlane.xlu0 %155 }
 0x295   :  { %v150_v60 = vsub.f32 %v146_v58, %v149_v59  ;;  %v157_v62 = vsub.f32 %v606_v4, %v156_v61 }
 0x297   :  { %566 = vrsqrt.f32 %v150_v60 }
 0x298   :  { %v170_v3 = vpop.xlane.xlu1 %169 }
 0x299   :  { %v171_v6 = vsub.f32 %v612_v5, %v170_v3  ;;  %v286_v3 = vld [vmem:[#allocation0 + $0x7] ss:$0 sm:$0xff] }
 0x2a1   :  { %v567_v63 = vpop.eup %566 }
 0x2a2   :  { %v158_v0 = vmul.f32 %v567_v63, %v157_v62  ;;  %v172_v7 = vmul.f32 %v567_v63, %v171_v6 }
 0x2a4   :  { %v161_v1 = vsel %vm160_vm9, %v158_v0, 0.0  ;;  %v173_v8 = vsel %vm142_vm7, %v172_v7, 0.0  ;;  %vm340_vm7 = vcmask 80968  }
 0x2a5   :  { %v162_v2 = vadd.f32 %v161_v1, %v127_v48  ;;  %v174_v12 = vadd.f32 %v173_v8, %v139_v56  ;;  %vm360_vm9 = vmand %vm340_vm7, %vm89_vm2 }
 0x2a7   :  { %163 = vst [vmem:[#allocation1] sm:$0xff] %v162_v2 }
 0x2ae   :  { %v179_v9 = vld [vmem:[#allocation1 + $0x4] ss:$0 sm:$0xff] }
 0x2af   :  { %v189_v10 = vmul.f32 %v179_v9, %v162_v2  ;;  %v182_v11 = vmul.f32 %v179_v9, %v179_v9  ;;  %v203_v13 = vmul.f32 %v179_v9, %v174_v12 }
 0x2b1   :  { %190 = vadd.xlane.f32.xlu1 %v189_v10  ;;  %183 = vadd.xlane.f32.xlu0 %v182_v11 }
 0x2b5   :  { %204 = vadd.xlane.f32.xlu0 %v203_v13 }
 0x33e   :  { %v184_v15 = vpop.xlane.xlu0 %183  ;;  %v191_v17 = vpop.xlane.xlu1 %190 }
 0x33f   :  { %v185_v16 = vsub.f32 %v181_v14, %v184_v15  ;;  %v192_v18 = vsub.f32 %v606_v4, %v191_v17  ;;  %v321_v17 = vld [vmem:[#allocation0 + $0x8] ss:$0 sm:$0xff] }
 0x341   :  { %568 = vrsqrt.f32 %v185_v16 }
 0x342   :  { %v205_v23 = vpop.xlane.xlu0 %204 }
 0x343   :  { %v206_v24 = vsub.f32 %v612_v5, %v205_v23 }
 0x34b   :  { %v569_v19 = vpop.eup %568 }
 0x34c   :  { %v193_v20 = vmul.f32 %v569_v19, %v192_v18  ;;  %v207_v25 = vmul.f32 %v569_v19, %v206_v24 }
 0x34e   :  { %v196_v21 = vsel %vm195_vm12, %v193_v20, 0.0  ;;  %v208_v26 = vsel %vm177_vm10, %v207_v25, 0.0  ;;  %vm365_vm10 = vcmask 89168   ;;  %vm390_vm12 = vcmask 97368  }
 0x34f   :  { %v197_v22 = vadd.f32 %v196_v21, %v162_v2  ;;  %v209_v30 = vadd.f32 %v208_v26, %v174_v12  ;;  %vm385_vm2 = vmand %vm365_vm10, %vm124_vm5 }
 0x350   :  { %vm410_vm5 = vmand %vm390_vm12, %vm159_vm8 }
 0x351   :  { %198 = vst [vmem:[#allocation1] sm:$0xff] %v197_v22 }
 0x358   :  { %v214_v27 = vld [vmem:[#allocation1 + $0x5] ss:$0 sm:$0xff] }
 0x359   :  { %v224_v28 = vmul.f32 %v214_v27, %v197_v22  ;;  %v217_v29 = vmul.f32 %v214_v27, %v214_v27  ;;  %v238_v31 = vmul.f32 %v214_v27, %v209_v30 }
 0x35b   :  { %225 = vadd.xlane.f32.xlu0 %v224_v28  ;;  %218 = vadd.xlane.f32.xlu1 %v217_v29  ;;  %v344_v29 = vld [vmem:[#allocation0 + $0x9] ss:$0 sm:$0xff] }
 0x35f   :  { %239 = vadd.xlane.f32.xlu1 %v238_v31 }
 0x3e8   :  { %v219_v33 = vpop.xlane.xlu1 %218  ;;  %v226_v35 = vpop.xlane.xlu0 %225 }
 0x3e9   :  { %v220_v34 = vsub.f32 %v216_v32, %v219_v33  ;;  %v227_v36 = vsub.f32 %v606_v4, %v226_v35 }
 0x3eb   :  { %570 = vrsqrt.f32 %v220_v34 }
 0x3ec   :  { %v240_v41 = vpop.xlane.xlu1 %239 }
 0x3ed   :  { %v241_v42 = vsub.f32 %v612_v5, %v240_v41  ;;  %v369_v41 = vld [vmem:[#allocation0 + $0xa] ss:$0 sm:$0xff] }
 0x3f5   :  { %v571_v37 = vpop.eup %570 }
 0x3f6   :  { %v228_v38 = vmul.f32 %v571_v37, %v227_v36  ;;  %v242_v43 = vmul.f32 %v571_v37, %v241_v42 }
 0x3f8   :  { %v231_v39 = vsel %vm230_vm15, %v228_v38, 0.0  ;;  %v243_v44 = vsel %vm212_vm13, %v242_v43, 0.0  ;;  %vm415_vm13 = vcmask 105568   ;;  %vm440_vm15 = vcmask 113768  }
 0x3f9   :  { %v232_v40 = vadd.f32 %v231_v39, %v197_v22  ;;  %v244_v48 = vadd.f32 %v243_v44, %v209_v30  ;;  %vm435_vm8 = vmand %vm415_vm13, %vm194_vm11 }
 0x3fa   :  { %vm460_vm11 = vmand %vm440_vm15, %vm229_vm14 }
 0x3fb   :  { %233 = vst [vmem:[#allocation1] sm:$0xff] %v232_v40 }
 0x402   :  { %v249_v45 = vld [vmem:[#allocation1 + $0x6] ss:$0 sm:$0xff] }
 0x403   :  { %v259_v46 = vmul.f32 %v249_v45, %v232_v40  ;;  %v252_v47 = vmul.f32 %v249_v45, %v249_v45  ;;  %v273_v49 = vmul.f32 %v249_v45, %v244_v48 }
 0x405   :  { %260 = vadd.xlane.f32.xlu1 %v259_v46  ;;  %253 = vadd.xlane.f32.xlu0 %v252_v47 }
 0x409   :  { %274 = vadd.xlane.f32.xlu0 %v273_v49 }
 0x492   :  { %v254_v51 = vpop.xlane.xlu0 %253  ;;  %v261_v53 = vpop.xlane.xlu1 %260 }
 0x493   :  { %v255_v52 = vsub.f32 %v251_v50, %v254_v51  ;;  %v262_v54 = vsub.f32 %v606_v4, %v261_v53  ;;  %v394_v53 = vld [vmem:[#allocation0 + $0xb] ss:$0 sm:$0xff] }
 0x495   :  { %572 = vrsqrt.f32 %v255_v52 }
 0x496   :  { %v275_v56 = vpop.xlane.xlu0 %274 }
 0x497   :  { %v276_v59 = vsub.f32 %v612_v5, %v275_v56 }
 0x49f   :  { %v573_v55 = vpop.eup %572 }
 0x4a0   :  { %v263_v57 = vmul.f32 %v573_v55, %v262_v54  ;;  %v277_v61 = vmul.f32 %v573_v55, %v276_v59 }
 0x4a2   :  { %v266_v58 = vsel %vm265_vm3, %v263_v57, 0.0  ;;  %v278_v62 = vsel %vm247_vm0, %v277_v61, 0.0  ;;  %vm299_vm0 = vcmask 1047559   ;;  %vm465_vm3 = vcmask 121968  }
 0x4a3   :  { %v635_v60 = vadd.f32 %v266_v58, %v232_v40  ;;  %v279_v63 = vadd.f32 %v278_v62, %v244_v48  ;;  %vm300_vm14 = vmand %vm282_vm4, %vm299_vm0 }
 0x4a5   :  { %268 = vst [vmem:[#allocation1] sm:$0xff] %v635_v60 }
 0x4ac   :  { %v638_v0 = vld [vmem:[#allocation1 + $0x7] ss:$0 sm:$0xff] }
 0x4ad   :  { %v308_v1 = vmul.f32 %v638_v0, %v279_v63  ;;  %v287_v2 = vmul.f32 %v638_v0, %v638_v0 }
 0x4af   :  { %309 = vadd.xlane.f32.xlu0 %v308_v1  ;;  %288 = vadd.xlane.f32.xlu1 %v287_v2 }
 0x53c   :  { %v289_v6 = vpop.xlane.xlu1 %288  ;;  %v310_v8 = vpop.xlane.xlu0 %309 }
 0x53d   :  { %v290_v7 = vsub.f32 %v286_v3, %v289_v6  ;;  %v311_v9 = vsub.f32 %v612_v5, %v310_v8  ;;  %v419_v3 = vld [vmem:[#allocation0 + $0xc] ss:$0 sm:$0xff] }
 0x53f   :  { %574 = vrsqrt.f32 %v290_v7 }
 0x549   :  { %v644_v10 = vpop.eup %574 }
 0x54a   :  { %v312_v11 = vmul.f32 %v644_v10, %v311_v9 }
 0x54c   :  { %v313_v12 = vsel %vm282_vm4, %v312_v11, 0.0  ;;  %vm490_vm4 = vcmask 130168  }
 0x54d   :  { %v314_v13 = vadd.f32 %v313_v12, %v279_v63 }
 0x54f   :  { %316 = vst [vmem:[#allocation1 + $0x8] sm:$0xff] %v314_v13 }
 0x556   :  { %v319_v14 = vld [vmem:[#allocation1 + $0x8] ss:$0 sm:$0xff] }
 0x557   :  { %v331_v15 = vmul.f32 %v319_v14, %v314_v13  ;;  %v322_v16 = vmul.f32 %v319_v14, %v319_v14 }
 0x559   :  { %332 = vadd.xlane.f32.xlu0 %v331_v15  ;;  %323 = vadd.xlane.f32.xlu1 %v322_v16 }
 0x5e6   :  { %v324_v18 = vpop.xlane.xlu1 %323  ;;  %v333_v20 = vpop.xlane.xlu0 %332 }
 0x5e7   :  { %v325_v19 = vsub.f32 %v321_v17, %v324_v18  ;;  %v334_v21 = vsub.f32 %v612_v5, %v333_v20  ;;  %v444_v18 = vld [vmem:[#allocation0 + $0xd] ss:$0 sm:$0xff] }
 0x5e9   :  { %576 = vrsqrt.f32 %v325_v19 }
 0x5f3   :  { %v577_v22 = vpop.eup %576 }
 0x5f4   :  { %v335_v23 = vmul.f32 %v577_v22, %v334_v21 }
 0x5f6   :  { %v336_v24 = vsel %vm317_vm6, %v335_v23, 0.0  ;;  %vm485_vm6 = vmand %vm465_vm3, %vm264_vm1 }
 0x5f7   :  { %v337_v25 = vadd.f32 %v336_v24, %v314_v13  ;;  %vm510_vm1 = vmand %vm490_vm4, %vm299_vm0 }
 0x5f9   :  { %339 = vst [vmem:[#allocation1 + $0x8] sm:$0xff] %v337_v25 }
 0x600   :  { %v342_v26 = vld [vmem:[#allocation1 + $0x9] ss:$0 sm:$0xff] }
 0x601   :  { %v354_v27 = vmul.f32 %v342_v26, %v337_v25  ;;  %v345_v28 = vmul.f32 %v342_v26, %v342_v26 }
 0x603   :  { %355 = vadd.xlane.f32.xlu0 %v354_v27  ;;  %346 = vadd.xlane.f32.xlu1 %v345_v28 }
 0x690   :  { %v347_v30 = vpop.xlane.xlu1 %346  ;;  %v356_v32 = vpop.xlane.xlu0 %355 }
 0x691   :  { %v348_v31 = vsub.f32 %v344_v29, %v347_v30  ;;  %v357_v33 = vsub.f32 %v612_v5, %v356_v32  ;;  %v294_v30 = vmul.f32 %v638_v0, %v635_v60 }
 0x693   :  { %578 = vrsqrt.f32 %v348_v31  ;;  %v469_v31 = vld [vmem:[#allocation0 + $0xe] ss:$0 sm:$0xff] }
 0x69d   :  { %v579_v34 = vpop.eup %578 }
 0x69e   :  { %v358_v35 = vmul.f32 %v579_v34, %v357_v33 }
 0x6a0   :  { %v361_v36 = vsel %vm360_vm9, %v358_v35, 0.0 }
 0x6a1   :  { %v362_v37 = vadd.f32 %v361_v36, %v337_v25 }
 0x6a3   :  { %364 = vst [vmem:[#allocation1 + $0x8] sm:$0xff] %v362_v37 }
 0x6aa   :  { %v367_v38 = vld [vmem:[#allocation1 + $0xa] ss:$0 sm:$0xff] }
 0x6ab   :  { %v379_v39 = vmul.f32 %v367_v38, %v362_v37  ;;  %v370_v40 = vmul.f32 %v367_v38, %v367_v38 }
 0x6ad   :  { %380 = vadd.xlane.f32.xlu0 %v379_v39  ;;  %371 = vadd.xlane.f32.xlu1 %v370_v40 }
 0x73a   :  { %v372_v42 = vpop.xlane.xlu1 %371  ;;  %v381_v44 = vpop.xlane.xlu0 %380 }
 0x73b   :  { %v373_v43 = vsub.f32 %v369_v41, %v372_v42  ;;  %v382_v45 = vsub.f32 %v612_v5, %v381_v44 }
 0x73d   :  { %580 = vrsqrt.f32 %v373_v43 }
 0x747   :  { %v581_v46 = vpop.eup %580 }
 0x748   :  { %v383_v47 = vmul.f32 %v581_v46, %v382_v45 }
 0x74a   :  { %v386_v48 = vsel %vm385_vm2, %v383_v47, 0.0 }
 0x74b   :  { %v387_v49 = vadd.f32 %v386_v48, %v362_v37 }
 0x74d   :  { %389 = vst [vmem:[#allocation1 + $0x8] sm:$0xff] %v387_v49 }
 0x754   :  { %v392_v50 = vld [vmem:[#allocation1 + $0xb] ss:$0 sm:$0xff] }
 0x755   :  { %v404_v51 = vmul.f32 %v392_v50, %v387_v49  ;;  %v395_v52 = vmul.f32 %v392_v50, %v392_v50 }
 0x757   :  { %405 = vadd.xlane.f32.xlu0 %v404_v51  ;;  %396 = vadd.xlane.f32.xlu1 %v395_v52 }
 0x7e4   :  { %v397_v54 = vpop.xlane.xlu1 %396  ;;  %v406_v56 = vpop.xlane.xlu0 %405 }
 0x7e5   :  { %v398_v55 = vsub.f32 %v394_v53, %v397_v54  ;;  %v407_v57 = vsub.f32 %v612_v5, %v406_v56 }
 0x7e7   :  { %582 = vrsqrt.f32 %v398_v55 }
 0x7f1   :  { %v583_v58 = vpop.eup %582 }
 0x7f2   :  { %v408_v59 = vmul.f32 %v583_v58, %v407_v57 }
 0x7f4   :  { %v411_v61 = vsel %vm410_vm5, %v408_v59, 0.0 }
 0x7f5   :  { %v412_v62 = vadd.f32 %v411_v61, %v387_v49 }
 0x7f7   :  { %414 = vst [vmem:[#allocation1 + $0x8] sm:$0xff] %v412_v62 }
 0x7fe   :  { %v417_v63 = vld [vmem:[#allocation1 + $0xc] ss:$0 sm:$0xff] }
 0x7ff   :  { %v429_v1 = vmul.f32 %v417_v63, %v412_v62  ;;  %v420_v2 = vmul.f32 %v417_v63, %v417_v63 }
 0x801   :  { %430 = vadd.xlane.f32.xlu0 %v429_v1  ;;  %421 = vadd.xlane.f32.xlu1 %v420_v2 }
 0x88e   :  { %v422_v6 = vpop.xlane.xlu1 %421  ;;  %v431_v8 = vpop.xlane.xlu0 %430 }
 0x88f   :  { %v423_v7 = vsub.f32 %v419_v3, %v422_v6  ;;  %v432_v9 = vsub.f32 %v612_v5, %v431_v8 }
 0x891   :  { %584 = vrsqrt.f32 %v423_v7 }
 0x89b   :  { %v585_v11 = vpop.eup %584 }
 0x89c   :  { %v433_v12 = vmul.f32 %v585_v11, %v432_v9 }
 0x89e   :  { %v436_v13 = vsel %vm435_vm8, %v433_v12, 0.0 }
 0x89f   :  { %v437_v14 = vadd.f32 %v436_v13, %v412_v62 }
 0x8a1   :  { %439 = vst [vmem:[#allocation1 + $0x8] sm:$0xff] %v437_v14 }
 0x8a8   :  { %v442_v15 = vld [vmem:[#allocation1 + $0xd] ss:$0 sm:$0xff] }
 0x8a9   :  { %v454_v16 = vmul.f32 %v442_v15, %v437_v14  ;;  %v445_v17 = vmul.f32 %v442_v15, %v442_v15 }
 0x8ab   :  { %455 = vadd.xlane.f32.xlu0 %v454_v16  ;;  %446 = vadd.xlane.f32.xlu1 %v445_v17 }
 0x938   :  { %v447_v19 = vpop.xlane.xlu1 %446  ;;  %v456_v21 = vpop.xlane.xlu0 %455 }
 0x939   :  { %v448_v20 = vsub.f32 %v444_v18, %v447_v19  ;;  %v457_v22 = vsub.f32 %v612_v5, %v456_v21 }
 0x93b   :  { %586 = vrsqrt.f32 %v448_v20 }
 0x945   :  { %v587_v23 = vpop.eup %586 }
 0x946   :  { %v458_v24 = vmul.f32 %v587_v23, %v457_v22 }
 0x948   :  { %v461_v25 = vsel %vm460_vm11, %v458_v24, 0.0 }
 0x949   :  { %v462_v26 = vadd.f32 %v461_v25, %v437_v14 }
 0x94b   :  { %464 = vst [vmem:[#allocation1 + $0x8] sm:$0xff] %v462_v26 }
 0x952   :  { %v467_v27 = vld [vmem:[#allocation1 + $0xe] ss:$0 sm:$0xff] }
 0x953   :  { %v479_v28 = vmul.f32 %v467_v27, %v462_v26  ;;  %v470_v29 = vmul.f32 %v467_v27, %v467_v27 }
 0x955   :  { %480 = vadd.xlane.f32.xlu0 %v479_v28  ;;  %471 = vadd.xlane.f32.xlu1 %v470_v29 }
 0x959   :  { %295 = vadd.xlane.f32.xlu0 %v294_v30 }
 0x9e2   :  { %v481_v32 = vpop.xlane.xlu0 %480  ;;  %v472_v33 = vpop.xlane.xlu1 %471 }
 0x9e3   :  { %v473_v34 = vsub.f32 %v469_v31, %v472_v33  ;;  %v482_v0 = vsub.f32 %v612_v5, %v481_v32 }
 0x9e5   :  { %588 = vrsqrt.f32 %v473_v34 }
 0x9e6   :  { %v296_v35 = vpop.xlane.xlu0 %295 }
 0x9e7   :  { %v297_v36 = vsub.f32 %v606_v4, %v296_v35 }
 0x9e9   :  { %v298_v37 = vmul.f32 %v644_v10, %v297_v36 }
 0x9eb   :  { %v301_v38 = vsel %vm300_vm14, %v298_v37, 0.0 }
 0x9ec   :  { %v302_v39 = vadd.f32 %v301_v38, %v635_v60  ;;  %v494_v60 = vld [vmem:[#allocation0 + $0xf] ss:$0 sm:$0xff] }
 0x9ee   :  { %303 = vst [vmem:[#allocation1] sm:$0xff] %v302_v39  ;;  %545 = vst [vmem:[%s677_s1] sm:$0xff] %v302_v39 }
 0x9ef   :  { %v589_v40 = vpop.eup %588 }
 0x9f0   :  { %v483_v4 = vmul.f32 %v589_v40, %v482_v0 }
 0x9f2   :  { %v486_v41 = vsel %vm485_vm6, %v483_v4, 0.0 }
 0x9f3   :  { %v487_v42 = vadd.f32 %v486_v41, %v462_v26 }
 0x9f5   :  { %489 = vst [vmem:[#allocation1 + $0x8] sm:$0xff] %v487_v42 }
 0x9fc   :  { %v492_v43 = vld [vmem:[#allocation1 + $0xf] ss:$0 sm:$0xff] }
 0x9fd   :  { %v495_v10 = vmul.f32 %v492_v43, %v492_v43  ;;  %v504_v44 = vmul.f32 %v492_v43, %v487_v42 }
 0x9ff   :  { %496 = vadd.xlane.f32.xlu1 %v495_v10 }
 0xa03   :  { %505 = vadd.xlane.f32.xlu1 %v504_v44 }
 0xa8c   :  { %v497_v45 = vpop.xlane.xlu1 %496 }
 0xa8d   :  { %v498_v46 = vsub.f32 %v494_v60, %v497_v45 }
 0xa8f   :  { %590 = vrsqrt.f32 %v498_v46 }
 0xa90   :  { %v506_v47 = vpop.xlane.xlu1 %505 }
 0xa91   :  { %v507_v48 = vsub.f32 %v612_v5, %v506_v47 }
 0xa99   :  { %v591_v49 = vpop.eup %590 }
 0xa9a   :  { %v508_v50 = vmul.f32 %v591_v49, %v507_v48 }
 0xa9c   :  { %v511_v51 = vsel %vm510_vm1, %v508_v50, 0.0 }
 0xa9d   :  { %v512_v52 = vadd.f32 %v511_v51, %v487_v42 }
 0xa9f   :  { %514 = vst [vmem:[#allocation1 + $0x8] sm:$0xff] %v512_v52  ;;  %547 = vst [vmem:[%s677_s1 + $0x8] sm:$0xff] %v512_v52 }

// kernel: custom-call.27
= control target key start
LH: loop header
LB: loop body
LE: loop exit
PB: predicated region body
PF: predicated region fallthrough
CT: control target
= control target key end

     0   :  { %s920_s0 = inlined_call_operand.vmem [shape: f32[16,16], index: 0, kind: input, shape index: {}]   ;;  %s921_s1 = inlined_call_operand.vmem [shape: f32[16,16], index: 1, kind: output, shape index: {0}]   ;;  %s922_s2 = inlined_call_operand.vmem [shape: s32[16], index: 2, kind: output, shape index: {1}]   ;;  %s923_s3 = inlined_call_operand.vmem [shape: s32[16], index: 3, kind: output, shape index: {2}]  }
   0x1   :  { %s18_s14 = scalar_lea.vmem %s920_s0, 8 }
   0x2   :  { %p509_p0 = scmp.gt.s32.totalorder %s920_s0, %s18_s14 }
   0x3   :  { %s800_s17 = smov (!%p509_p0), [#allocation0]   ;;  %s804_s20 = smov (!%p509_p0), %s920_s0  }
   0x4   :  { %510 = sbr.rel (%p509_p0) target bundleno = 21 (0x15), region = 186 }
   0xb LB: > { %v52_v0 = vld [vmem:[%s806_s20] sm:$0xff]  ;;  %s54_s20 = scalar_lea.vmem %s806_s20, 8   ;;  %s806_s20 = sphi %s804_s20, %s54_s20   ;;  %s802_s17 = sphi %s800_s17, %s55_s17  }
   0xc   : > { %53 = vst [vmem:[%s802_s17] sm:$0xff] %v52_v0  ;;  %s55_s17 = scalar_lea.vmem %s802_s17, 8   ;;  %p49_p1 = scmp.gt.s32.totalorder %s54_s20, %s18_s14 }
   0xe   :  { %51 = sbr.rel (!%p49_p1) target bundleno = 11 (0xb), region = 192 }
  0x15 PF:  { %v67_v1 = vld [vmem:[#allocation0] sm:$0xff]  ;;  %v71_v2 = vld [vmem:[#allocation0 + $0x8] sm:$0xff]  ;;  %v74_v3 = vlaneseq  ;;  %v824_v4 = vmov 0   ;;  %s808_s0 = smov 0  }
  0x16   :  { %68 = vst [vmem:[#allocation1] sm:$0xff] %v67_v1  ;;  %72 = vst [vmem:[#allocation1 + $0x8] sm:$0xff] %v71_v2 }
  0x17   :  { %73 = vst [vmem:[#allocation2] sm:$0x1] %v824_v4  ;;  %v855_v5 = vshrl.u32 %v74_v3, 7 }
  0x18 LB: > { %s587_s21 = sshll.u32 %s810_s0, 3  ;;  %s82_s0 = sadd.s32 1, %s810_s0   ;;  %s810_s0 = sphi %s808_s0, %s82_s0  }
  0x19   : > { %v86_v6 = vstv %s587_s21  ;;  %s84_s22 = scalar_lea.vmem [#allocation6], %s587_s21  ;;  %p79_p2 = scmp.ge.s32.totalorder %s82_s0, 2  }
  0x1a   : > { %v87_v7 = vadd.s32 %v86_v6, %v855_v5  ;;  %s858_s23 = smov (%p79_p2), 0  }
  0x1b   :  { %81 = sbr.rel (!%p79_p2) target bundleno = 24 (0x18), region = 203 }
  0x1c   : > { %88 = vst [vmem:[%s84_s22] sm:$0xff] %v87_v7 }
  0x22 LB: > { %v99_v8 = vld [vmem:[#allocation1] sm:$0xff]  ;;  %v111_v9 = vld [vmem:[#allocation1 + $0x8] sm:$0xff]  ;;  %v864_v10 = vadd.s32 8, %v855_v5  ;;  %v867_v12 = vstv %s814_s23  ;;  %s157_s24 = ssub.s32 128, %s814_s23  ;;  %v163_v45 = vand.u32 127, %v74_v3  ;;  %s169_s25 = scalar_lea.vmem [#allocation1], %s814_s23  ;;  %s814_s23 = sphi %s858_s23, %s94_s23  }
  0x23   : > { %v100_v11 = vand.u32 2147483647, %v99_v8  ;;  %v112_v13 = vand.u32 2147483647, %v111_v9  ;;  %vm103_vm0 = vcmp.ge.s32.totalorder %v855_v5, %v867_v12  ;;  %v166_v48 = vld [vmem:[#allocation2] ss:$0 sm:$0xff] }
  0x24   : > { %vm115_vm3 = vcmp.ge.s32.totalorder %v864_v10, %v867_v12  ;;  %vm187_vm13 = vcmp.gt.s32.totalorder %v163_v45, %v867_v12  ;;  %vm210_vm14 = vcmp.gt.s32.totalorder %v864_v10, %v867_v12  ;;  %vm164_vm15 = vcmp.eq.s32.totalorder %v163_v45, %v867_v12  ;;  %v171_v49 = vld [vmem:[%s169_s25] ss:$0 sm:$0xff]  ;;  %s175_s27 = scalar_lea.vmem [#allocation6], %s814_s23  ;;  %s94_s23 = sadd.s32 1, %s814_s23  }
  0x25   : > { %vm589_vm1 = vcmp.gt.f32.partialorder %v100_v11, -inf  ;;  %v177_v50 = vld [vmem:[%s175_s27] ss:$0 sm:$0xff]  ;;  %p91_p3 = scmp.ge.s32.totalorder %s94_s23, 16  }
  0x26   : > { %vm107_vm2 = vmand %vm103_vm0, %vm589_vm1  ;;  %s816_s5 = smov (%p91_p3), %s921_s1   ;;  %s820_s6 = smov (%p91_p3), [#allocation1]  }
  0x27   : > { %v108_v14 = vsel %vm107_vm2, %v855_v5, %v867_v12  ;;  %v109_v15 = vsel %vm107_vm2, %v100_v11, -inf  ;;  %vm887_vm0 = vmand %vm210_vm14, %vm164_vm15  ;;  %vm195_vm2 = vcmp.gt.s32.totalorder %v855_v5, %v867_v12 }
  0x28   : > { %vm118_vm4 = vcmp.lt.f32.partialorder %v109_v15, %v112_v13 }
  0x29   : > { %vm119_vm5 = vmand %vm115_vm3, %vm118_vm4 }
  0x2a   : > { %v120_v16 = vsel %vm119_vm5, %v864_v10, %v108_v14  ;;  %v121_v17 = vsel %vm119_vm5, %v112_v13, %v109_v15  ;;  %vm199_vm4 = vmand %vm195_vm2, %vm164_vm15 }
  0x2b   : > { %v122_v18 = vrot.slane %v121_v17, 1  ;;  %v123_v19 = vrot.slane %v120_v16, 1 }
  0x2d   : > { %vm124_vm6 = vcmp.ge.f32.partialorder %v122_v18, %v121_v17  ;;  %v127_v20 = vrot.slane %v122_v18, 1  ;;  %v128_v21 = vrot.slane %v123_v19, 1 }
  0x2e   : > { %v125_v22 = vsel %vm124_vm6, %v122_v18, %v121_v17  ;;  %v126_v23 = vsel %vm124_vm6, %v123_v19, %v120_v16 }
  0x2f   : > { %vm129_vm7 = vcmp.ge.f32.partialorder %v127_v20, %v125_v22  ;;  %v132_v24 = vrot.slane %v127_v20, 1  ;;  %v133_v25 = vrot.slane %v128_v21, 1 }
  0x30   : > { %v130_v26 = vsel %vm129_vm7, %v127_v20, %v125_v22  ;;  %v131_v27 = vsel %vm129_vm7, %v128_v21, %v126_v23 }
  0x31   : > { %vm134_vm8 = vcmp.ge.f32.partialorder %v132_v24, %v130_v26  ;;  %v137_v28 = vrot.slane %v132_v24, 1  ;;  %v138_v29 = vrot.slane %v133_v25, 1 }
  0x32   : > { %v135_v30 = vsel %vm134_vm8, %v132_v24, %v130_v26  ;;  %v136_v31 = vsel %vm134_vm8, %v133_v25, %v131_v27 }
  0x33   : > { %vm139_vm9 = vcmp.ge.f32.partialorder %v137_v28, %v135_v30  ;;  %v142_v32 = vrot.slane %v137_v28, 1  ;;  %v143_v33 = vrot.slane %v138_v29, 1 }
  0x34   : > { %v140_v34 = vsel %vm139_vm9, %v137_v28, %v135_v30  ;;  %v141_v35 = vsel %vm139_vm9, %v138_v29, %v136_v31 }
  0x35   : > { %vm144_vm10 = vcmp.ge.f32.partialorder %v142_v32, %v140_v34  ;;  %v147_v36 = vrot.slane %v142_v32, 1  ;;  %v148_v37 = vrot.slane %v143_v33, 1 }
  0x36   : > { %v145_v38 = vsel %vm144_vm10, %v142_v32, %v140_v34  ;;  %v146_v39 = vsel %vm144_vm10, %v143_v33, %v141_v35 }
  0x37   : > { %vm149_vm11 = vcmp.ge.f32.partialorder %v147_v36, %v145_v38  ;;  %v152_v40 = vrot.slane %v147_v36, 1  ;;  %v153_v41 = vrot.slane %v148_v37, 1 }
  0x38   : > { %v150_v42 = vsel %vm149_vm11, %v147_v36, %v145_v38  ;;  %v151_v43 = vsel %vm149_vm11, %v148_v37, %v146_v39 }
  0x39   : > { %vm154_vm12 = vcmp.ge.f32.partialorder %v152_v40, %v150_v42 }
  0x3a   : > { %v156_v44 = vsel %vm154_vm12, %v153_v41, %v151_v43 }
  0x3b   : > { %158 = vrot.lane.b32.xlu0 %v156_v44, %s157_s24 }
  0xad   : > { %v159_v47 = vpop.permute.xlu0 %158 }
  0xae   : > { %600 = vpush %v159_v47 }
  0xdf   : > { %s601_s26 = spop %600 }
  0xe0   : > { %v165_v51 = vstv %s601_s26  ;;  %s170_s28 = scalar_lea.vmem [#allocation1], %s601_s26  ;;  %s176_s29 = scalar_lea.vmem [#allocation6], %s601_s26 }
  0xe1   : > { %v167_v52 = vsel %vm164_vm15, %v165_v51, %v166_v48  ;;  %v172_v53 = vld [vmem:[%s170_s28] ss:$0 sm:$0xff] }
  0xe2   : > { %v178_v54 = vld [vmem:[%s176_s29] ss:$0 sm:$0xff]  ;;  %168 = vst [vmem:[#allocation2] sm:$0x1] %v167_v52  ;;  %173 = vst [vmem:[%s170_s28] sm:$0x1] %v171_v49  ;;  %vm181_vm1 = vcmp.ne.f32.partialorder %v172_v53, 0.0 }
  0xe3   : > { %179 = vst [vmem:[%s176_s29] sm:$0x1] %v177_v50  ;;  %174 = vst [vmem:[%s169_s25] sm:$0x1] %v172_v53  ;;  %v188_v2 = vsel %vm187_vm13, %v172_v53, 0.0 }
  0xe4   : > { %180 = vst [vmem:[%s175_s27] sm:$0x1] %v178_v54  ;;  %vm182_vm3 = vmand %vm164_vm15, %vm181_vm1 }
  0xe5   : > { %v183_v55 = vsel %vm182_vm3, %v172_v53, 1.0 }
  0xe6   : > { %v211_v56 = vsel %vm210_vm14, %v183_v55, 1.0  ;;  %v196_v57 = vsel %vm195_vm2, %v183_v55, 1.0 }
  0xe7   : > { %732 = vrcp.f32 %v211_v56 }
  0xe8   : > { %734 = vrcp.f32 %v196_v57 }
  0xe9   :  { %v274_v12 = vld [vmem:[#allocation2] sm:$0x1] (%p91_p3) }
  0xea   : > { %v207_v59 = vld [vmem:[#allocation1 + $0x8] sm:$0xff]  ;;  %v192_v62 = vld [vmem:[#allocation1] sm:$0xff]  ;;  %276 = vst [vmem:[#allocation3] sm:$0x1] (%p91_p3), %v274_v12 }
  0xeb   :  { %v221_v11 = vld [vmem:[#allocation6] sm:$0xff] (%p91_p3)  ;;  %v223_v13 = vld [vmem:[#allocation6 + $0x8] sm:$0xff] (%p91_p3) }
  0xf1   : > { %v733_v58 = vpop.eup %732 }
  0xf2   : > { %v735_v60 = vpop.eup %734  ;;  %v213_v61 = vmul.f32 %v733_v58, %v207_v59 }
  0xf3   : > { %v198_v63 = vmul.f32 %v735_v60, %v192_v62 }
  0xf4   : > { %v215_v0 = vsel %vm887_vm0, %v213_v61, 0.0 }
  0xf5   : > { %216 = vadd.xlane.f32.xlu1 %v215_v0  ;;  %v200_v1 = vsel %vm199_vm4, %v198_v63, 0.0 }
  0xf6   : > { %201 = vadd.xlane.f32.xlu0 %v200_v1 }
 0x123   :  { %238 = vxpose.xlu0.b32.start [1/2] (short) (narrow) (%p91_p3), %v221_v11, 8 }
 0x127   :  { %239 = vxpose.xlu0.b32.end [2/2] (short) (narrow) (%p91_p3), %v223_v13, 8 }
 0x182   : > { %v217_v4 = vpop.xlane.xlu1 %216  ;;  %93 = sbr.rel (!%p91_p3) target bundleno = 34 (0x22), region = 214 }
 0x183   : > { %v218_v6 = vmul.f32 %v217_v4, %v188_v2  ;;  %v202_v7 = vpop.xlane.xlu0 %201 }
 0x184   : > { %v203_v8 = vmul.f32 %v202_v7, %v188_v2 }
 0x185   : > { %v219_v9 = vsub.f32 %v213_v61, %v218_v6 }
 0x186   : > { %v204_v10 = vsub.f32 %v198_v63, %v203_v8 }
 0x187   : > { %220 = vst [vmem:[#allocation1 + $0x8] sm:$0xff] %v219_v9 }
 0x188   : > { %205 = vst [vmem:[#allocation1] sm:$0xff] %v204_v10 }
 0x1a3   :  { %v254_v14 = vpop.trf.xlu0 }
 0x1a4   :  { %270 = vst [vmem:[#allocation4] sm:$0x1] %v254_v14 }
 0x1ab   :  { %v280_v15 = vld [vmem:[#allocation4] sm:$0x1] }
 0x1ac   :  { %282 = vst [vmem:[#allocation5] sm:$0x1] %v280_v15 }
 0x1ad LB: > { %v330_v16 = vld [vmem:[%s822_s6] sm:$0xff]  ;;  %s332_s6 = scalar_lea.vmem %s822_s6, 8   ;;  %s822_s6 = sphi %s820_s6, %s332_s6   ;;  %s818_s5 = sphi %s816_s5, %s333_s5  }
 0x1ae   : > { %331 = vst [vmem:[%s818_s5] sm:$0xff] %v330_v16  ;;  %s333_s5 = scalar_lea.vmem %s818_s5, 8   ;;  %p327_p4 = scmp.gt.s32.totalorder %s332_s6, [#allocation1 + $0x8] }
 0x1af   :  { %v407_v3 = vld [vmem:[#allocation3] sm:$0x1] (%p327_p4) }
 0x1b0   :  { %329 = sbr.rel (!%p327_p4) target bundleno = 429 (0x1ad), region = 236  ;;  %408 = vst [vmem:[%s922_s2] sm:$0x1] (%p327_p4), %v407_v3 }
 0x1b3   :  { %v471_v5 = vld [vmem:[#allocation5] sm:$0x1] (%p327_p4) }
 0x1b4   :  { %472 = vst [vmem:[%s923_s3] sm:$0x1] (%p327_p4), %v471_v5 }

// kernel: custom-call.21
= control target key start
LH: loop header
LB: loop body
LE: loop exit
PB: predicated region body
PF: predicated region fallthrough
CT: control target
= control target key end

     0   :  { %v38_v0 = vlaneseq  ;;  %v332_v9 = vmov -1.0   ;;  %v333_v53 = vmov 0.0   ;;  %s401_s0 = inlined_call_operand.vmem [shape: f32[1,16,16], index: 0, kind: input, shape index: {}]   ;;  %s402_s1 = inlined_call_operand.vmem [shape: f32[1,16,16], index: 1, kind: output, shape index: {}]  }
   0x1   :  { %v31_v1 = vld [vmem:[%s401_s0] sm:$0xff]  ;;  %v33_v36 = vld [vmem:[%s401_s0 + $0x8] sm:$0xff] }
   0x2   :  { %v347_v2 = vand.u32 127, %v38_v0  ;;  %v42_v3 = vshrl.u32 %v38_v0, 7 }
   0x4   :  { %vm44_vm0 = vcmp.eq.s32.totalorder %v42_v3, %v347_v2  ;;  %vm40_vm1 = vcmp.lt.s32.totalorder %v347_v2, 16  ;;  %vm49_vm2 = vcmp.ge.s32.totalorder %v42_v3, %v347_v2  ;;  %vm79_vm4 = vcmp.eq.s32.totalorder %v347_v2, 0 }
   0x5   :  { %v46_v4 = vsel %vm44_vm0, %v31_v1, 0.0  ;;  %vm50_vm3 = vmand %vm49_vm2, %vm40_vm1  ;;  %vm76_vm5 = vcmp.eq.s32.totalorder %v347_v2, %v42_v3  ;;  %v80_v10 = vsel %vm79_vm4, 1.0, %v332_v9  ;;  %vm94_vm6 = vcmp.eq.s32.totalorder %v347_v2, 1 }
   0x6   :  { %47 = vadd.xlane.f32.xlu0 %v46_v4  ;;  %v51_v6 = vsel %vm50_vm3, %v31_v1, 0.0  ;;  %v81_v11 = vsel %vm76_vm5, %v80_v10, 0.0  ;;  %vm104_vm7 = vcmp.eq.s32.totalorder %v347_v2, 2  ;;  %vm114_vm8 = vcmp.eq.s32.totalorder %v347_v2, 3 }
   0x7   :  { %vm124_vm9 = vcmp.eq.s32.totalorder %v347_v2, 4  ;;  %v59_v31 = vadd.s32 8, %v42_v3  ;;  %vm134_vm11 = vcmp.eq.s32.totalorder %v347_v2, 5  ;;  %vm144_vm14 = vcmp.eq.s32.totalorder %v347_v2, 6 }
   0x8   :  { %vm154_vm0 = vcmp.eq.s32.totalorder %v347_v2, 7  ;;  %vm178_vm2 = vcmp.eq.s32.totalorder %v347_v2, 9  ;;  %vm192_vm3 = vcmp.eq.s32.totalorder %v347_v2, 10  ;;  %vm206_vm4 = vcmp.eq.s32.totalorder %v347_v2, 11 }
   0x9   :  { %vm60_vm10 = vcmp.eq.s32.totalorder %v59_v31, %v347_v2  ;;  %vm65_vm12 = vcmp.ge.s32.totalorder %v59_v31, %v347_v2  ;;  %vm87_vm15 = vcmp.eq.s32.totalorder %v347_v2, %v59_v31  ;;  %vm220_vm5 = vcmp.eq.s32.totalorder %v347_v2, 12 }
   0xa   :  { %v62_v37 = vsel %vm60_vm10, %v33_v36, 0.0  ;;  %vm66_vm13 = vmand %vm65_vm12, %vm40_vm1  ;;  %v88_v54 = vsel %vm87_vm15, -1.0, %v333_v53  ;;  %vm164_vm1 = vcmp.eq.s32.totalorder %v347_v2, 8 }
   0xb   :  { %v67_v44 = vsel %vm66_vm13, %v33_v36, 0.0 }
  0x93   :  { %v350_v5 = vpop.xlane.xlu0 %47 }
  0x94   :  { %328 = vrcp.f32 %v350_v5  ;;  %vm273_vm10 = vweird.f32 %v350_v5 }
  0x9e   :  { %v357_v7 = vpop.eup %328 }
  0x9f   :  { %v53_v8 = vmul.f32 %v357_v7, %v51_v6 }
  0xa1   :  { %54 = vst [vmem:[#allocation2] sm:$0xff] %v53_v8 }
  0xa8   :  { %v90_v12 = vld [vmem:[#allocation2 + $0x1] ss:$0 sm:$0xff]  ;;  %v100_v15 = vld [vmem:[#allocation2 + $0x2] ss:$0 sm:$0xff]  ;;  %v110_v20 = vld [vmem:[#allocation2 + $0x3] ss:$0 sm:$0xff] }
  0xa9   :  { %v91_v13 = vxor.u32 2147483648, %v90_v12  ;;  %v101_v17 = vxor.u32 2147483648, %v100_v15  ;;  %v111_v22 = vxor.u32 2147483648, %v110_v20  ;;  %v120_v25 = vld [vmem:[#allocation2 + $0x4] ss:$0 sm:$0xff] }
  0xaa   :  { %v121_v27 = vxor.u32 2147483648, %v120_v25  ;;  %v130_v30 = vld [vmem:[#allocation2 + $0x5] ss:$0 sm:$0xff]  ;;  %v140_v38 = vld [vmem:[#allocation2 + $0x6] ss:$0 sm:$0xff] }
  0xab   :  { %v95_v14 = vmul.f32 %v91_v13, %v81_v11  ;;  %v131_v33 = vxor.u32 2147483648, %v130_v30  ;;  %v141_v40 = vxor.u32 2147483648, %v140_v38  ;;  %v150_v47 = vld [vmem:[#allocation2 + $0x7] ss:$0 sm:$0xff] }
  0xac   :  { %v151_v50 = vxor.u32 2147483648, %v150_v47 }
  0xad   :  { %96 = vadd.xlane.f32.xlu0 %v95_v14 }
 0x13a   :  { %v97_v16 = vpop.xlane.xlu0 %96 }
 0x13b   :  { %v98_v18 = vsel %vm94_vm6, %v97_v16, %v81_v11  ;;  %vm234_vm6 = vcmp.eq.s32.totalorder %v347_v2, 13 }
 0x13c   :  { %v105_v19 = vmul.f32 %v101_v17, %v98_v18 }
 0x13e   :  { %106 = vadd.xlane.f32.xlu1 %v105_v19 }
 0x1cb   :  { %v107_v21 = vpop.xlane.xlu1 %106 }
 0x1cc   :  { %v108_v23 = vsel %vm104_vm7, %v107_v21, %v98_v18  ;;  %vm248_vm7 = vcmp.eq.s32.totalorder %v347_v2, 14 }
 0x1cd   :  { %v115_v24 = vmul.f32 %v111_v22, %v108_v23 }
 0x1cf   :  { %116 = vadd.xlane.f32.xlu1 %v115_v24 }
 0x25c   :  { %v117_v26 = vpop.xlane.xlu1 %116 }
 0x25d   :  { %v118_v28 = vsel %vm114_vm8, %v117_v26, %v108_v23  ;;  %vm262_vm8 = vcmp.eq.s32.totalorder %v347_v2, 15 }
 0x25e   :  { %v125_v29 = vmul.f32 %v121_v27, %v118_v28 }
 0x260   :  { %126 = vadd.xlane.f32.xlu0 %v125_v29 }
 0x2ed   :  { %v127_v32 = vpop.xlane.xlu0 %126 }
 0x2ee   :  { %v128_v34 = vsel %vm124_vm9, %v127_v32, %v118_v28 }
 0x2ef   :  { %v135_v35 = vmul.f32 %v131_v33, %v128_v34 }
 0x2f1   :  { %136 = vadd.xlane.f32.xlu1 %v135_v35 }
 0x2f5   :  { %63 = vadd.xlane.f32.xlu1 %v62_v37 }
 0x37e   :  { %v137_v39 = vpop.xlane.xlu1 %136 }
 0x37f   :  { %v138_v41 = vsel %vm134_vm11, %v137_v39, %v128_v34 }
 0x380   :  { %v145_v42 = vmul.f32 %v141_v40, %v138_v41 }
 0x382   :  { %146 = vadd.xlane.f32.xlu0 %v145_v42  ;;  %v371_v43 = vpop.xlane.xlu1 %63 }
 0x383   :  { %330 = vrcp.f32 %v371_v43  ;;  %vm278_vm9 = vweird.f32 %v371_v43 }
 0x38d   :  { %v377_v45 = vpop.eup %330 }
 0x38e   :  { %v69_v46 = vmul.f32 %v377_v45, %v67_v44 }
 0x390   :  { %70 = vst [vmem:[#allocation2 + $0x8] sm:$0xff] %v69_v46 }
 0x397   :  { %v160_v48 = vld [vmem:[#allocation2 + $0x8] ss:$0 sm:$0xff]  ;;  %v174_v59 = vld [vmem:[#allocation2 + $0x9] ss:$0 sm:$0xff]  ;;  %v188_v4 = vld [vmem:[#allocation2 + $0xa] ss:$0 sm:$0xff] }
 0x398   :  { %v161_v51 = vxor.u32 2147483648, %v160_v48  ;;  %v175_v62 = vxor.u32 2147483648, %v174_v59  ;;  %v189_v9 = vxor.u32 2147483648, %v188_v4  ;;  %v202_v14 = vld [vmem:[#allocation2 + $0xb] ss:$0 sm:$0xff] }
 0x399   :  { %v203_v17 = vxor.u32 2147483648, %v202_v14  ;;  %v216_v22 = vld [vmem:[#allocation2 + $0xc] ss:$0 sm:$0xff]  ;;  %v230_v30 = vld [vmem:[#allocation2 + $0xd] ss:$0 sm:$0xff] }
 0x39a   :  { %v169_v56 = vmul.f32 %v161_v51, %v88_v54  ;;  %v217_v25 = vxor.u32 2147483648, %v216_v22  ;;  %v231_v33 = vxor.u32 2147483648, %v230_v30  ;;  %v244_v38 = vld [vmem:[#allocation2 + $0xe] ss:$0 sm:$0xff]  ;;  %v258_v48 = vld [vmem:[#allocation2 + $0xf] ss:$0 sm:$0xff] }
 0x40f   :  { %v147_v49 = vpop.xlane.xlu0 %146 }
 0x410   :  { %v148_v52 = vsel %vm144_vm14, %v147_v49, %v138_v41  ;;  %v245_v41 = vxor.u32 2147483648, %v244_v38 }
 0x411   :  { %v155_v55 = vmul.f32 %v151_v50, %v148_v52 }
 0x413   :  { %156 = vadd.xlane.f32.xlu0 %v155_v55 }
 0x417   :  { %170 = vadd.xlane.f32.xlu0 %v169_v56 }
 0x4a0   :  { %v157_v57 = vpop.xlane.xlu0 %156 }
 0x4a1   :  { %v158_v58 = vsel %vm154_vm0, %v157_v57, %v148_v52 }
 0x4a2   :  { %v165_v60 = vmul.f32 %v161_v51, %v158_v58  ;;  %v259_v51 = vxor.u32 2147483648, %v258_v48 }
 0x4a4   :  { %v171_v61 = vpop.xlane.xlu0 %170  ;;  %166 = vadd.xlane.f32.xlu1 %v165_v60 }
 0x4a5   :  { %v172_v63 = vsel %vm164_vm1, %v171_v61, %v88_v54 }
 0x4a6   :  { %v183_v0 = vmul.f32 %v175_v62, %v172_v63 }
 0x4a8   :  { %184 = vadd.xlane.f32.xlu0 %v183_v0 }
 0x531   :  { %v167_v1 = vpop.xlane.xlu1 %166 }
 0x532   :  { %v168_v3 = vsel %vm164_vm1, %v167_v1, %v158_v58 }
 0x533   :  { %v179_v6 = vmul.f32 %v175_v62, %v168_v3 }
 0x535   :  { %v185_v8 = vpop.xlane.xlu0 %184  ;;  %180 = vadd.xlane.f32.xlu1 %v179_v6 }
 0x536   :  { %v186_v10 = vsel %vm178_vm2, %v185_v8, %v172_v63 }
 0x537   :  { %v197_v11 = vmul.f32 %v189_v9, %v186_v10 }
 0x539   :  { %198 = vadd.xlane.f32.xlu0 %v197_v11 }
 0x5c2   :  { %v181_v12 = vpop.xlane.xlu1 %180 }
 0x5c3   :  { %v182_v13 = vsel %vm178_vm2, %v181_v12, %v168_v3 }
 0x5c4   :  { %v193_v15 = vmul.f32 %v189_v9, %v182_v13 }
 0x5c6   :  { %v199_v16 = vpop.xlane.xlu0 %198  ;;  %194 = vadd.xlane.f32.xlu1 %v193_v15 }
 0x5c7   :  { %v200_v18 = vsel %vm192_vm3, %v199_v16, %v186_v10 }
 0x5c8   :  { %v211_v19 = vmul.f32 %v203_v17, %v200_v18 }
 0x5ca   :  { %212 = vadd.xlane.f32.xlu0 %v211_v19 }
 0x653   :  { %v195_v20 = vpop.xlane.xlu1 %194 }
 0x654   :  { %v196_v21 = vsel %vm192_vm3, %v195_v20, %v182_v13 }
 0x655   :  { %v207_v23 = vmul.f32 %v203_v17, %v196_v21 }
 0x657   :  { %v213_v24 = vpop.xlane.xlu0 %212  ;;  %208 = vadd.xlane.f32.xlu1 %v207_v23 }
 0x658   :  { %v214_v26 = vsel %vm206_vm4, %v213_v24, %v200_v18 }
 0x659   :  { %v225_v27 = vmul.f32 %v217_v25, %v214_v26 }
 0x65b   :  { %226 = vadd.xlane.f32.xlu0 %v225_v27 }
 0x6e4   :  { %v209_v28 = vpop.xlane.xlu1 %208 }
 0x6e5   :  { %v210_v29 = vsel %vm206_vm4, %v209_v28, %v196_v21 }
 0x6e6   :  { %v221_v31 = vmul.f32 %v217_v25, %v210_v29 }
 0x6e8   :  { %v227_v32 = vpop.xlane.xlu0 %226  ;;  %222 = vadd.xlane.f32.xlu1 %v221_v31 }
 0x6e9   :  { %v228_v34 = vsel %vm220_vm5, %v227_v32, %v214_v26 }
 0x6ea   :  { %v239_v35 = vmul.f32 %v231_v33, %v228_v34 }
 0x6ec   :  { %240 = vadd.xlane.f32.xlu0 %v239_v35 }
 0x775   :  { %v223_v36 = vpop.xlane.xlu1 %222 }
 0x776   :  { %v224_v37 = vsel %vm220_vm5, %v223_v36, %v210_v29 }
 0x777   :  { %v235_v39 = vmul.f32 %v231_v33, %v224_v37 }
 0x779   :  { %v241_v40 = vpop.xlane.xlu0 %240  ;;  %236 = vadd.xlane.f32.xlu1 %v235_v39 }
 0x77a   :  { %v242_v42 = vsel %vm234_vm6, %v241_v40, %v228_v34 }
 0x77b   :  { %v253_v44 = vmul.f32 %v245_v41, %v242_v42 }
 0x77d   :  { %254 = vadd.xlane.f32.xlu0 %v253_v44 }
 0x806   :  { %v237_v46 = vpop.xlane.xlu1 %236 }
 0x807   :  { %v238_v47 = vsel %vm234_vm6, %v237_v46, %v224_v37 }
 0x808   :  { %v249_v49 = vmul.f32 %v245_v41, %v238_v47 }
 0x80a   :  { %v255_v50 = vpop.xlane.xlu0 %254  ;;  %250 = vadd.xlane.f32.xlu1 %v249_v49 }
 0x80b   :  { %v256_v52 = vsel %vm248_vm7, %v255_v50, %v242_v42 }
 0x80c   :  { %v267_v53 = vmul.f32 %v259_v51, %v256_v52 }
 0x80e   :  { %268 = vadd.xlane.f32.xlu0 %v267_v53 }
 0x897   :  { %v251_v54 = vpop.xlane.xlu1 %250 }
 0x898   :  { %v252_v55 = vsel %vm248_vm7, %v251_v54, %v238_v47 }
 0x899   :  { %v263_v56 = vmul.f32 %v259_v51, %v252_v55 }
 0x89b   :  { %v269_v57 = vpop.xlane.xlu0 %268  ;;  %264 = vadd.xlane.f32.xlu1 %v263_v56 }
 0x89c   :  { %v270_v58 = vsel %vm262_vm8, %v269_v57, %v256_v52 }
 0x89d   :  { %v277_v59 = vmul.f32 %v377_v45, %v270_v58 }
 0x89f   :  { %v279_v60 = vsel %vm278_vm9, %v270_v58, %v277_v59 }
 0x8a0   :  { %314 = vst [vmem:[%s402_s1 + $0x8] sm:$0xff] %v279_v60 }
 0x928   :  { %v265_v61 = vpop.xlane.xlu1 %264 }
 0x929   :  { %v266_v62 = vsel %vm262_vm8, %v265_v61, %v252_v55 }
 0x92a   :  { %v272_v63 = vmul.f32 %v357_v7, %v266_v62 }
 0x92c   :  { %v274_v2 = vsel %vm273_vm10, %v266_v62, %v272_v63 }
 0x92d   :  { %312 = vst [vmem:[%s402_s1] sm:$0xff] %v274_v2 }

// kernel: custom-call.20
= control target key start
LH: loop header
LB: loop body
LE: loop exit
PB: predicated region body
PF: predicated region fallthrough
CT: control target
= control target key end

     0   :  { %v38_v0 = vlaneseq  ;;  %v331_v10 = vmov -1.0   ;;  %v332_v47 = vmov 0.0   ;;  %s434_s0 = inlined_call_operand.vmem [shape: f32[1,16,16], index: 0, kind: input, shape index: {}]   ;;  %s435_s1 = inlined_call_operand.vmem [shape: f32[1,16,16], index: 1, kind: output, shape index: {}]  }
   0x1   :  { %v33_v3 = vld [vmem:[%s434_s0 + $0x8] sm:$0xff]  ;;  %v31_v36 = vld [vmem:[%s434_s0] sm:$0xff] }
   0x2   :  { %v343_v1 = vand.u32 127, %v38_v0  ;;  %v345_v2 = vshrl.u32 %v38_v0, 7 }
   0x4   :  { %vm40_vm0 = vcmp.lt.s32.totalorder %v343_v1, 16  ;;  %v59_v4 = vadd.s32 8, %v345_v2  ;;  %vm86_vm4 = vcmp.eq.s32.totalorder %v343_v1, 15  ;;  %vm94_vm6 = vcmp.eq.s32.totalorder %v343_v1, 14 }
   0x5   :  { %v87_v11 = vsel %vm86_vm4, 1.0, %v331_v10  ;;  %vm104_vm7 = vcmp.eq.s32.totalorder %v343_v1, 13  ;;  %vm114_vm8 = vcmp.eq.s32.totalorder %v343_v1, 12  ;;  %vm124_vm9 = vcmp.eq.s32.totalorder %v343_v1, 11 }
   0x6   :  { %vm60_vm1 = vcmp.eq.s32.totalorder %v59_v4, %v343_v1  ;;  %vm65_vm2 = vcmp.le.s32.totalorder %v59_v4, %v343_v1  ;;  %vm83_vm5 = vcmp.eq.s32.totalorder %v343_v1, %v59_v4  ;;  %vm44_vm10 = vcmp.eq.s32.totalorder %v345_v2, %v343_v1 }
   0x7   :  { %v62_v5 = vsel %vm60_vm1, %v33_v3, 0.0  ;;  %vm66_vm3 = vmand %vm65_vm2, %vm40_vm0  ;;  %v88_v12 = vsel %vm83_vm5, %v87_v11, 0.0  ;;  %v46_v37 = vsel %vm44_vm10, %v31_v36, 0.0  ;;  %vm134_vm11 = vcmp.eq.s32.totalorder %v343_v1, 10 }
   0x8   :  { %v67_v6 = vsel %vm66_vm3, %v33_v3, 0.0  ;;  %63 = vadd.xlane.f32.xlu0 %v62_v5  ;;  %vm49_vm12 = vcmp.le.s32.totalorder %v345_v2, %v343_v1  ;;  %vm76_vm14 = vcmp.eq.s32.totalorder %v343_v1, %v345_v2  ;;  %vm144_vm15 = vcmp.eq.s32.totalorder %v343_v1, 9 }
   0x9   :  { %vm50_vm13 = vmand %vm49_vm12, %vm40_vm0  ;;  %v77_v48 = vsel %vm76_vm14, -1.0, %v332_v47  ;;  %vm164_vm0 = vcmp.eq.s32.totalorder %v343_v1, 7  ;;  %vm154_vm1 = vcmp.eq.s32.totalorder %v343_v1, 8  ;;  %vm178_vm2 = vcmp.eq.s32.totalorder %v343_v1, 6 }
   0xa   :  { %v51_v44 = vsel %vm50_vm13, %v31_v36, 0.0  ;;  %vm192_vm3 = vcmp.eq.s32.totalorder %v343_v1, 5  ;;  %vm206_vm4 = vcmp.eq.s32.totalorder %v343_v1, 4  ;;  %vm220_vm5 = vcmp.eq.s32.totalorder %v343_v1, 3 }
  0x95   :  { %v356_v7 = vpop.xlane.xlu0 %63 }
  0x96   :  { %327 = vrcp.f32 %v356_v7  ;;  %vm277_vm10 = vweird.f32 %v356_v7 }
  0xa0   :  { %v359_v8 = vpop.eup %327 }
  0xa1   :  { %v69_v9 = vmul.f32 %v359_v8, %v67_v6 }
  0xa3   :  { %70 = vst [vmem:[#allocation2 + $0x8] sm:$0xff] %v69_v9 }
  0xaa   :  { %v90_v13 = vld [vmem:[#allocation2 + $0xe] ss:$0 sm:$0xff]  ;;  %v100_v16 = vld [vmem:[#allocation2 + $0xd] ss:$0 sm:$0xff]  ;;  %v110_v21 = vld [vmem:[#allocation2 + $0xc] ss:$0 sm:$0xff] }
  0xab   :  { %v91_v14 = vxor.u32 2147483648, %v90_v13  ;;  %v101_v18 = vxor.u32 2147483648, %v100_v16  ;;  %v111_v23 = vxor.u32 2147483648, %v110_v21  ;;  %v120_v26 = vld [vmem:[#allocation2 + $0xb] ss:$0 sm:$0xff] }
  0xac   :  { %v121_v28 = vxor.u32 2147483648, %v120_v26  ;;  %v130_v31 = vld [vmem:[#allocation2 + $0xa] ss:$0 sm:$0xff]  ;;  %v140_v38 = vld [vmem:[#allocation2 + $0x9] ss:$0 sm:$0xff] }
  0xad   :  { %v95_v15 = vmul.f32 %v91_v14, %v88_v12  ;;  %v131_v33 = vxor.u32 2147483648, %v130_v31  ;;  %v141_v40 = vxor.u32 2147483648, %v140_v38  ;;  %v150_v52 = vld [vmem:[#allocation2 + $0x8] ss:$0 sm:$0xff] }
  0xae   :  { %v151_v54 = vxor.u32 2147483648, %v150_v52 }
  0xaf   :  { %96 = vadd.xlane.f32.xlu0 %v95_v15 }
 0x13c   :  { %v97_v17 = vpop.xlane.xlu0 %96 }
 0x13d   :  { %v98_v19 = vsel %vm94_vm6, %v97_v17, %v88_v12  ;;  %vm234_vm6 = vcmp.eq.s32.totalorder %v343_v1, 2 }
 0x13e   :  { %v105_v20 = vmul.f32 %v101_v18, %v98_v19 }
 0x140   :  { %106 = vadd.xlane.f32.xlu1 %v105_v20 }
 0x1cd   :  { %v107_v22 = vpop.xlane.xlu1 %106 }
 0x1ce   :  { %v108_v24 = vsel %vm104_vm7, %v107_v22, %v98_v19  ;;  %vm248_vm7 = vcmp.eq.s32.totalorder %v343_v1, 1 }
 0x1cf   :  { %v115_v25 = vmul.f32 %v111_v23, %v108_v24 }
 0x1d1   :  { %116 = vadd.xlane.f32.xlu1 %v115_v25 }
 0x25e   :  { %v117_v27 = vpop.xlane.xlu1 %116 }
 0x25f   :  { %v118_v29 = vsel %vm114_vm8, %v117_v27, %v108_v24  ;;  %vm261_vm8 = vcmp.eq.s32.totalorder %v343_v1, 0 }
 0x260   :  { %v125_v30 = vmul.f32 %v121_v28, %v118_v29 }
 0x262   :  { %126 = vadd.xlane.f32.xlu0 %v125_v30 }
 0x2ef   :  { %v127_v32 = vpop.xlane.xlu0 %126 }
 0x2f0   :  { %v128_v34 = vsel %vm124_vm9, %v127_v32, %v118_v29 }
 0x2f1   :  { %v135_v35 = vmul.f32 %v131_v33, %v128_v34 }
 0x2f3   :  { %136 = vadd.xlane.f32.xlu1 %v135_v35 }
 0x2f7   :  { %47 = vadd.xlane.f32.xlu1 %v46_v37 }
 0x380   :  { %v137_v39 = vpop.xlane.xlu1 %136 }
 0x381   :  { %v138_v41 = vsel %vm134_vm11, %v137_v39, %v128_v34 }
 0x382   :  { %v145_v42 = vmul.f32 %v141_v40, %v138_v41 }
 0x384   :  { %146 = vadd.xlane.f32.xlu0 %v145_v42  ;;  %v374_v43 = vpop.xlane.xlu1 %47 }
 0x385   :  { %329 = vrcp.f32 %v374_v43  ;;  %vm272_vm9 = vweird.f32 %v374_v43 }
 0x38f   :  { %v381_v45 = vpop.eup %329 }
 0x390   :  { %v53_v46 = vmul.f32 %v381_v45, %v51_v44 }
 0x392   :  { %54 = vst [vmem:[#allocation2] sm:$0xff] %v53_v46 }
 0x399   :  { %v160_v49 = vld [vmem:[#allocation2 + $0x7] ss:$0 sm:$0xff]  ;;  %v174_v57 = vld [vmem:[#allocation2 + $0x6] ss:$0 sm:$0xff]  ;;  %v188_v2 = vld [vmem:[#allocation2 + $0x5] ss:$0 sm:$0xff] }
 0x39a   :  { %v161_v50 = vxor.u32 2147483648, %v160_v49  ;;  %v175_v58 = vxor.u32 2147483648, %v174_v57  ;;  %v189_v4 = vxor.u32 2147483648, %v188_v2  ;;  %v202_v12 = vld [vmem:[#allocation2 + $0x4] ss:$0 sm:$0xff] }
 0x39b   :  { %v203_v14 = vxor.u32 2147483648, %v202_v12  ;;  %v216_v20 = vld [vmem:[#allocation2 + $0x3] ss:$0 sm:$0xff]  ;;  %v230_v28 = vld [vmem:[#allocation2 + $0x2] ss:$0 sm:$0xff] }
 0x39c   :  { %v165_v51 = vmul.f32 %v161_v50, %v77_v48  ;;  %v217_v22 = vxor.u32 2147483648, %v216_v20  ;;  %v231_v30 = vxor.u32 2147483648, %v230_v28  ;;  %v244_v36 = vld [vmem:[#allocation2 + $0x1] ss:$0 sm:$0xff]  ;;  %v257_v46 = vld [vmem:[#allocation2] ss:$0 sm:$0xff] }
 0x39d   :  { %v245_v38 = vxor.u32 2147483648, %v244_v36 }
 0x39e   :  { %166 = vadd.xlane.f32.xlu1 %v165_v51 }
 0x411   :  { %v147_v53 = vpop.xlane.xlu0 %146 }
 0x412   :  { %v148_v55 = vsel %vm144_vm15, %v147_v53, %v138_v41 }
 0x413   :  { %v155_v56 = vmul.f32 %v151_v54, %v148_v55 }
 0x415   :  { %156 = vadd.xlane.f32.xlu0 %v155_v56 }
 0x42b   :  { %v167_v59 = vpop.xlane.xlu1 %166 }
 0x42c   :  { %v168_v60 = vsel %vm164_vm0, %v167_v59, %v77_v48  ;;  %v258_v48 = vxor.u32 2147483648, %v257_v46 }
 0x42d   :  { %v179_v61 = vmul.f32 %v175_v58, %v168_v60 }
 0x42f   :  { %180 = vadd.xlane.f32.xlu1 %v179_v61 }
 0x4a2   :  { %v157_v62 = vpop.xlane.xlu0 %156 }
 0x4a3   :  { %v158_v63 = vsel %vm154_vm1, %v157_v62, %v148_v55 }
 0x4a4   :  { %v169_v0 = vmul.f32 %v161_v50, %v158_v63 }
 0x4a6   :  { %170 = vadd.xlane.f32.xlu0 %v169_v0 }
 0x4bc   :  { %v181_v3 = vpop.xlane.xlu1 %180 }
 0x4bd   :  { %v182_v5 = vsel %vm178_vm2, %v181_v3, %v168_v60 }
 0x4be   :  { %v193_v6 = vmul.f32 %v189_v4, %v182_v5 }
 0x4c0   :  { %194 = vadd.xlane.f32.xlu1 %v193_v6 }
 0x533   :  { %v171_v9 = vpop.xlane.xlu0 %170 }
 0x534   :  { %v172_v10 = vsel %vm164_vm0, %v171_v9, %v158_v63 }
 0x535   :  { %v183_v11 = vmul.f32 %v175_v58, %v172_v10 }
 0x537   :  { %184 = vadd.xlane.f32.xlu0 %v183_v11 }
 0x54d   :  { %v195_v13 = vpop.xlane.xlu1 %194 }
 0x54e   :  { %v196_v15 = vsel %vm192_vm3, %v195_v13, %v182_v5 }
 0x54f   :  { %v207_v16 = vmul.f32 %v203_v14, %v196_v15 }
 0x551   :  { %208 = vadd.xlane.f32.xlu1 %v207_v16 }
 0x5c4   :  { %v185_v17 = vpop.xlane.xlu0 %184 }
 0x5c5   :  { %v186_v18 = vsel %vm178_vm2, %v185_v17, %v172_v10 }
 0x5c6   :  { %v197_v19 = vmul.f32 %v189_v4, %v186_v18 }
 0x5c8   :  { %198 = vadd.xlane.f32.xlu0 %v197_v19 }
 0x5de   :  { %v209_v21 = vpop.xlane.xlu1 %208 }
 0x5df   :  { %v210_v23 = vsel %vm206_vm4, %v209_v21, %v196_v15 }
 0x5e0   :  { %v221_v24 = vmul.f32 %v217_v22, %v210_v23 }
 0x5e2   :  { %222 = vadd.xlane.f32.xlu1 %v221_v24 }
 0x655   :  { %v199_v25 = vpop.xlane.xlu0 %198 }
 0x656   :  { %v200_v26 = vsel %vm192_vm3, %v199_v25, %v186_v18 }
 0x657   :  { %v211_v27 = vmul.f32 %v203_v14, %v200_v26 }
 0x659   :  { %212 = vadd.xlane.f32.xlu0 %v211_v27 }
 0x66f   :  { %v223_v29 = vpop.xlane.xlu1 %222 }
 0x670   :  { %v224_v31 = vsel %vm220_vm5, %v223_v29, %v210_v23 }
 0x671   :  { %v235_v32 = vmul.f32 %v231_v30, %v224_v31 }
 0x673   :  { %236 = vadd.xlane.f32.xlu1 %v235_v32 }
 0x6e6   :  { %v213_v33 = vpop.xlane.xlu0 %212 }
 0x6e7   :  { %v214_v34 = vsel %vm206_vm4, %v213_v33, %v200_v26 }
 0x6e8   :  { %v225_v35 = vmul.f32 %v217_v22, %v214_v34 }
 0x6ea   :  { %226 = vadd.xlane.f32.xlu0 %v225_v35 }
 0x700   :  { %v237_v37 = vpop.xlane.xlu1 %236 }
 0x701   :  { %v238_v39 = vsel %vm234_vm6, %v237_v37, %v224_v31 }
 0x702   :  { %v249_v40 = vmul.f32 %v245_v38, %v238_v39 }
 0x704   :  { %250 = vadd.xlane.f32.xlu1 %v249_v40 }
 0x777   :  { %v227_v41 = vpop.xlane.xlu0 %226 }
 0x778   :  { %v228_v42 = vsel %vm220_vm5, %v227_v41, %v214_v34 }
 0x779   :  { %v239_v44 = vmul.f32 %v231_v30, %v228_v42 }
 0x77b   :  { %240 = vadd.xlane.f32.xlu0 %v239_v44 }
 0x791   :  { %v251_v47 = vpop.xlane.xlu1 %250 }
 0x792   :  { %v252_v49 = vsel %vm248_vm7, %v251_v47, %v238_v39 }
 0x793   :  { %v262_v50 = vmul.f32 %v258_v48, %v252_v49 }
 0x795   :  { %263 = vadd.xlane.f32.xlu1 %v262_v50 }
 0x808   :  { %v241_v51 = vpop.xlane.xlu0 %240 }
 0x809   :  { %v242_v52 = vsel %vm234_vm6, %v241_v51, %v228_v42 }
 0x80a   :  { %v253_v53 = vmul.f32 %v245_v38, %v242_v52 }
 0x80c   :  { %254 = vadd.xlane.f32.xlu0 %v253_v53 }
 0x822   :  { %v264_v54 = vpop.xlane.xlu1 %263 }
 0x823   :  { %v265_v55 = vsel %vm261_vm8, %v264_v54, %v252_v49 }
 0x824   :  { %v271_v56 = vmul.f32 %v381_v45, %v265_v55 }
 0x826   :  { %v273_v57 = vsel %vm272_vm9, %v265_v55, %v271_v56 }
 0x827   :  { %311 = vst [vmem:[%s435_s1] sm:$0xff] %v273_v57 }
 0x899   :  { %v255_v58 = vpop.xlane.xlu0 %254 }
 0x89a   :  { %v256_v59 = vsel %vm248_vm7, %v255_v58, %v242_v52 }
 0x89b   :  { %v266_v60 = vmul.f32 %v258_v48, %v256_v59 }
 0x89d   :  { %267 = vadd.xlane.f32.xlu0 %v266_v60 }
 0x92a   :  { %v268_v61 = vpop.xlane.xlu0 %267 }
 0x92b   :  { %v269_v62 = vsel %vm261_vm8, %v268_v61, %v256_v59 }
 0x92c   :  { %v276_v63 = vmul.f32 %v359_v8, %v269_v62 }
 0x92e   :  { %v278_v45 = vsel %vm277_vm10, %v269_v62, %v276_v63 }
 0x92f   :  { %313 = vst [vmem:[%s435_s1 + $0x8] sm:$0xff] %v278_v45 }

// kernel: snsgp_forward.1
= control target key start
LH: loop header
LB: loop body
LE: loop exit
PB: predicated region body
PF: predicated region fallthrough
CT: control target
= control target key end

     0   :  { %17 = vsyncpa [#allocation3], 0  ;;  %s3263_s17 = smov 0   ;;  %s3265_s18 = smov 0   ;;  %s4406_s0 = inlined_call_operand.vmem [shape: f32[5], index: 0, kind: input, shape index: {}]   ;;  %s4407_s1 = inlined_call_operand.vmem [shape: f32[16,4], index: 1, kind: input, shape index: {}]   ;;  %s4408_s2 = inlined_call_operand.vmem [shape: f32[4,16], index: 2, kind: input, shape index: {}]   ;;  %s4409_s3 = inlined_call_operand.vmem [shape: f32[16,4], index: 3, kind: input, shape index: {}]   ;;  %s4410_s4 = inlined_call_operand.vmem [shape: f32[4,16], index: 4, kind: input, shape index: {}]   ;;  %s4411_s5 = inlined_call_operand.vmem [shape: f32[4,1024], index: 5, kind: input, shape index: {}]   ;;  %s4412_s6 = inlined_call_operand.vmem [shape: f32[8,4], index: 6, kind: input, shape index: {}]   ;;  %s4413_s7 = inlined_call_operand.vmem [shape: f32[8,4], index: 7, kind: input, shape index: {}]   ;;  %s4414_s8 = inlined_call_operand.vmem [shape: f32[1,1024], index: 8, kind: input, shape index: {}]   ;;  %s4415_s9 = inlined_call_operand.vmem [shape: f32[2,16,16], index: 9, kind: output, shape index: {0}]   ;;  %s4416_s10 = inlined_call_operand.vmem [shape: f32[2,16,16], index: 10, kind: output, shape index: {1}]   ;;  %s4417_s11 = inlined_call_operand.vmem [shape: f32[2,16,1], index: 11, kind: output, shape index: {2}]  }
   0x1   :  { %s3267_s19 = smov 0  }
   0x2 LB: > { %s2878_s20 = sadd.s32 4294967295, %s3192_s19   ;;  %s35_s21 = sadd.s32 1, %s3188_s18  ;;  %s3192_s19 = sphi %s3267_s19, %s23_s19   ;;  %s3188_s18 = sphi %s3265_s18, %s4563_s18   ;;  %s3184_s17 = sphi %s3263_s17, %s4562_s17  }
   0x3   : > { %p37_p0 = scmp.ge.s32.totalorder %s35_s21, 2  ;;  %p2880_p1 = scmp.ge.s32.totalorder %s3192_s19, 1 }
   0x4   : > { %p321_p2 = scmp.lt.s32.totalorder %s3192_s19, 3  ;;  %p3288_p4 = scmp.eq.s32.totalorder %s2878_s20, 0 }
   0x5   : > { %s4565_s21 = smov (%p37_p0, %s35_s21), 0  ;;  %s334_s26 = sshll.u32 %s4406_s0, 4  ;;  %s335_s26 = int_to_ptr.vmem [resolvable:$true] %s334_s26 }
   0x6   : > { %p3284_p3 = pnand %p2880_p1, %p321_p2  ;;  %s3151_s27 = scalar_lea.vmem %s335_s26, 16 }
   0x7   : > { %p3152_p7 = scmp.ne.s32.totalorder %s335_s26, %s3151_s27  ;;  %p3159_p11 = scmp.lt.s32.totalorder %s335_s26, %s335_s26 }
   0x8   : > { %p2955_p5 = pneg %p3284_p3  ;;  %p3160_p12 = scmp.lt.s32.totalorder %s3151_s27, %s3151_s27 }
   0xa   : > { %p2956_p6 = pnand %p3288_p4, %p2955_p5  ;;  %p3161_p13 = por %p3160_p12, %p3159_p11 }
   0xc   : > { %p3153_p8 = pneg %p2956_p6 }
   0xe   : > { %p3154_p9 = pnand %p3153_p8, %p3152_p7 }
  0x10   : > { %p3155_p10 = pneg %p3154_p9 }
  0x12   : > { %p3162_p0 = pnand %p3161_p13, %p3155_p10 }
  0x14   : > { %3165 = shalt.err (!%p3162_p0)
}
  0x15   : > { %s3194_s28 = smov [#allocation2]   ;;  %386 = sbr.rel (%p3284_p3) target bundleno = 621 (0x26d), region = 56 }
  0x16   : > { %2958 = dma.vmem_to_smem (!%p2956_p6), %s335_s26, 16, %s3194_s28, [#allocation3]  }
  0x1c   : > { %3179 = dma.done.wait (%p3288_p4), [#allocation3], 16  }
  0x1d   : > { %3181 = vsyncadd (%p3288_p4), [#allocation3], 4294967280 }
  0x1e   : > { %392 = sfence }
  0x1f   : > { %v3308_v0 = vld [vmem:[%s4409_s3] sm:$0xff]  ;;  %v4419_v2 = vmov 0   ;;  %s3196_s14 = smov 127   ;;  %v3318_v3 = vld [vmem:[%s4409_s3 + $0x8] sm:$0xff]  ;;  %v4423_v4 = vmov 2   ;;  %v4418_v5 = vmov 1   ;;  %v534_v12 = vlaneseq }
  0x20   : > { %v481_v1 = vld [vmem:[%s4412_s6] sm:$0xff]  ;;  %2994 = vset.pattern.permute.xlu1 %v4419_v2  ;;  %487 = vrot.lane.b32.xlu0 %v3308_v0, %s3196_s14  ;;  %s3199_s20 = smov 126   ;;  %s3200_s22 = smov 125   ;;  %v4421_v6 = vmov 3   ;;  %v3335_v8 = vmul.f32 %v3308_v0, %v3308_v0  ;;  %v3341_v9 = vmul.f32 %v3318_v3, %v3318_v3  ;;  %v3349_v10 = vld [vmem:[%s4407_s1 + $0x8] sm:$0xff]  ;;  %vm518_vm0 = vcmask 7168  }
  0x21   : > { %733 = vperm.xlu1 %2994, %v481_v1   ;;  %2996 = vset.pattern.permute.xlu0 %v4423_v4  ;;  %v482_v7 = vld [vmem:[%s4413_s7] sm:$0xff]  ;;  %s2885_s29 = sshll.u32 %s3184_s17, 2  ;;  %v535_v13 = vshrl.u32 %v534_v12, 7  ;;  %s2894_s15 = sld [smem:[#allocation2 + $0x1]] }
  0x22   : > { %v3367_v11 = vld [vmem:[%s4407_s1] sm:$0xff]  ;;  %p445_p1 = scmp.lt.s32.totalorder %s2885_s29, 7  ;;  %s2895_s16 = sld [smem:[#allocation2 + $0x2]] }
  0x23   : > { %v3389_v14 = vsub.s32 0, %v535_v13  ;;  %v744_v15 = vsub.s32 4, %v535_v13  ;;  %v3393_v18 = vsub.s32 1, %v535_v13  ;;  %v897_v19 = vsub.s32 5, %v535_v13  ;;  %s3473_s23 = sld [smem:[#allocation2 + $0x4]]  ;;  %p458_p2 = scmp.lt.s32.totalorder %s3184_s17, 1 }
  0x24   : > { %489 = vrot.lane.b32.xlu0 %v3318_v3, %s3196_s14  ;;  %s4567_s29 = smov (!%p445_p1, %s2885_s29), 7  ;;  %v3395_v20 = vsub.s32 2, %v535_v13  ;;  %v1079_v21 = vsub.s32 6, %v535_v13  ;;  %v3410_v33 = vsub.s32 3, %v535_v13  ;;  %v1261_v34 = vsub.s32 7, %v535_v13 }
  0x25   : > { %2995 = vset.pattern.permute.xlu1 %v4418_v5  ;;  %s2886_s30 = sshll.u32 %s4567_s29, 2  ;;  %4476 = vst [vmem:[#allocation5_spill] sm:$0xff] %v3389_v14  ;;  %4477 = vst [vmem:[#allocation6_spill] sm:$0xff] %v3393_v18  ;;  %s4569_s17 = smov (!%p458_p2, %s3184_s17), 1 }
  0x26   : > { %888 = vperm.xlu1 %2995, %v481_v1   ;;  %s448_s14 = scalar_lea.vmem %s4411_s5, %s2886_s30  ;;  %4478 = vst [vmem:[#allocation7_spill] sm:$0xff] %v3395_v20  ;;  %4479 = vst [vmem:[#allocation8_spill] sm:$0xff] %v3410_v33  ;;  %s3889_s24 = sshll.u32 %s4569_s17, 4 }
  0x27   : > { %v479_v16 = vld [vmem:[%s448_s14] sm:$0xff]  ;;  %v3391_v17 = vld [vmem:[%s448_s14 + $0x8] sm:$0xff]  ;;  %v783_v39 = vstv %s2894_s15  ;;  %s3895_s27 = scalar_lea.vmem %s4417_s11, %s3889_s24  ;;  %s455_s15 = scalar_lea.vmem %s4414_s8, %s4567_s29 }
  0x28   : > { %495 = vrot.lane.b32.xlu0 %v3308_v0, %s3199_s20  ;;  %v741_v23 = vrot.slane %v479_v16, %v3389_v14  ;;  %v745_v24 = vrot.slane %v479_v16, %v744_v15  ;;  %v749_v25 = vrot.slane %v3391_v17, %v3389_v14  ;;  %v753_v26 = vrot.slane %v3391_v17, %v744_v15  ;;  %s4380_s25 = scalar_lea.vmem %s4416_s10, %s3889_s24 }
  0x29   : > { %v894_v27 = vrot.slane %v479_v16, %v3393_v18  ;;  %v898_v28 = vrot.slane %v479_v16, %v897_v19  ;;  %v902_v29 = vrot.slane %v3391_v17, %v3393_v18  ;;  %v906_v30 = vrot.slane %v3391_v17, %v897_v19 }
  0x2a   : > { %497 = vrot.lane.b32.xlu1 %v3318_v3, %s3199_s20  ;;  %s3401_s20 = sld [smem:[#allocation2 + $0x3]]  ;;  %v1076_v31 = vrot.slane %v479_v16, %v3395_v20  ;;  %v1080_v32 = vrot.slane %v479_v16, %v1079_v21  ;;  %v3413_v35 = vrot.slane %v741_v23, %v3389_v14  ;;  %v3416_v36 = vrot.slane %v745_v24, %v3389_v14 }
  0x2b   : > { %2998 = vset.pattern.permute.xlu1 %v4419_v2  ;;  %v3419_v37 = vrot.slane %v749_v25, %v3389_v14  ;;  %v3422_v38 = vrot.slane %v753_v26, %v3389_v14  ;;  %v936_v40 = vstv %s2895_s16  ;;  %v1084_v41 = vrot.slane %v3391_v17, %v3395_v20 }
  0x2c   : > { %1070 = vperm.xlu0 %2996, %v481_v1   ;;  %v1088_v42 = vrot.slane %v3391_v17, %v1079_v21  ;;  %v3428_v44 = vrot.slane %v894_v27, %v3393_v18  ;;  %v3431_v45 = vrot.slane %v898_v28, %v3393_v18  ;;  %v3434_v46 = vrot.slane %v902_v29, %v3393_v18 }
  0x2d   : > { %v3437_v47 = vrot.slane %v906_v30, %v3393_v18  ;;  %v3440_v49 = vrot.slane %v1076_v31, %v3395_v20  ;;  %v3443_v50 = vrot.slane %v1080_v32, %v3395_v20  ;;  %v1258_v51 = vrot.slane %v479_v16, %v3410_v33 }
  0x2e   : > { %503 = vrot.lane.b32.xlu1 %v3308_v0, %s3200_s22  ;;  %v1262_v52 = vrot.slane %v479_v16, %v1261_v34  ;;  %v3454_v58 = vrot.slane %v1084_v41, %v3395_v20  ;;  %v3457_v59 = vrot.slane %v1088_v42, %v3395_v20  ;;  %v1266_v60 = vrot.slane %v3391_v17, %v3410_v33 }
  0x2f   : > { %v1270_v12 = vrot.slane %v3391_v17, %v1261_v34  ;;  %v3464_v13 = vrot.slane %v1258_v51, %v3410_v33 }
  0x30   : > { %2997 = vset.pattern.permute.xlu0 %v4421_v6  ;;  %v3451_v57 = vstv %s3401_s20  ;;  %v3467_v15 = vrot.slane %v1262_v52, %v3410_v33  ;;  %v3477_v52 = vrot.slane %v1266_v60, %v3410_v33  ;;  %s462_s20 = scalar_lea.vmem %s4415_s9, %s3889_s24 }
  0x31   : > { %1252 = vperm.xlu0 %2997, %v481_v1   ;;  %4480 = vst [vmem:[#allocation9_spill] sm:$0xff] %v3464_v13 }
  0x32   : > { %505 = vrot.lane.b32.xlu1 %v3318_v3, %s3200_s22  ;;  %s3408_s22 = sld [smem:[#allocation2]]  ;;  %4481 = vst [vmem:[#allocation10_spill] sm:$0xff] %v3467_v15  ;;  %4482 = vst [vmem:[#allocation11_spill] sm:$0xff] %v3477_v52 }
  0x35   : > { %3000 = vset.pattern.permute.xlu0 %v4423_v4 }
  0x36   : > { %798 = vperm.xlu1 %2998, %v482_v7   ;;  %1132 = vperm.xlu0 %3000, %v482_v7  }
  0x3a   : > { %2999 = vset.pattern.permute.xlu1 %v4418_v5  ;;  %1180 = vperm.xlu0 %3000, %v3335_v8  }
  0x3b   : > { %950 = vperm.xlu1 %2999, %v482_v7  }
  0x3e   : > { %3004 = vset.pattern.permute.xlu0 %v4419_v2 }
  0x3f   : > { %3001 = vset.pattern.permute.xlu1 %v4421_v6  ;;  %850 = vperm.xlu0 %3004, %v3341_v9  }
  0x40   : > { %1314 = vperm.xlu1 %3001, %v482_v7   ;;  %v682_v7 = vstv %s3408_s22 }
  0x43   : > { %868 = vperm.xlu0 %3004, %v3349_v10  }
  0x44   : > { %3002 = vset.pattern.permute.xlu1 %v4419_v2 }
  0x45   : > { %845 = vperm.xlu1 %3002, %v3335_v8  }
  0x47   : > { %3008 = vset.pattern.permute.xlu0 %v4421_v6 }
  0x48   : > { %1362 = vperm.xlu0 %3008, %v3335_v8  }
  0x49   : > { %3003 = vset.pattern.permute.xlu1 %v4418_v5 }
  0x4a   : > { %998 = vperm.xlu1 %3003, %v3335_v8  }
  0x4c   : > { %3011 = vset.pattern.permute.xlu0 %v4423_v4 }
  0x4d   : > { %1200 = vperm.xlu0 %3011, %v3349_v10  }
  0x4e   : > { %1002 = vperm.xlu1 %3003, %v3341_v9  }
  0x51   : > { %3013 = vset.pattern.permute.xlu0 %v4419_v2 }
  0x52   : > { %3005 = vset.pattern.permute.xlu1 %v4423_v4 }
  0x53   : > { %1184 = vperm.xlu1 %3005, %v3341_v9  }
  0x57   : > { %3006 = vset.pattern.permute.xlu1 %v4419_v2 }
  0x58   : > { %863 = vperm.xlu1 %3006, %v3367_v11  }
  0x5c   : > { %3007 = vset.pattern.permute.xlu1 %v4418_v5 }
  0x5d   : > { %1014 = vperm.xlu1 %3007, %v3367_v11  }
  0x61   : > { %1018 = vperm.xlu1 %3007, %v3349_v10  }
  0x65   : > { %3009 = vset.pattern.permute.xlu1 %v4421_v6 }
  0x66   : > { %1366 = vperm.xlu1 %3009, %v3341_v9  }
  0x6a   : > { %3010 = vset.pattern.permute.xlu1 %v4423_v4 }
  0x6b   : > { %1196 = vperm.xlu1 %3010, %v3367_v11  }
  0x6f   : > { %3012 = vset.pattern.permute.xlu1 %v4421_v6 }
  0x70   : > { %1378 = vperm.xlu1 %3012, %v3367_v11  }
  0x74   : > { %1382 = vperm.xlu1 %3012, %v3349_v10  }
  0x78   : > { %3014 = vset.pattern.permute.xlu1 %v4419_v2 }
  0x92   : > { %v488_v22 = vpop.permute.xlu0 %487 }
  0x93   : > { %v493_v29 = vmul.f32 %v488_v22, %v3308_v0 }
  0x96   : > { %v490_v43 = vpop.permute.xlu0 %489 }
  0x97   : > { %v494_v22 = vmul.f32 %v490_v43, %v3318_v3 }
  0x9a   : > { %v496_v25 = vpop.permute.xlu0 %495 }
  0xa0   : > { %v734_v48 = vpop.permute.xlu1 %733 }
  0xa1   : > { %v774_v53 = vsub.f32 %v734_v48, %v3413_v35  ;;  %v775_v54 = vsub.f32 %v734_v48, %v3416_v36  ;;  %v776_v55 = vsub.f32 %v734_v48, %v3419_v37  ;;  %v777_v56 = vsub.f32 %v734_v48, %v3422_v38 }
  0xa3   : > { %v778_v61 = vmul.f32 %v774_v53, %v774_v53  ;;  %v779_v62 = vmul.f32 %v775_v54, %v775_v54  ;;  %v780_v63 = vmul.f32 %v776_v55, %v776_v55  ;;  %v781_v1 = vmul.f32 %v777_v56, %v777_v56 }
  0xa4   : > { %v3480_v53 = vrot.slane %v1270_v12, %v3410_v33 }
  0xa5   : > { %v784_v16 = vmul.f32 %v783_v39, %v778_v61  ;;  %v785_v19 = vmul.f32 %v783_v39, %v779_v62  ;;  %v786_v21 = vmul.f32 %v783_v39, %v780_v63  ;;  %v787_v23 = vmul.f32 %v783_v39, %v781_v1  ;;  %v889_v24 = vpop.permute.xlu1 %888 }
  0xa6   : > { %v927_v26 = vsub.f32 %v889_v24, %v3428_v44  ;;  %v928_v27 = vsub.f32 %v889_v24, %v3431_v45  ;;  %v929_v28 = vsub.f32 %v889_v24, %v3434_v46  ;;  %v930_v17 = vsub.f32 %v889_v24, %v3437_v47  ;;  %4483 = vst [vmem:[#allocation12_spill] sm:$0xff] %v3480_v53 }
  0xa7   : > { %v788_v30 = vmul.f32 1.442695, %v784_v16  ;;  %v790_v31 = vmul.f32 1.442695, %v785_v19  ;;  %v792_v32 = vmul.f32 1.442695, %v786_v21  ;;  %v501_v61 = vmul.f32 %v496_v25, %v493_v29 }
  0xa8   : > { %v794_v34 = vmul.f32 1.442695, %v787_v23  ;;  %v931_v41 = vmul.f32 %v927_v26, %v927_v26  ;;  %v932_v39 = vmul.f32 %v928_v27, %v928_v27  ;;  %v933_v42 = vmul.f32 %v929_v28, %v929_v28 }
  0xa9   : > { %3027 = vpow2.f32 %v788_v30  ;;  %v934_v48 = vmul.f32 %v930_v17, %v930_v17  ;;  %v498_v51 = vpop.permute.xlu1 %497 }
  0xaa   : > { %3029 = vpow2.f32 %v790_v31  ;;  %v937_v54 = vmul.f32 %v936_v40, %v931_v41  ;;  %v938_v55 = vmul.f32 %v936_v40, %v932_v39  ;;  %v939_v0 = vmul.f32 %v936_v40, %v933_v42 }
  0xab   : > { %3031 = vpow2.f32 %v792_v32  ;;  %v940_v56 = vmul.f32 %v936_v40, %v934_v48  ;;  %v1071_v62 = vpop.permute.xlu0 %1070  ;;  %v1300_v40 = vstv %s3473_s23  ;;  %v502_v27 = vmul.f32 %v498_v51, %v494_v22 }
  0xac   : > { %3033 = vpow2.f32 %v794_v34  ;;  %v941_v63 = vmul.f32 1.442695, %v937_v54  ;;  %v943_v1 = vmul.f32 1.442695, %v938_v55  ;;  %v945_v16 = vmul.f32 1.442695, %v939_v0 }
  0xad   : > { %v947_v60 = vmul.f32 1.442695, %v940_v56  ;;  %v1109_v12 = vsub.f32 %v1071_v62, %v3440_v49  ;;  %v1110_v19 = vsub.f32 %v1071_v62, %v3443_v50  ;;  %v1111_v21 = vsub.f32 %v1071_v62, %v3454_v58  ;;  %v504_v23 = vpop.permute.xlu1 %503 }
  0xae   : > { %3035 = vpow2.f32 %v941_v63  ;;  %v1112_v3 = vsub.f32 %v1071_v62, %v3457_v59  ;;  %v509_v43 = vmul.f32 %v504_v23, %v501_v61 }
  0xaf   : > { %3037 = vpow2.f32 %v943_v1  ;;  %v1113_v24 = vmul.f32 %v1109_v12, %v1109_v12  ;;  %v1114_v25 = vmul.f32 %v1110_v19, %v1110_v19  ;;  %v1115_v26 = vmul.f32 %v1111_v21, %v1111_v21 }
  0xb0   : > { %3039 = vpow2.f32 %v945_v16  ;;  %v1116_v28 = vmul.f32 %v1112_v3, %v1112_v3  ;;  %v3490_v17 = vmul.f32 %v682_v7, %v509_v43  ;;  %v1253_v29 = vpop.permute.xlu0 %1252 }
  0xb1   : > { %3041 = vpow2.f32 %v947_v60  ;;  %v1119_v30 = vmul.f32 %v3451_v57, %v1113_v24  ;;  %v1120_v31 = vmul.f32 %v3451_v57, %v1114_v25  ;;  %v1121_v32 = vmul.f32 %v3451_v57, %v1115_v26  ;;  %v506_v34 = vpop.permute.xlu1 %505 }
  0xb2   : > { %v1122_v41 = vmul.f32 %v3451_v57, %v1116_v28  ;;  %v1291_v39 = vsub.f32 %v1253_v29, %v3464_v13  ;;  %v1292_v42 = vsub.f32 %v1253_v29, %v3467_v15  ;;  %v1293_v48 = vsub.f32 %v1253_v29, %v3477_v52  ;;  %1438 = vperm.xlu0 %3013, %v3490_v17  }
  0xb3   : > { %v3028_v51 = vpop.eup %3027  ;;  %v1123_v54 = vmul.f32 1.442695, %v1119_v30  ;;  %v1125_v55 = vmul.f32 1.442695, %v1120_v31  ;;  %v1127_v0 = vmul.f32 1.442695, %v1121_v32  ;;  %v1294_v22 = vsub.f32 %v1253_v29, %v3480_v53 }
  0xb4   : > { %v3030_v56 = vpop.eup %3029  ;;  %v1129_v61 = vmul.f32 1.442695, %v1122_v41  ;;  %v1295_v62 = vmul.f32 %v1291_v39, %v1291_v39  ;;  %v1296_v63 = vmul.f32 %v1292_v42, %v1292_v42  ;;  %v1297_v57 = vmul.f32 %v1293_v48, %v1293_v48 }
  0xb5   : > { %v3032_v1 = vpop.eup %3031  ;;  %3043 = vpow2.f32 %v1123_v54  ;;  %v1298_v16 = vmul.f32 %v1294_v22, %v1294_v22  ;;  %v510_v60 = vmul.f32 %v506_v34, %v502_v27  ;;  %v799_v12 = vpop.permute.xlu1 %798 }
  0xb6   : > { %v3034_v19 = vpop.eup %3033  ;;  %3045 = vpow2.f32 %v1125_v55  ;;  %v1301_v21 = vmul.f32 %v1300_v40, %v1295_v62  ;;  %v1302_v23 = vmul.f32 %v1300_v40, %v1296_v63  ;;  %v1303_v3 = vmul.f32 %v1300_v40, %v1297_v57  ;;  %531 = vperm.xlu0 %3013, %v3341_v9  }
  0xb7   : > { %3047 = vpow2.f32 %v1127_v0  ;;  %v1304_v43 = vmul.f32 %v1300_v40, %v1298_v16  ;;  %v3504_v24 = vmul.f32 %v682_v7, %v510_v60  ;;  %v801_v25 = vmul.f32 %v3028_v51, %v799_v12 }
  0xb8   : > { %v3036_v26 = vpop.eup %3035  ;;  %3049 = vpow2.f32 %v1129_v61  ;;  %v1305_v28 = vmul.f32 1.442695, %v1301_v21  ;;  %v1307_v29 = vmul.f32 1.442695, %v1302_v23  ;;  %v1309_v30 = vmul.f32 1.442695, %v1303_v3 }
  0xb9   : > { %v3038_v27 = vpop.eup %3037  ;;  %v1311_v31 = vmul.f32 1.442695, %v1304_v43  ;;  %v802_v32 = vmul.f32 %v3030_v56, %v799_v12  ;;  %v803_v34 = vmul.f32 %v3032_v1, %v799_v12  ;;  %v804_v41 = vmul.f32 %v3034_v19, %v799_v12  ;;  %1443 = vperm.xlu1 %3014, %v3504_v24  }
  0xba   : > { %v3040_v39 = vpop.eup %3039  ;;  %3051 = vpow2.f32 %v1305_v28  ;;  %v805_v42 = vrot.slane %v801_v25, 4  ;;  %v951_v40 = vpop.permute.xlu1 %950  ;;  %542 = vperm.xlu0 %3013, %v3367_v11  }
  0xbb   : > { %v3042_v7 = vpop.eup %3041  ;;  %3053 = vpow2.f32 %v1307_v29  ;;  %v811_v48 = vrot.slane %v802_v32, 4  ;;  %v817_v51 = vrot.slane %v803_v34, 4  ;;  %v823_v54 = vrot.slane %v804_v41, 4 }
  0xbc   : > { %3055 = vpow2.f32 %v1309_v30  ;;  %v806_v55 = vadd.f32 %v805_v42, %v801_v25  ;;  %v953_v0 = vmul.f32 %v3036_v26, %v951_v40  ;;  %v954_v22 = vmul.f32 %v3038_v27, %v951_v40 }
  0xbd   : > { %3057 = vpow2.f32 %v1311_v31  ;;  %v812_v56 = vadd.f32 %v811_v48, %v802_v32  ;;  %v818_v61 = vadd.f32 %v817_v51, %v803_v34  ;;  %v824_v62 = vadd.f32 %v823_v54, %v804_v41  ;;  %526 = vperm.xlu1 %3014, %v3335_v8  }
  0xbe   : > { %v807_v63 = vrot.slane %v806_v55, 2  ;;  %v955_v57 = vmul.f32 %v3040_v39, %v951_v40  ;;  %v956_v1 = vmul.f32 %v3042_v7, %v951_v40  ;;  %v957_v16 = vrot.slane %v953_v0, 4  ;;  %3017 = vset.pattern.permute.xlu0 %v4418_v5 }
  0xbf   : > { %v3044_v60 = vpop.eup %3043  ;;  %v813_v12 = vrot.slane %v812_v56, 2  ;;  %v819_v19 = vrot.slane %v818_v61, 2  ;;  %v825_v21 = vrot.slane %v824_v62, 2  ;;  %v963_v23 = vrot.slane %v954_v22, 4  ;;  %567 = vperm.xlu0 %3017, %v3341_v9  }
  0xc0   : > { %v3046_v3 = vpop.eup %3045  ;;  %v808_v43 = vadd.f32 %v807_v63, %v806_v55  ;;  %v958_v25 = vadd.f32 %v957_v16, %v953_v0  ;;  %v969_v26 = vrot.slane %v955_v57, 4  ;;  %v975_v28 = vrot.slane %v956_v1, 4 }
  0xc1   : > { %v3048_v29 = vpop.eup %3047  ;;  %v814_v30 = vadd.f32 %v813_v12, %v812_v56  ;;  %v820_v27 = vadd.f32 %v819_v19, %v818_v61  ;;  %v826_v31 = vadd.f32 %v825_v21, %v824_v62  ;;  %v964_v32 = vadd.f32 %v963_v23, %v954_v22  ;;  %3015 = vset.pattern.permute.xlu1 %v4418_v5  ;;  %v1133_v62 = vpop.permute.xlu0 %1132 }
  0xc2   : > { %v3050_v34 = vpop.eup %3049  ;;  %v809_v41 = vrot.slane %v808_v43, 1  ;;  %v959_v39 = vrot.slane %v958_v25, 2  ;;  %v970_v42 = vadd.f32 %v969_v26, %v955_v57  ;;  %v976_v40 = vadd.f32 %v975_v28, %v956_v1  ;;  %563 = vperm.xlu1 %3015, %v3335_v8  }
  0xc3   : > { %v815_v7 = vrot.slane %v814_v30, 1  ;;  %v821_v48 = vrot.slane %v820_v27, 1  ;;  %v827_v51 = vrot.slane %v826_v31, 1  ;;  %v965_v54 = vrot.slane %v964_v32, 2  ;;  %581 = vperm.xlu0 %3017, %v3349_v10  }
  0xc4   : > { %v3052_v55 = vpop.eup %3051  ;;  %v810_v0 = vadd.f32 %v809_v41, %v808_v43  ;;  %v960_v56 = vadd.f32 %v959_v39, %v958_v25  ;;  %v971_v61 = vrot.slane %v970_v42, 2  ;;  %v977_v22 = vrot.slane %v976_v40, 2 }
  0xc5   : > { %v3054_v63 = vpop.eup %3053  ;;  %v816_v16 = vadd.f32 %v815_v7, %v814_v30  ;;  %v822_v12 = vadd.f32 %v821_v48, %v820_v27  ;;  %v828_v19 = vadd.f32 %v827_v51, %v826_v31  ;;  %v966_v57 = vadd.f32 %v965_v54, %v964_v32  ;;  %v1315_v48 = vpop.permute.xlu1 %1314 }
  0xc6   : > { %v3056_v1 = vpop.eup %3055  ;;  %v829_v21 = vmul.f32 1.442695, %v810_v0  ;;  %v961_v23 = vrot.slane %v960_v56, 1  ;;  %v972_v26 = vadd.f32 %v971_v61, %v970_v42  ;;  %v978_v28 = vadd.f32 %v977_v22, %v976_v40  ;;  %3016 = vset.pattern.permute.xlu1 %v4423_v4 }
  0xc7   : > { %v3058_v5 = vpop.eup %3057  ;;  %v831_v2 = vmul.f32 1.442695, %v816_v16  ;;  %v833_v6 = vmul.f32 1.442695, %v822_v12  ;;  %v835_v43 = vmul.f32 1.442695, %v828_v19  ;;  %v1135_v25 = vmul.f32 %v3044_v60, %v1133_v62  ;;  %604 = vperm.xlu1 %3016, %v3335_v8   ;;  %3021 = vset.pattern.permute.xlu0 %v4423_v4 }
  0xc8   : > { %3059 = vpow2.f32 %v829_v21  ;;  %v962_v30 = vadd.f32 %v961_v23, %v960_v56  ;;  %v967_v27 = vrot.slane %v966_v57, 1  ;;  %v973_v31 = vrot.slane %v972_v26, 1  ;;  %618 = vperm.xlu0 %3021, %v3367_v11  }
  0xc9   : > { %3061 = vpow2.f32 %v831_v2  ;;  %v979_v32 = vrot.slane %v978_v28, 1  ;;  %v1136_v41 = vmul.f32 %v3046_v3, %v1133_v62  ;;  %v1137_v39 = vmul.f32 %v3048_v29, %v1133_v62 }
  0xca   : > { %3063 = vpow2.f32 %v833_v6  ;;  %v968_v42 = vadd.f32 %v967_v27, %v966_v57  ;;  %v974_v40 = vadd.f32 %v973_v31, %v972_v26  ;;  %v981_v7 = vmul.f32 1.442695, %v962_v30 }
  0xcb   : > { %3065 = vpow2.f32 %v835_v43  ;;  %v980_v60 = vadd.f32 %v979_v32, %v978_v28  ;;  %v1138_v51 = vmul.f32 %v3050_v34, %v1133_v62  ;;  %v1139_v54 = vrot.slane %v1135_v25, 4  ;;  %608 = vperm.xlu1 %3016, %v3341_v9   ;;  %v3522_v43 = vpop.permute.xlu1 %845 }
  0xcc   : > { %3067 = vpow2.f32 %v981_v7  ;;  %v983_v0 = vmul.f32 1.442695, %v968_v42  ;;  %v985_v56 = vmul.f32 1.442695, %v974_v40  ;;  %v1145_v61 = vrot.slane %v1136_v41, 4 }
  0xcd   : > { %v4484_v22 = vmov 3   ;;  %v987_v2 = vmul.f32 1.442695, %v980_v60  ;;  %v1140_v3 = vadd.f32 %v1139_v54, %v1135_v25  ;;  %v1151_v29 = vrot.slane %v1137_v39, 4 }
  0xce   : > { %3024 = vset.pattern.permute.xlu0 %v4484_v22  ;;  %v1157_v6 = vrot.slane %v1138_v51, 4  ;;  %3069 = vpow2.f32 %v983_v0  ;;  %v1146_v16 = vadd.f32 %v1145_v61, %v1136_v41  ;;  %v1317_v12 = vmul.f32 %v3052_v55, %v1315_v48 }
  0xcf   : > { %663 = vperm.xlu0 %3024, %v3349_v10   ;;  %v1318_v19 = vmul.f32 %v3054_v63, %v1315_v48  ;;  %3071 = vpow2.f32 %v985_v56  ;;  %v1141_v34 = vrot.slane %v1140_v3, 2  ;;  %v1152_v62 = vadd.f32 %v1151_v29, %v1137_v39  ;;  %v3532_v56 = vpop.permute.xlu0 %1180 }
  0xd0   : > { %v1158_v57 = vadd.f32 %v1157_v6, %v1138_v51  ;;  %v4485_v21 = vmov 0   ;;  %3073 = vpow2.f32 %v987_v2  ;;  %v1147_v23 = vrot.slane %v1146_v16, 2 }
  0xd1   : > { %3018 = vset.pattern.permute.xlu1 %v4485_v21  ;;  %v1319_v26 = vmul.f32 %v3056_v1, %v1315_v48  ;;  %v1320_v28 = vmul.f32 %v3058_v5, %v1315_v48  ;;  %v1142_v25 = vadd.f32 %v1141_v34, %v1140_v3  ;;  %v1153_v30 = vrot.slane %v1152_v62, 2 }
  0xd2   : > { %547 = vperm.xlu1 %3018, %v3349_v10   ;;  %v1159_v27 = vrot.slane %v1158_v57, 2  ;;  %v1321_v31 = vrot.slane %v1317_v12, 4  ;;  %v3526_v55 = vpop.eup %3059  ;;  %v1148_v63 = vadd.f32 %v1147_v23, %v1146_v16  ;;  %v1327_v32 = vrot.slane %v1318_v19, 4  ;;  %v3540_v23 = vpop.permute.xlu1 %998 }
  0xd3   : > { %3026 = vset.pattern.permute.xlu0 %v4485_v21  ;;  %4486 = vst [vmem:[#allocation13_spill] sm:$0xff] %v3526_v55  ;;  %v1333_v41 = vrot.slane %v1319_v26, 4  ;;  %v1339_v39 = vrot.slane %v1320_v28, 4  ;;  %v3528_v42 = vpop.eup %3061  ;;  %v1143_v1 = vrot.slane %v1142_v25, 1  ;;  %v1154_v5 = vadd.f32 %v1153_v30, %v1152_v62 }
  0xd4   : > { %4487 = vst [vmem:[#allocation14_spill] sm:$0xff] %v3528_v42  ;;  %v1160_v40 = vadd.f32 %v1159_v27, %v1158_v57  ;;  %v1322_v7 = vadd.f32 %v1321_v31, %v1317_v12  ;;  %v3530_v48 = vpop.eup %3063  ;;  %v1149_v60 = vrot.slane %v1148_v63, 1  ;;  %v1328_v51 = vadd.f32 %v1327_v32, %v1318_v19 }
  0xd5   : > { %4488 = vst [vmem:[#allocation15_spill] sm:$0xff] %v3530_v48  ;;  %v1334_v54 = vadd.f32 %v1333_v41, %v1319_v26  ;;  %v1340_v0 = vadd.f32 %v1339_v39, %v1320_v28  ;;  %v4489_v61 = vmov 1   ;;  %v3535_v2 = vpop.eup %3065  ;;  %v1144_v3 = vadd.f32 %v1143_v1, %v1142_v25 }
  0xd6   : > { %3019 = vset.pattern.permute.xlu1 %v4489_v61  ;;  %4490 = vst [vmem:[#allocation16_spill] sm:$0xff] %v3535_v2  ;;  %v1155_v29 = vrot.slane %v1154_v5, 1  ;;  %v1161_v6 = vrot.slane %v1160_v40, 1  ;;  %v1323_v16 = vrot.slane %v1322_v7, 2  ;;  %v3538_v34 = vpop.eup %3067  ;;  %v1150_v12 = vadd.f32 %v1149_v60, %v1148_v63 }
  0xd7   : > { %577 = vperm.xlu1 %3019, %v3367_v11   ;;  %4491 = vst [vmem:[#allocation17_spill] sm:$0xff] %v3538_v34  ;;  %v1329_v62 = vrot.slane %v1328_v51, 2  ;;  %v1335_v57 = vrot.slane %v1334_v54, 2  ;;  %v1341_v19 = vrot.slane %v1340_v0, 2  ;;  %v1163_v30 = vmul.f32 1.442695, %v1144_v3  ;;  %v851_v3 = vpop.permute.xlu0 %850 }
  0xd8   : > { %v1156_v26 = vadd.f32 %v1155_v29, %v1154_v5  ;;  %v1162_v28 = vadd.f32 %v1161_v6, %v1160_v40  ;;  %v1324_v27 = vadd.f32 %v1323_v16, %v1322_v7  ;;  %v3542_v31 = vpop.eup %3069  ;;  %v1165_v25 = vmul.f32 1.442695, %v1150_v12  ;;  %v1003_v12 = vpop.permute.xlu1 %1002 }
  0xd9   : > { %4492 = vst [vmem:[#allocation18_spill] sm:$0xff] %v3542_v31  ;;  %v1330_v32 = vadd.f32 %v1329_v62, %v1328_v51  ;;  %v1336_v41 = vadd.f32 %v1335_v57, %v1334_v54  ;;  %v1342_v39 = vadd.f32 %v1341_v19, %v1340_v0  ;;  %v3544_v1 = vpop.eup %3071  ;;  %3075 = vpow2.f32 %v1163_v30 }
  0xda   : > { %4493 = vst [vmem:[#allocation19_spill] sm:$0xff] %v3544_v1  ;;  %v1167_v61 = vmul.f32 1.442695, %v1156_v26  ;;  %v1169_v63 = vmul.f32 1.442695, %v1162_v28  ;;  %v1325_v60 = vrot.slane %v1324_v27, 1  ;;  %v3547_v4 = vpop.eup %3073  ;;  %3077 = vpow2.f32 %v1165_v25 }
  0xdb   : > { %3020 = vset.pattern.permute.xlu1 %v4484_v22  ;;  %4494 = vst [vmem:[#allocation20_spill] sm:$0xff] %v3547_v4  ;;  %v1331_v5 = vrot.slane %v1330_v32, 1  ;;  %v1337_v40 = vrot.slane %v1336_v41, 1  ;;  %v1343_v7 = vrot.slane %v1342_v39, 1  ;;  %v839_v54 = vmul.f32 %v3526_v55, %v3526_v55 }
  0xdc   : > { %645 = vperm.xlu1 %3020, %v3335_v8   ;;  %3079 = vpow2.f32 %v1167_v61  ;;  %v1326_v51 = vadd.f32 %v1325_v60, %v1324_v27  ;;  %v840_v0 = vmul.f32 %v3528_v42, %v3528_v42  ;;  %v841_v57 = vmul.f32 %v3530_v48, %v3530_v48 }
  0xdd   : > { %3081 = vpow2.f32 %v1169_v63  ;;  %v1332_v29 = vadd.f32 %v1331_v5, %v1330_v32  ;;  %v1338_v6 = vadd.f32 %v1337_v40, %v1336_v41  ;;  %v1344_v16 = vadd.f32 %v1343_v7, %v1342_v39  ;;  %v869_v63 = vpop.permute.xlu0 %868 }
  0xde   : > { %v1345_v62 = vmul.f32 1.442695, %v1326_v51  ;;  %v842_v8 = vmul.f32 %v3535_v2, %v3535_v2  ;;  %v3559_v30 = vadd.f32 %v3522_v43, %v839_v54  ;;  %v3563_v27 = vadd.f32 %v3522_v43, %v840_v0  ;;  %v1185_v51 = vpop.permute.xlu1 %1184 }
  0xdf   : > { %v1347_v19 = vmul.f32 1.442695, %v1332_v29  ;;  %v1349_v26 = vmul.f32 1.442695, %v1338_v6  ;;  %v1351_v28 = vmul.f32 1.442695, %v1344_v16  ;;  %v3566_v25 = vadd.f32 %v3522_v43, %v841_v57 }
  0xe0   : > { %649 = vperm.xlu1 %3020, %v3341_v9   ;;  %3083 = vpow2.f32 %v1345_v62  ;;  %v3569_v32 = vadd.f32 %v3522_v43, %v842_v8  ;;  %v3571_v41 = vadd.f32 %v851_v3, %v839_v54  ;;  %v3573_v39 = vadd.f32 %v851_v3, %v840_v0 }
  0xe1   : > { %3085 = vpow2.f32 %v1347_v19  ;;  %v3575_v61 = vadd.f32 %v851_v3, %v841_v57  ;;  %v993_v9 = vmul.f32 %v3538_v34, %v3538_v34  ;;  %v994_v60 = vmul.f32 %v3542_v31, %v3542_v31 }
  0xe2   : > { %4495 = vst [vmem:[#allocation21_spill] sm:$0xff] %v3573_v39  ;;  %3087 = vpow2.f32 %v1349_v26  ;;  %v995_v5 = vmul.f32 %v3544_v1, %v3544_v1  ;;  %v996_v43 = vmul.f32 %v3547_v4, %v3547_v4  ;;  %v875_v40 = vsub.f32 %v869_v63, %v3413_v35 }
  0xe3   : > { %4496 = vst [vmem:[#allocation22_spill] sm:$0xff] %v3575_v61  ;;  %3089 = vpow2.f32 %v1351_v28  ;;  %v876_v7 = vsub.f32 %v869_v63, %v3416_v36  ;;  %v4497_v54 = vmov 2   ;;  %v3588_v0 = vpop.eup %3075  ;;  %v3591_v29 = vadd.f32 %v3540_v23, %v993_v9 }
  0xe4   : > { %3022 = vset.pattern.permute.xlu1 %v4497_v54  ;;  %4498 = vst [vmem:[#allocation23_spill] sm:$0xff] %v3588_v0  ;;  %v3594_v6 = vadd.f32 %v3540_v23, %v994_v60  ;;  %v3597_v16 = vadd.f32 %v3540_v23, %v995_v5  ;;  %v1009_v62 = vadd.f32 %v1003_v12, %v993_v9  ;;  %v3600_v57 = vpop.eup %3077 }
  0xe5   : > { %622 = vperm.xlu1 %3022, %v3349_v10   ;;  %4499 = vst [vmem:[#allocation24_spill] sm:$0xff] %v3600_v57  ;;  %v1175_v19 = vmul.f32 %v3588_v0, %v3588_v0  ;;  %v3605_v26 = vadd.f32 %v3540_v23, %v996_v43  ;;  %v1010_v28 = vadd.f32 %v1003_v12, %v994_v60  ;;  %v1363_v0 = vpop.permute.xlu0 %1362 }
  0xe6   : > { %v1011_v54 = vadd.f32 %v1003_v12, %v995_v5  ;;  %v3607_v33 = vpop.eup %3079  ;;  %v1176_v20 = vmul.f32 %v3600_v57, %v3600_v57  ;;  %v3613_v9 = vmul.f32 %v3591_v29, %v3559_v30  ;;  %v3617_v10 = vmul.f32 %v3594_v6, %v3563_v27 }
  0xe7   : > { %4500 = vst [vmem:[#allocation25_spill] sm:$0xff] %v3607_v33  ;;  %v3621_v18 = vmul.f32 %v3597_v16, %v3566_v25  ;;  %v3623_v23 = vpop.eup %3081  ;;  %v1177_v60 = vmul.f32 %v3607_v33, %v3607_v33  ;;  %v3627_v5 = vadd.f32 %v851_v3, %v842_v8  ;;  %v3631_v14 = vmul.f32 %v3605_v26, %v3569_v32 }
  0xe8   : > { %4501 = vst [vmem:[#allocation26_spill] sm:$0xff] %v3613_v9  ;;  %4502 = vst [vmem:[#allocation27_spill] sm:$0xff] %v3617_v10  ;;  %v1012_v57 = vadd.f32 %v1003_v12, %v996_v43  ;;  %v1178_v4 = vmul.f32 %v3623_v23, %v3623_v23  ;;  %v3636_v2 = vadd.f32 %v3532_v56, %v1175_v19 }
  0xe9   : > { %4503 = vst [vmem:[#allocation28_spill] sm:$0xff] %v3621_v18  ;;  %4504 = vst [vmem:[#allocation29_spill] sm:$0xff] %v3623_v23  ;;  %v1065_v1 = vmul.f32 %v1009_v62, %v3571_v41  ;;  %v3640_v48 = vmul.f32 %v1010_v28, %v3573_v39  ;;  %3023 = vset.pattern.permute.xlu1 %v4484_v22  ;;  %v3644_v3 = vadd.f32 %v3532_v56, %v1176_v20  ;;  %v864_v23 = vpop.permute.xlu1 %863 }
  0xea   : > { %4505 = vst [vmem:[#allocation30_spill] sm:$0xff] %v3627_v5  ;;  %4506 = vst [vmem:[#allocation31_spill] sm:$0xff] %v3631_v14  ;;  %v1067_v8 = vmul.f32 %v1011_v54, %v3575_v61  ;;  %v1068_v12 = vmul.f32 %v1012_v57, %v3627_v5  ;;  %v877_v43 = vsub.f32 %v869_v63, %v3419_v37  ;;  %659 = vperm.xlu1 %3023, %v3367_v11   ;;  %v3650_v33 = vpop.eup %3083 }
  0xeb   : > { %4507 = vst [vmem:[#allocation32_spill] sm:$0xff] %v3644_v3  ;;  %4508 = vst [vmem:[#allocation33_spill] sm:$0xff] %v3650_v33  ;;  %v3653_v31 = vadd.f32 %v3532_v56, %v1177_v60  ;;  %v878_v42 = vsub.f32 %v869_v63, %v3422_v38  ;;  %v883_v22 = vmul.f32 %v875_v40, %v875_v40  ;;  %v3656_v55 = vpop.eup %3085 }
  0xec   : > { %v884_v34 = vmul.f32 %v876_v7, %v876_v7  ;;  %4510 = vst [vmem:[#allocation35_spill] sm:$0xff] %v3656_v55  ;;  %v885_v53 = vmul.f32 %v877_v43, %v877_v43  ;;  %v3658_v52 = vadd.f32 %v1185_v51, %v1175_v19  ;;  %v3660_v15 = vadd.f32 %v1185_v51, %v1176_v20  ;;  %v3664_v5 = vpop.eup %3087 }
  0xed   : > { %4509 = vst [vmem:[#allocation34_spill] sm:$0xff] %v3653_v31  ;;  %v3662_v13 = vadd.f32 %v1185_v51, %v1177_v60  ;;  %4511 = vst [vmem:[#allocation36_spill] sm:$0xff] %v3664_v5  ;;  %v3667_v11 = vadd.f32 %v3532_v56, %v1178_v4  ;;  %v886_v61 = vmul.f32 %v878_v42, %v878_v42  ;;  %v3671_v63 = vpop.eup %3089  ;;  %v1201_v60 = vpop.permute.xlu0 %1200 }
  0xee   : > { %v3669_v39 = vmul.f32 %v1009_v62, %v883_v22  ;;  %4513 = vst [vmem:[#allocation38_spill] sm:$0xff] %v3671_v63  ;;  %v3673_v40 = vmul.f32 %v1010_v28, %v884_v34  ;;  %v3675_v7 = vmul.f32 %v1011_v54, %v885_v53  ;;  %v3677_v19 = vadd.f32 %v1185_v51, %v1178_v4  ;;  %v1015_v51 = vpop.permute.xlu1 %1014 }
  0xef   : > { %4512 = vst [vmem:[#allocation37_spill] sm:$0xff] %v3667_v11  ;;  %v3680_v20 = vmul.f32 %v3658_v52, %v1065_v1  ;;  %3025 = vset.pattern.permute.xlu1 %v4485_v21  ;;  %v3683_v43 = vmul.f32 %v1012_v57, %v886_v61  ;;  %v3687_v42 = vmul.f32 %v3660_v15, %v3640_v48 }
  0xf0   : > { %v3690_v56 = vmul.f32 %v3662_v13, %v1067_v8  ;;  %v3694_v53 = vmul.f32 %v3636_v2, %v3613_v9  ;;  %687 = vperm.xlu1 %3025, %v3490_v17   ;;  %v3699_v4 = vmul.f32 %v3644_v3, %v3617_v10  ;;  %v3703_v21 = vmul.f32 %v3653_v31, %v3621_v18 }
  0xf1   : > { %v3707_v34 = vmul.f32 %v3650_v33, %v3650_v33  ;;  %v3711_v61 = vmul.f32 %v3656_v55, %v3656_v55  ;;  %v3715_v17 = vmul.f32 %v3664_v5, %v3664_v5  ;;  %v3719_v62 = vmul.f32 %v3671_v63, %v3671_v63 }
  0xf2   : > { %4514 = vst [vmem:[#allocation39_spill] sm:$0xff] %v3694_v53  ;;  %4515 = vst [vmem:[#allocation40_spill] sm:$0xff] %v3699_v4  ;;  %v1207_v57 = vsub.f32 %v1201_v60, %v3440_v49  ;;  %v1208_v28 = vsub.f32 %v1201_v60, %v3443_v50  ;;  %v1209_v55 = vsub.f32 %v1201_v60, %v3454_v58 }
  0xf3   : > { %4516 = vst [vmem:[#allocation41_spill] sm:$0xff] %v3703_v21  ;;  %v3724_v54 = vadd.f32 %v1363_v0, %v3707_v34  ;;  %v3727_v22 = vadd.f32 %v1363_v0, %v3711_v61  ;;  %v1210_v33 = vsub.f32 %v1201_v60, %v3457_v59  ;;  %v3733_v5 = vmul.f32 %v3667_v11, %v3631_v14 }
  0xf4   : > { %v3736_v63 = vadd.f32 %v1363_v0, %v3715_v17  ;;  %v3739_v18 = vadd.f32 %v1363_v0, %v3719_v62  ;;  %v1215_v10 = vmul.f32 %v1207_v57, %v1207_v57  ;;  %692 = vperm.xlu1 %3025, %v3504_v24   ;;  %v1217_v60 = vmul.f32 %v1209_v55, %v1209_v55  ;;  %v1019_v55 = vpop.permute.xlu1 %1018 }
  0xf5   : > { %4517 = vst [vmem:[#allocation42_spill] sm:$0xff] %v3724_v54  ;;  %4518 = vst [vmem:[#allocation43_spill] sm:$0xff] %v3733_v5  ;;  %v1425_v9 = vmul.f32 %v3724_v54, %v3694_v53  ;;  %v1426_v31 = vmul.f32 %v3727_v22, %v3699_v4  ;;  %v1218_v3 = vmul.f32 %v1210_v33, %v1210_v33 }
  0xf6   : > { %4519 = vst [vmem:[#allocation44_spill] sm:$0xff] %v3736_v63  ;;  %v3747_v14 = vmul.f32 %v3677_v19, %v1068_v12  ;;  %v1427_v11 = vmul.f32 %v3736_v63, %v3703_v21  ;;  %v3753_v0 = vmul.f32 %v3739_v18, %v3733_v5  ;;  %v3755_v57 = vmul.f32 %v1208_v28, %v1208_v28 }
  0xf7   : > { %v3757_v24 = vmul.f32 %v1215_v10, %v1065_v1  ;;  %v3759_v53 = vmul.f32 %v1217_v60, %v1067_v8  ;;  %v3761_v54 = vmul.f32 %v1218_v3, %v1068_v12  ;;  %v871_v33 = vsub.f32 %v864_v23, %v3413_v35 }
  0xf8   : > { %3091 = vrcp.f32 %v1425_v9  ;;  %v872_v4 = vsub.f32 %v864_v23, %v3416_v36  ;;  %v873_v21 = vsub.f32 %v864_v23, %v3419_v37  ;;  %v874_v63 = vsub.f32 %v864_v23, %v3422_v38 }
  0xf9   : > { %3093 = vrcp.f32 %v1426_v31  ;;  %v879_v5 = vmul.f32 %v871_v33, %v871_v33  ;;  %v1021_v28 = vsub.f32 %v1015_v51, %v3428_v44  ;;  %v1022_v1 = vsub.f32 %v1015_v51, %v3431_v45 }
  0xfa   : > { %3095 = vrcp.f32 %v1427_v11  ;;  %v880_v10 = vmul.f32 %v872_v4, %v872_v4  ;;  %v881_v3 = vmul.f32 %v873_v21, %v873_v21  ;;  %v882_v8 = vmul.f32 %v874_v63, %v874_v63  ;;  %v1367_v4 = vpop.permute.xlu1 %1366 }
  0xfb   : > { %v1037_v35 = vmul.f32 %v3591_v29, %v879_v5  ;;  %v1023_v9 = vsub.f32 %v1015_v51, %v3434_v46  ;;  %v1024_v36 = vsub.f32 %v1015_v51, %v3437_v47  ;;  %v1029_v12 = vmul.f32 %v1021_v28, %v1021_v28 }
  0xfc   : > { %v1038_v37 = vmul.f32 %v3594_v6, %v880_v10  ;;  %v1039_v38 = vmul.f32 %v3597_v16, %v881_v3  ;;  %v1040_v31 = vmul.f32 %v3605_v26, %v882_v8  ;;  %v1030_v23 = vmul.f32 %v1022_v1, %v1022_v1 }
  0xfd   : > { %v1031_v60 = vmul.f32 %v1023_v9, %v1023_v9  ;;  %v1032_v33 = vmul.f32 %v1024_v36, %v1024_v36  ;;  %v1045_v11 = vmul.f32 %v1029_v12, %v3559_v30  ;;  %v1025_v63 = vsub.f32 %v1019_v55, %v3428_v44  ;;  %v4522_v36 = vld [vmem:[#allocation30_spill] sm:$0xff] }
  0xfe   : > { %v1046_v29 = vmul.f32 %v1030_v23, %v3563_v27  ;;  %v1026_v5 = vsub.f32 %v1019_v55, %v3431_v45  ;;  %v1027_v21 = vsub.f32 %v1019_v55, %v3434_v46  ;;  %v1028_v6 = vsub.f32 %v1019_v55, %v3437_v47  ;;  %v4520_v46 = vld [vmem:[#allocation21_spill] sm:$0xff]  ;;  %v4521_v55 = vld [vmem:[#allocation22_spill] sm:$0xff] }
  0xff   : > { %v1047_v16 = vmul.f32 %v1031_v60, %v3566_v25  ;;  %v1048_v26 = vmul.f32 %v1032_v33, %v3569_v32  ;;  %v1053_v51 = vadd.f32 %v1045_v11, %v1037_v35  ;;  %v1033_v28 = vmul.f32 %v1025_v63, %v1025_v63 }
 0x100   : > { %v1054_v1 = vadd.f32 %v1046_v29, %v1038_v37  ;;  %v1034_v10 = vmul.f32 %v1026_v5, %v1026_v5  ;;  %v1035_v30 = vmul.f32 %v1027_v21, %v1027_v21  ;;  %v1036_v3 = vmul.f32 %v1028_v6, %v1028_v6 }
 0x101   : > { %v1055_v44 = vadd.f32 %v1047_v16, %v1039_v38  ;;  %v1056_v8 = vadd.f32 %v1048_v26, %v1040_v31  ;;  %v1049_v27 = vmul.f32 %v1033_v28, %v3571_v41  ;;  %v1373_v45 = vadd.f32 %v1367_v4, %v3707_v34  ;;  %v1197_v31 = vpop.permute.xlu1 %1196  ;;  %v4523_v16 = vld [vmem:[#allocation32_spill] sm:$0xff] }
 0x102   : > { %v3785_v9 = vpop.eup %3091  ;;  %v1050_v47 = vmul.f32 %v1034_v10, %v4520_v46  ;;  %v1051_v25 = vmul.f32 %v1035_v30, %v4521_v55  ;;  %v1052_v32 = vmul.f32 %v1036_v3, %v4522_v36  ;;  %v1374_v35 = vadd.f32 %v1367_v4, %v3711_v61  ;;  %v4525_v10 = vld [vmem:[#allocation37_spill] sm:$0xff]  ;;  %v4526_v3 = vld [vmem:[#allocation26_spill] sm:$0xff]  ;;  %v4528_v46 = vld [vmem:[#allocation28_spill] sm:$0xff] }
 0x103   : > { %v3791_v12 = vpop.eup %3093  ;;  %v1057_v37 = vadd.f32 %v1049_v27, %v3669_v39  ;;  %v3795_v38 = vadd.f32 %v1367_v4, %v3715_v17  ;;  %v3798_v41 = vadd.f32 %v1367_v4, %v3719_v62  ;;  %v1429_v34 = vmul.f32 %v1373_v45, %v3680_v20  ;;  %v4527_v27 = vld [vmem:[#allocation27_spill] sm:$0xff] }
 0x104   : > { %v3801_v23 = vpop.eup %3095  ;;  %v1058_v60 = vadd.f32 %v1050_v47, %v3673_v40  ;;  %v1059_v33 = vadd.f32 %v1051_v25, %v3675_v7  ;;  %v1060_v61 = vadd.f32 %v1052_v32, %v3683_v43  ;;  %v1430_v11 = vmul.f32 %v1374_v35, %v3687_v42  ;;  %v4530_v25 = vld [vmem:[#allocation9_spill] sm:$0xff]  ;;  %v4531_v32 = vld [vmem:[#allocation10_spill] sm:$0xff] }
 0x105   : > { %3097 = vrcp.f32 %v3753_v0  ;;  %v1232_v39 = vmul.f32 %v3755_v57, %v3640_v48  ;;  %v1223_v17 = vmul.f32 %v3658_v52, %v1057_v37  ;;  %v1431_v62 = vmul.f32 %v3795_v38, %v3690_v56 }
 0x106   : > { %v1224_v63 = vmul.f32 %v3660_v15, %v1058_v60  ;;  %v1225_v40 = vmul.f32 %v3662_v13, %v1059_v33  ;;  %v1226_v7 = vmul.f32 %v3677_v19, %v1060_v61  ;;  %v1432_v43 = vmul.f32 %v3798_v41, %v3747_v14 }
 0x107   : > { %v1239_v4 = vadd.f32 %v3757_v24, %v1223_v17  ;;  %3099 = vrcp.f32 %v1429_v34  ;;  %v1203_v0 = vsub.f32 %v1197_v31, %v3440_v49  ;;  %v1204_v48 = vsub.f32 %v1197_v31, %v3443_v50  ;;  %v1379_v24 = vpop.permute.xlu1 %1378  ;;  %v4533_v34 = vld [vmem:[#allocation12_spill] sm:$0xff] }
 0x108   : > { %v1240_v52 = vadd.f32 %v1232_v39, %v1224_v63  ;;  %v3822_v57 = vadd.f32 %v3759_v53, %v1225_v40  ;;  %v3825_v15 = vadd.f32 %v3761_v54, %v1226_v7  ;;  %3101 = vrcp.f32 %v1430_v11  ;;  %v4524_v54 = vld [vmem:[#allocation34_spill] sm:$0xff] }
 0x109   : > { %3103 = vrcp.f32 %v1431_v62  ;;  %v1205_v13 = vsub.f32 %v1197_v31, %v3454_v58  ;;  %v1206_v19 = vsub.f32 %v1197_v31, %v3457_v59  ;;  %v1211_v29 = vmul.f32 %v1203_v0, %v1203_v0  ;;  %v4534_v62 = vld [vmem:[#allocation42_spill] sm:$0xff] }
 0x10a   : > { %v1405_v5 = vmul.f32 %v1373_v45, %v1239_v4  ;;  %v1406_v21 = vmul.f32 %v1374_v35, %v1240_v52  ;;  %3105 = vrcp.f32 %v1432_v43  ;;  %v1212_v49 = vmul.f32 %v1204_v48, %v1204_v48  ;;  %v4529_v45 = vld [vmem:[#allocation31_spill] sm:$0xff]  ;;  %v4535_v43 = vld [vmem:[#allocation44_spill] sm:$0xff] }
 0x10b   : > { %v1213_v50 = vmul.f32 %v1205_v13, %v1205_v13  ;;  %v1214_v6 = vmul.f32 %v1206_v19, %v1206_v19  ;;  %v1219_v53 = vmul.f32 %v3636_v2, %v1053_v51  ;;  %v1220_v26 = vmul.f32 %v4523_v16, %v1054_v1  ;;  %v4532_v51 = vld [vmem:[#allocation11_spill] sm:$0xff]  ;;  %v1383_v11 = vpop.permute.xlu1 %1382  ;;  %v4537_v13 = vld [vmem:[#allocation40_spill] sm:$0xff] }
 0x10c   : > { %v1221_v28 = vmul.f32 %v4524_v54, %v1055_v44  ;;  %v1222_v30 = vmul.f32 %v4525_v10, %v1056_v8  ;;  %v1227_v58 = vmul.f32 %v1211_v29, %v4526_v3  ;;  %v1228_v59 = vmul.f32 %v1212_v49, %v4527_v27  ;;  %v4536_v48 = vld [vmem:[#allocation39_spill] sm:$0xff] }
 0x10d   : > { %v1229_v47 = vmul.f32 %v1213_v50, %v4528_v46  ;;  %v1230_v55 = vmul.f32 %v1214_v6, %v4529_v45  ;;  %v1385_v36 = vsub.f32 %v1379_v24, %v4530_v25  ;;  %v1386_v35 = vsub.f32 %v1379_v24, %v4531_v32  ;;  %v4539_v50 = vld [vmem:[#allocation43_spill] sm:$0xff] }
 0x10e   : > { %v1235_v37 = vadd.f32 %v1227_v58, %v1219_v53  ;;  %v1236_v2 = vadd.f32 %v1228_v59, %v1220_v26  ;;  %v1387_v1 = vsub.f32 %v1379_v24, %v4532_v51  ;;  %v1388_v44 = vsub.f32 %v1379_v24, %v4533_v34  ;;  %v4538_v24 = vld [vmem:[#allocation41_spill] sm:$0xff] }
 0x10f   : > { %v3841_v31 = vpop.eup %3097  ;;  %v1237_v8 = vadd.f32 %v1229_v47, %v1221_v28  ;;  %v1238_v60 = vadd.f32 %v1230_v55, %v1222_v30  ;;  %v1393_v33 = vmul.f32 %v1385_v36, %v1385_v36  ;;  %v1394_v61 = vmul.f32 %v1386_v35, %v1386_v35 }
 0x110   : > { %v1395_v39 = vmul.f32 %v1387_v1, %v1387_v1  ;;  %v1396_v17 = vmul.f32 %v1388_v44, %v1388_v44  ;;  %v1401_v63 = vmul.f32 %v4534_v62, %v1235_v37  ;;  %v1402_v40 = vmul.f32 %v3727_v22, %v1236_v2 }
 0x111   : > { %v3845_v7 = vpop.eup %3099  ;;  %v1403_v4 = vmul.f32 %v4535_v43, %v1237_v8  ;;  %v1404_v0 = vmul.f32 %v3739_v18, %v1238_v60  ;;  %v1409_v52 = vmul.f32 %v1393_v33, %v4536_v48  ;;  %v1410_v19 = vmul.f32 %v1394_v61, %v4537_v13  ;;  %v4541_v33 = vld [vmem:[#allocation17_spill] sm:$0xff] }
 0x112   : > { %v3851_v29 = vpop.eup %3101  ;;  %v1411_v49 = vmul.f32 %v1395_v39, %v4538_v24  ;;  %v1412_v6 = vmul.f32 %v1396_v17, %v4539_v50  ;;  %v1389_v53 = vsub.f32 %v1383_v11, %v4530_v25  ;;  %v1390_v22 = vsub.f32 %v1383_v11, %v4531_v32  ;;  %v4547_v39 = vld [vmem:[#allocation20_spill] sm:$0xff] }
 0x113   : > { %v3857_v16 = vpop.eup %3103  ;;  %v1417_v26 = vadd.f32 %v1409_v52, %v1401_v63  ;;  %v1418_v54 = vadd.f32 %v1410_v19, %v1402_v40  ;;  %v1391_v18 = vsub.f32 %v1383_v11, %v4532_v51  ;;  %v1392_v28 = vsub.f32 %v1383_v11, %v4533_v34  ;;  %v4546_v11 = vld [vmem:[#allocation16_spill] sm:$0xff] }
 0x114   : > { %v3861_v10 = vpop.eup %3105  ;;  %v1419_v30 = vadd.f32 %v1411_v49, %v1403_v4  ;;  %v1420_v3 = vadd.f32 %v1412_v6, %v1404_v0  ;;  %v1397_v58 = vmul.f32 %v1389_v53, %v1389_v53  ;;  %v1398_v27 = vmul.f32 %v1390_v22, %v1390_v22  ;;  %v4548_v22 = vld [vmem:[#allocation23_spill] sm:$0xff] }
 0x115   : > { %v1526_v59 = vmul.f32 %v3785_v9, %v1417_v26  ;;  %v1527_v46 = vmul.f32 %v3791_v12, %v1418_v54  ;;  %v1399_v47 = vmul.f32 %v1391_v18, %v1391_v18  ;;  %v1400_v45 = vmul.f32 %v1392_v28, %v1392_v28  ;;  %v4549_v54 = vld [vmem:[#allocation24_spill] sm:$0xff]  ;;  %v4550_v28 = vld [vmem:[#allocation25_spill] sm:$0xff] }
 0x116   : > { %v1528_v55 = vmul.f32 %v3801_v23, %v1419_v30  ;;  %v1529_v25 = vmul.f32 %v3841_v31, %v1420_v3  ;;  %v1413_v36 = vmul.f32 %v1397_v58, %v3680_v20  ;;  %v1414_v32 = vmul.f32 %v1398_v27, %v3687_v42  ;;  %v4551_v3 = vld [vmem:[#allocation29_spill] sm:$0xff] }
 0x117   : > { %v1407_v35 = vmul.f32 %v3795_v38, %v3822_v57  ;;  %v1408_v37 = vmul.f32 %v3798_v41, %v3825_v15  ;;  %v1415_v2 = vmul.f32 %v1399_v47, %v3690_v56  ;;  %v1416_v51 = vmul.f32 %v1400_v45, %v3747_v14  ;;  %v4540_v57 = vld [vmem:[#allocation13_spill] sm:$0xff]  ;;  %v4542_v15 = vld [vmem:[#allocation14_spill] sm:$0xff]  ;;  %v4544_v14 = vld [vmem:[#allocation15_spill] sm:$0xff] }
 0x118   : > { %v1421_v1 = vadd.f32 %v1413_v36, %v1405_v5  ;;  %v1422_v34 = vadd.f32 %v1414_v32, %v1406_v21  ;;  %v989_v41 = vmul.f32 %v4541_v33, %v4540_v57  ;;  %v4543_v56 = vld [vmem:[#allocation18_spill] sm:$0xff]  ;;  %v4545_v5 = vld [vmem:[#allocation19_spill] sm:$0xff]  ;;  %v992_v17 = vmul.f32 %v4547_v39, %v4546_v11  ;;  %v3910_v27 = vld [vmem:[%s4410_s4] sm:$0xf] }
 0x119   : > { %v1423_v44 = vadd.f32 %v1415_v2, %v1407_v35  ;;  %v1424_v8 = vadd.f32 %v1416_v51, %v1408_v37  ;;  %v990_v61 = vmul.f32 %v4543_v56, %v4542_v15  ;;  %v991_v21 = vmul.f32 %v4545_v5, %v4544_v14  ;;  %v4553_v45 = vld [vmem:[#allocation35_spill] sm:$0xff]  ;;  %v4555_v32 = vld [vmem:[#allocation38_spill] sm:$0xff]  ;;  %v483_v11 = vld [vmem:[%s455_s15] sm:$0xf] }
 0x11a   : > { %v1530_v60 = vmul.f32 %v3845_v7, %v1421_v1  ;;  %v1531_v20 = vmul.f32 %v3851_v29, %v1422_v34  ;;  %v1534_v62 = vsub.f32 0.0, %v1526_v59  ;;  %v1535_v63 = vsub.f32 0.0, %v1527_v46  ;;  %v4552_v46 = vld [vmem:[#allocation33_spill] sm:$0xff]  ;;  %v4557_v14 = vld [vmem:[#allocation6_spill] sm:$0xff] }
 0x11b   : > { %v1532_v42 = vmul.f32 %v3857_v16, %v1423_v44  ;;  %v1533_v38 = vmul.f32 %v3861_v10, %v1424_v8  ;;  %v1536_v40 = vsub.f32 0.0, %v1528_v55  ;;  %v4472_v43 = vmov 0.0  }
 0x11c   : > { %519 = vst.msk [vmem:[%s3895_s27] sm:$0xff] %vm518_vm0, %v4472_v43  ;;  %520 = vst.msk [vmem:[%s3895_s27 + $0x8] sm:$0xff] %vm518_vm0, %v4472_v43  ;;  %v1537_v4 = vsub.f32 0.0, %v1529_v25  ;;  %v1542_v0 = vmul.f32 1.442695, %v1534_v62  ;;  %v1538_v52 = vsub.f32 0.0, %v1530_v60  ;;  %v1171_v26 = vmul.f32 %v4548_v22, %v989_v41 }
 0x11d   : > { %v1544_v48 = vmul.f32 1.442695, %v1535_v63  ;;  %v1546_v13 = vmul.f32 1.442695, %v1536_v40  ;;  %v1539_v24 = vsub.f32 0.0, %v1531_v20  ;;  %v1540_v49 = vsub.f32 0.0, %v1532_v42 }
 0x11e   : > { %v1548_v19 = vmul.f32 1.442695, %v1537_v4  ;;  %3107 = vpow2.f32 %v1542_v0  ;;  %v1550_v50 = vmul.f32 1.442695, %v1538_v52  ;;  %v1541_v6 = vsub.f32 0.0, %v1533_v38  ;;  %v4554_v25 = vld [vmem:[#allocation36_spill] sm:$0xff] }
 0x11f   : > { %3109 = vpow2.f32 %v1544_v48  ;;  %v1552_v53 = vmul.f32 1.442695, %v1539_v24  ;;  %v1172_v18 = vmul.f32 %v4549_v54, %v990_v61  ;;  %v1173_v30 = vmul.f32 %v4550_v28, %v991_v21  ;;  %v475_v41 = vld [vmem:[%s4408_s2] sm:$0xf] }
 0x120   : > { %3111 = vpow2.f32 %v1546_v13  ;;  %v1174_v58 = vmul.f32 %v4551_v3, %v992_v17  ;;  %v1554_v59 = vmul.f32 1.442695, %v1540_v49  ;;  %v1353_v47 = vmul.f32 %v4552_v46, %v1171_v26  ;;  %v4558_v17 = vld [vmem:[#allocation7_spill] sm:$0xff]  ;;  %v4559_v49 = vld [vmem:[#allocation8_spill] sm:$0xff] }
 0x121   : > { %3113 = vpow2.f32 %v1548_v19  ;;  %v1354_v55 = vmul.f32 %v4553_v45, %v1172_v18  ;;  %v1355_v36 = vmul.f32 %v4554_v25, %v1173_v30  ;;  %v1556_v37 = vmul.f32 1.442695, %v1541_v6 }
 0x122   : > { %3115 = vpow2.f32 %v1550_v50  ;;  %v1356_v35 = vmul.f32 %v4555_v32, %v1174_v58  ;;  %v523_v51 = vmul.f32 %v3910_v27, %v3910_v27  ;;  %v559_v60 = vrot.slane %v3910_v27, 1 }
 0x123   : > { %3117 = vpow2.f32 %v1552_v53  ;;  %v3958_v21 = vrot.slane %v475_v41, %v4557_v14  ;;  %v600_v40 = vrot.slane %v3910_v27, 2  ;;  %v3970_v24 = vrot.slane %v475_v41, %v4558_v17 }
 0x124   : > { %3119 = vpow2.f32 %v1554_v59  ;;  %v3955_v5 = vrot.slane %v523_v51, %v4557_v14  ;;  %v3962_v62 = vrot.slane %v523_v51, %v4558_v17  ;;  %v561_v63 = vmul.f32 %v559_v60, %v3910_v27 }
 0x125   : > { %3121 = vpow2.f32 %v1556_v37  ;;  %v3973_v50 = vrot.slane %v475_v41, %v4559_v49  ;;  %v3990_v18 = vrot.slane %v483_v11, %v4557_v14  ;;  %v3996_v3 = vrot.slane %v483_v11, %v4558_v17 }
 0x126   : > { %v3999_v58 = vrot.slane %v483_v11, %v4559_v49  ;;  %v4008_v59 = vmul.f32 %v600_v40, %v561_v63 }
 0x128   : > { %v3919_v20 = vpop.eup %3107 }
 0x129   : > { %v3940_v15 = vpop.eup %3109 }
 0x131   : > { %v1439_v2 = vpop.permute.xlu0 %1438 }
 0x132   : > { %v1446_v1 = vmul.f32 %v1439_v2, %v1353_v47  ;;  %v1447_v34 = vmul.f32 %v1439_v2, %v1354_v55  ;;  %v1448_v44 = vmul.f32 %v1439_v2, %v1355_v36  ;;  %v1449_v8 = vmul.f32 %v1439_v2, %v1356_v35 }
 0x134   : > { %v3922_v42 = vmul.f32 %v3785_v9, %v1446_v1  ;;  %v3925_v38 = vmul.f32 %v3791_v12, %v1447_v34  ;;  %v3928_v57 = vmul.f32 %v3801_v23, %v1448_v44  ;;  %v3931_v33 = vmul.f32 %v3841_v31, %v1449_v8  ;;  %v3942_v12 = vpop.eup %3111  ;;  %v4556_v23 = vld [vmem:[#allocation5_spill] sm:$0xff] }
 0x135   : > { %v532_v9 = vpop.permute.xlu0 %531  ;;  %v3946_v56 = vrot.slane %v523_v51, %v4556_v23  ;;  %v3948_v31 = vpop.eup %3113  ;;  %v3952_v61 = vrot.slane %v475_v41, %v4556_v23  ;;  %v3976_v6 = vrot.slane %v483_v11, %v4556_v23 }
 0x136   : > { %3123 = vrsqrt.f32 %v3922_v42  ;;  %v3966_v4 = vpop.eup %3115  ;;  %vm1479_vm1 = vcmp.eq.f32.partialorder %v3925_v38, inf  ;;  %vm1481_vm2 = vcmp.eq.f32.partialorder %v3925_v38, 0.0  ;;  %vm1472_vm3 = vcmp.eq.f32.partialorder %v3922_v42, inf }
 0x137   : > { %3125 = vrsqrt.f32 %v3925_v38  ;;  %v3978_v53 = vpop.eup %3117  ;;  %v4012_v46 = vadd.f32 %v3946_v56, %v532_v9  ;;  %vm1474_vm4 = vcmp.eq.f32.partialorder %v3922_v42, 0.0  ;;  %v1475_v25 = vand.u32 2147483648, %v3922_v42 }
 0x138   : > { %3127 = vrsqrt.f32 %v3928_v57  ;;  %v1444_v39 = vpop.permute.xlu1 %1443  ;;  %vm1486_vm5 = vcmp.eq.f32.partialorder %v3928_v57, inf  ;;  %vm1488_vm6 = vcmp.eq.f32.partialorder %v3928_v57, 0.0  ;;  %v1489_v32 = vand.u32 2147483648, %v3928_v57 }
 0x139   : > { %3129 = vrsqrt.f32 %v3931_v33  ;;  %v1450_v0 = vmul.f32 %v1444_v39, %v1353_v47  ;;  %v1451_v48 = vmul.f32 %v1444_v39, %v1354_v55  ;;  %v1452_v52 = vmul.f32 %v1444_v39, %v1355_v36  ;;  %v543_v13 = vpop.permute.xlu0 %542 }
 0x13a   : > { %v1453_v19 = vmul.f32 %v1444_v39, %v1356_v35  ;;  %v1482_v55 = vand.u32 2147483648, %v3925_v38  ;;  %vm1493_vm7 = vcmp.eq.f32.partialorder %v3931_v33, inf  ;;  %vm1495_vm8 = vcmp.eq.f32.partialorder %v3931_v33, 0.0 }
 0x13b   : > { %v3981_v22 = vmul.f32 %v3845_v7, %v1450_v0  ;;  %v3984_v26 = vmul.f32 %v3851_v29, %v1451_v48  ;;  %v3987_v54 = vmul.f32 %v3857_v16, %v1452_v52  ;;  %v4002_v7 = vrot.slane %v523_v51, %v4559_v49  ;;  %v4004_v29 = vpop.eup %3119 }
 0x13c   : > { %v3993_v28 = vmul.f32 %v3861_v10, %v1453_v19  ;;  %v527_v30 = vpop.permute.xlu1 %526  ;;  %v554_v16 = vsub.f32 %v543_v13, %v3952_v61  ;;  %v641_v10 = vrot.slane %v3910_v27, 3  ;;  %v4017_v45 = vpop.eup %3121  ;;  %v1496_v1 = vand.u32 2147483648, %v3931_v33 }
 0x13d   : > { %3131 = vrsqrt.f32 %v3981_v22  ;;  %v1503_v44 = vand.u32 2147483648, %v3981_v22  ;;  %vm1507_vm9 = vcmp.eq.f32.partialorder %v3984_v26, inf  ;;  %v1510_v9 = vand.u32 2147483648, %v3984_v26 }
 0x13e   : > { %3133 = vrsqrt.f32 %v3984_v26  ;;  %v568_v47 = vpop.permute.xlu0 %567  ;;  %v556_v37 = vmul.f32 %v554_v16, %v554_v16  ;;  %v4036_v14 = vadd.f32 %v3946_v56, %v527_v30  ;;  %vm1509_vm10 = vcmp.eq.f32.partialorder %v3984_v26, 0.0 }
 0x13f   : > { %3135 = vrsqrt.f32 %v3987_v54  ;;  %vm1500_vm11 = vcmp.eq.f32.partialorder %v3981_v22, inf  ;;  %v4051_v56 = vadd.f32 %v3955_v5, %v568_v47  ;;  %vm1502_vm12 = vcmp.eq.f32.partialorder %v3981_v22, 0.0 }
 0x140   : > { %v3124_v36 = vpop.eup %3123  ;;  %3137 = vrsqrt.f32 %v3993_v28  ;;  %vm1514_vm13 = vcmp.eq.f32.partialorder %v3987_v54, inf  ;;  %vm1516_vm14 = vcmp.eq.f32.partialorder %v3987_v54, 0.0  ;;  %vm1521_vm15 = vcmp.eq.f32.partialorder %v3993_v28, inf }
 0x141   : > { %v3126_v35 = vpop.eup %3125  ;;  %v564_v2 = vpop.permute.xlu1 %563  ;;  %v1471_v51 = vmul.f32 %v3124_v36, %v3922_v42 }
 0x142   : > { %v3128_v34 = vpop.eup %3127  ;;  %v582_v8 = vpop.permute.xlu0 %581  ;;  %v1478_v60 = vmul.f32 %v3126_v35, %v3925_v38 }
 0x143   : > { %v3130_v41 = vpop.eup %3129  ;;  %v1473_v11 = vsel %vm1472_vm3, %v3922_v42, %v1471_v51  ;;  %v1485_v39 = vmul.f32 %v3128_v34, %v3928_v57  ;;  %v589_v17 = vsub.f32 %v582_v8, %v3958_v21 }
 0x144   : > { %v1480_v63 = vsel %vm1479_vm1, %v3925_v38, %v1478_v60  ;;  %v1476_v40 = vsel %vm1474_vm4, %v1475_v25, %v1473_v11  ;;  %v1492_v52 = vmul.f32 %v3130_v41, %v3931_v33  ;;  %v574_v38 = vadd.f32 %v3955_v5, %v564_v2 }
 0x145   : > { %v1483_v0 = vsel %vm1481_vm2, %v1482_v55, %v1480_v63  ;;  %v1487_v48 = vsel %vm1486_vm5, %v3928_v57, %v1485_v39  ;;  %v4064_v49 = vmul.f32 %v3919_v20, %v1476_v40  ;;  %v1517_v57 = vand.u32 2147483648, %v3987_v54 }
 0x146   : > { %v605_v13 = vpop.permute.xlu1 %604  ;;  %v1559_v42 = vmul.f32 %v3940_v15, %v1483_v0  ;;  %v1490_v19 = vsel %vm1488_vm6, %v1489_v32, %v1487_v48  ;;  %v1494_v47 = vsel %vm1493_vm7, %v3931_v33, %v1492_v52  ;;  %v591_v15 = vmul.f32 %v589_v17, %v589_v17 }
 0x147   : > { %v3132_v30 = vpop.eup %3131  ;;  %v619_v16 = vpop.permute.xlu0 %618  ;;  %v1560_v55 = vmul.f32 %v3942_v12, %v1490_v19  ;;  %v1497_v20 = vsel %vm1495_vm8, %v1496_v1, %v1494_v47  ;;  %v4080_v32 = vadd.f32 %v3962_v62, %v605_v13  ;;  %v4088_v33 = vmul.f32 %v4051_v56, %v4012_v46 }
 0x148   : > { %v3134_v25 = vpop.eup %3133  ;;  %v4072_v36 = vand.u32 4294901760, %v1559_v42  ;;  %v629_v12 = vsub.f32 %v619_v16, %v3970_v24  ;;  %v1561_v35 = vmul.f32 %v3948_v31, %v1497_v20  ;;  %v1499_v2 = vmul.f32 %v3132_v30, %v3981_v22 }
 0x149   : > { %v1506_v5 = vmul.f32 %v3134_v25, %v3984_v26  ;;  %v2704_v1 = vmul.f32 %v3976_v6, %v4064_v49  ;;  %v2705_v34 = vmul.f32 %v3990_v18, %v1559_v42  ;;  %v4094_v8 = vmul.f32 %v574_v38, %v556_v37  ;;  %v3136_v11 = vpop.eup %3135 }
 0x14a   : > { %v609_v51 = vpop.permute.xlu1 %608  ;;  %1752 = vmatprep.mubr.f32.mxu1 %v4072_v36  ;;  %v4097_v31 = vmul.f32 %v574_v38, %v4036_v14  ;;  %v1524_v41 = vand.u32 2147483648, %v3993_v28  ;;  %v4104_v39 = vmul.f32 %v591_v15, %v4012_v46  ;;  %v2706_v63 = vmul.f32 %v3996_v3, %v1560_v55  ;;  %v3138_v47 = vpop.eup %3137 }
 0x14b   : > { %v1508_v60 = vsel %vm1507_vm9, %v3984_v26, %v1506_v5  ;;  %v2712_v37 = vadd.f32 %v2705_v34, %v2704_v1  ;;  %v4114_v0 = vmul.f32 %v629_v12, %v629_v12  ;;  %v4117_v52 = vand.u32 4294901760, %v1560_v55 }
 0x14c   : > { %v1511_v17 = vsel %vm1509_vm10, %v1510_v9, %v1508_v60  ;;  %v4112_v40 = vmul.f32 %v4080_v32, %v4097_v31  ;;  %vm1523_vm1 = vcmp.eq.f32.partialorder %v3993_v28, 0.0  ;;  %v2707_v26 = vmul.f32 %v3999_v58, %v1561_v35 }
 0x14d   : > { %v1563_v48 = vmul.f32 %v3978_v53, %v1511_v17  ;;  %v2713_v46 = vadd.f32 %v2712_v37, %v2706_v63  ;;  %v1501_v9 = vsel %vm1500_vm11, %v3981_v22, %v1499_v2  ;;  %v4125_v13 = vsub.f32 %v1559_v42, %v4072_v36 }
 0x14e   : > { %v4128_v19 = vadd.f32 %v3962_v62, %v609_v51  ;;  %v1504_v53 = vsel %vm1502_vm12, %v1503_v44, %v1501_v9  ;;  %v1513_v16 = vmul.f32 %v3136_v11, %v3987_v54  ;;  %v4137_v25 = vand.u32 4294901760, %v1561_v35 }
 0x14f   : > { %v4130_v38 = vand.u32 4294901760, %v1563_v48  ;;  %v2714_v15 = vadd.f32 %v2713_v46, %v2707_v26  ;;  %v1562_v42 = vmul.f32 %v3966_v4, %v1504_v53  ;;  %v4141_v20 = vand.u32 4294901760, %v4125_v13 }
 0x150   : > { %v4148_v5 = vsub.f32 %v1560_v55, %v4117_v52  ;;  %v1515_v44 = vsel %vm1514_vm13, %v3987_v54, %v1513_v16  ;;  %v4157_v4 = vand.u32 4294901760, %v4064_v49  ;;  %v1520_v1 = vmul.f32 %v3138_v47, %v3993_v28  ;;  %v664_v16 = vpop.permute.xlu0 %663 }
 0x151   : > { %v548_v30 = vpop.permute.xlu1 %547  ;;  %v4145_v62 = vpack.c.bf16 %v4130_v38, %v4072_v36  ;;  %v4151_v22 = vsub.f32 %v1563_v48, %v4130_v38  ;;  %2715 = vadd.xlane.f32.xlu0 %v2714_v15  ;;  %v4159_v12 = vand.u32 4294901760, %v1562_v42  ;;  %v1639_v2 = vsub.f32 %v4125_v13, %v4141_v20 }
 0x152   : > { %v1518_v55 = vsel %vm1516_vm14, %v1517_v57, %v1515_v44  ;;  %v2708_v60 = vmul.f32 %v3976_v6, %v1562_v42  ;;  %v4173_v11 = vmul.f32 %v4128_v19, %v4088_v33  ;;  %v2709_v63 = vmul.f32 %v3990_v18, %v1563_v48 }
 0x153   : > { %2904 = vmatprep.subr.bf16.mxu0 %v4145_v62  ;;  %v2911_v51 = vpack.c.bf16 %v4151_v22, %v4125_v13  ;;  %v1564_v34 = vmul.f32 %v4004_v29, %v1518_v55  ;;  %v4177_v17 = vpack.c.bf16 %v4159_v12, %v4157_v4  ;;  %v1640_v57 = vand.u32 4294901760, %v1639_v2 }
 0x154   : > { %v555_v37 = vsub.f32 %v548_v30, %v3952_v61  ;;  %v4182_v26 = vsub.f32 %v1561_v35, %v4137_v25  ;;  %v1522_v6 = vsel %vm1521_vm15, %v3993_v28, %v1520_v1  ;;  %v2717_v18 = vadd.f32 %v2709_v63, %v2708_v60 }
 0x155   : > { %2906 = vmatpush1.bf16.xpose.msra.mxu0 %v4177_v17  ;;  %1641 = vmatprep.mubr.f32.mxu0 %v1640_v57  ;;  %v1525_v46 = vsel %vm1523_vm1, %v1524_v41, %v1522_v6  ;;  %v2710_v9 = vmul.f32 %v3996_v3, %v1564_v34  ;;  %v4193_v61 = vand.u32 4294901760, %v4151_v22  ;;  %v4196_v48 = vand.u32 4294901760, %v1564_v34 }
 0x156   : > { %v578_v54 = vpop.permute.xlu1 %577  ;;  %2912 = vmatprep.subr.bf16.mxu0 %v2911_v51  ;;  %v4200_v30 = vsub.f32 %v4064_v49, %v4157_v4  ;;  %v4205_v3 = vsub.f32 %v1562_v42, %v4159_v12  ;;  %v557_v47 = vmul.f32 %v555_v37, %v555_v37  ;;  %v671_v63 = vsub.f32 %v664_v16, %v3973_v50 }
 0x157   : > { %v588_v29 = vsub.f32 %v578_v54, %v3958_v21  ;;  %v1565_v21 = vmul.f32 %v4017_v45, %v1525_v46  ;;  %v2718_v53 = vadd.f32 %v2717_v18, %v2710_v9  ;;  %v1654_v28 = vsub.f32 %v4151_v22, %v4193_v61 }
 0x158   : > { %v2919_v41 = vpack.c.bf16 %v4193_v61, %v4141_v20  ;;  %v4213_v49 = vand.u32 4294901760, %v4200_v30  ;;  %v4219_v42 = vand.u32 4294901760, %v4205_v3  ;;  %v2913_v51 = vpack.c.bf16 %v4205_v3, %v4200_v30 }
 0x159   : > { %v590_v35 = vmul.f32 %v588_v29, %v588_v29  ;;  %v4209_v15 = vand.u32 4294901760, %v1565_v21  ;;  %v2711_v45 = vmul.f32 %v3999_v58, %v1565_v21  ;;  %v1655_v55 = vand.u32 4294901760, %v1654_v28 }
 0x15a   : > { %v1645_v54 = vsub.f32 %v4200_v30, %v4213_v49  ;;  %v4231_v37 = vsub.f32 %v1564_v34, %v4196_v48  ;;  %v1660_v6 = vsub.f32 %v4205_v3, %v4219_v42  ;;  %v593_v46 = vmul.f32 %v4051_v56, %v557_v47 }
 0x15b   : > { %v646_v44 = vpop.permute.xlu1 %645  ;;  %v594_v1 = vmul.f32 %v590_v35, %v4036_v14  ;;  %v4225_v60 = vsub.f32 %v1565_v21, %v4209_v15  ;;  %v2719_v58 = vadd.f32 %v2718_v53, %v2711_v45  ;;  %v2907_v29 = vpack.c.bf16 %v1655_v55, %v1640_v57 }
 0x15c   : > { %v4216_v2 = vadd.f32 %v4002_v7, %v646_v44  ;;  %v1646_v14 = vand.u32 4294901760, %v1645_v54  ;;  %v2921_v18 = vpack.c.bf16 %v4219_v42, %v4213_v49  ;;  %v4240_v35 = vpack.c.bf16 %v4209_v15, %v4137_v25 }
 0x15d   : > { %2720 = vadd.xlane.f32.xlu1 %v2719_v58  ;;  %2908 = vmatprep.subr.bf16.mxu1 %v2907_v29  ;;  %v1661_v57 = vand.u32 4294901760, %v1660_v6  ;;  %v4247_v56 = vpack.c.bf16 %v4196_v48, %v4117_v52  ;;  %v596_v53 = vadd.f32 %v594_v1, %v4094_v8  ;;  %v4251_v28 = vand.u32 4294901760, %v4182_v26 }
 0x15e   : > { %v680_v34 = vmul.f32 %v4216_v2, %v4112_v40  ;;  %1647 = vmatmul.mubr.f32.vlgmr.msra.gmra.mrb[0].mxu0 %v1646_v14  ;;  %v4254_v16 = vand.u32 4294901760, %v4225_v60  ;;  %v2935_v47 = vpack.c.bf16 %v4225_v60, %v4182_v26  ;;  %v4260_v44 = vand.u32 4294901760, %v4148_v5 }
 0x15f   : > { %v650_v9 = vpop.permute.xlu1 %649  ;;  %1656 = vmatprep.mubr.f32.mxu0 %v1655_v55  ;;  %v2909_v45 = vpack.c.bf16 %v1661_v57, %v1646_v14  ;;  %2914 = vmatpush1.bf16.xpose.msra.mxu0 %v2913_v51  ;;  %v4263_v8 = vand.u32 4294901760, %v4231_v37  ;;  %v597_v1 = vadd.f32 %v4104_v39, %v593_v46  ;;  %v2193_v58 = vsub.f32 %v4182_v26, %v4251_v28 }
 0x160   : > { %v657_v21 = vadd.f32 %v4002_v7, %v650_v9  ;;  %2920 = vmatprep.subr.bf16.mxu0 %v2919_v41  ;;  %v2208_v54 = vsub.f32 %v4225_v60, %v4254_v16  ;;  %v2937_v55 = vpack.c.bf16 %v4231_v37, %v4148_v5  ;;  %3139 = vrcp.f32 %v680_v34 }
 0x161   : > { %2910 = vmatpush1.bf16.xpose.msra.mxu1 %v2909_v45  ;;  %v2199_v29 = vsub.f32 %v4148_v5, %v4260_v44  ;;  %v2214_v6 = vsub.f32 %v4231_v37, %v4263_v8  ;;  %v2194_v46 = vand.u32 4294901760, %v2193_v58  ;;  %v2945_v9 = vpack.c.bf16 %v4263_v8, %v4260_v44 }
 0x162   : > { %v681_v7 = vmul.f32 %v657_v21, %v4173_v11  ;;  %2916 = vmatprep.subr.bf16.mxu1 %v4145_v62  ;;  %1662 = vmatmul.mubr.f32.gmra.mrb[2].mxu0 %v1661_v57  ;;  %v4280_v14 = vand.u32 4294901760, %v2208_v54  ;;  %v633_v34 = vmul.f32 %v4080_v32, %v596_v53  ;;  %v635_v58 = vmul.f32 %v4114_v0, %v4097_v31 }
 0x163   : > { %1840 = vmatprep.mubr.f32.mxu0 %v4125_v13  ;;  %v4286_v45 = vand.u32 4294901760, %v2199_v29  ;;  %v4288_v43 = vand.u32 4294901760, %v2214_v6  ;;  %v673_v53 = vmul.f32 %v671_v63, %v671_v63  ;;  %v634_v13 = vmul.f32 %v4128_v19, %v597_v1 }
 0x164   : > { %v623_v51 = vpop.permute.xlu1 %622  ;;  %3141 = vrcp.f32 %v681_v7  ;;  %v2931_v57 = vpack.c.bf16 %v4280_v14, %v2194_v46  ;;  %vm515_vm4 = vcmask 130048  }
 0x165   : > { %v630_v41 = vsub.f32 %v623_v51, %v3970_v24  ;;  %v643_v24 = vmul.f32 %v641_v10, %v4008_v59  ;;  %v2933_v32 = vpack.c.bf16 %v4288_v43, %v4286_v45  ;;  %v637_v51 = vadd.f32 %v635_v58, %v633_v34 }
 0x166   : > { %1843 = vmatmul.mubr.f32.vlgmr.msra.gmra.mrb[4].mxu0 %v4200_v30  ;;  %v677_v31 = vmul.f32 %v673_v53, %v4173_v11 }
 0x167   : > { %v632_v39 = vmul.f32 %v630_v41, %v630_v41  ;;  %1849 = vmatprep.mubr.f32.mxu0 %v4151_v22  ;;  %2922 = vmatpush1.bf16.xpose.msra.mxu0 %v2921_v18  ;;  %v698_v10 = vrot.slane %v643_v24, %v4556_v23  ;;  %v674_v19 = vmul.f32 %v4216_v2, %v637_v51 }
 0x168   : > { %1754 = vmatmul.mubr.f32.vlgmr.msra.gmra.mrb[0].mxu1 %v4157_v4  ;;  %2928 = vmatprep.subr.bf16.mxu0 %v4240_v35 }
 0x169   : > { %v636_v7 = vmul.f32 %v632_v39, %v4088_v33  ;;  %v660_v54 = vpop.permute.xlu1 %659  ;;  %1759 = vmatprep.mubr.f32.mxu1 %v4130_v38  ;;  %2918 = vmatpush1.bf16.xpose.msra.mxu1 %v4177_v17 }
 0x16a   : > { %v670_v27 = vsub.f32 %v660_v54, %v3973_v50  ;;  %2924 = vmatprep.subr.bf16.mxu1 %v4145_v62  ;;  %1852 = vmatmul.mubr.f32.gmra.mrb[6].mxu0 %v4205_v3  ;;  %v3140_v50 = vpop.eup %3139 }
 0x16b   : > { %v638_v59 = vadd.f32 %v636_v7, %v634_v13  ;;  %2025 = vmatprep.mubr.f32.mxu0 %v4072_v36 }
 0x16c   : > { %v672_v33 = vmul.f32 %v670_v27, %v670_v27  ;;  %1761 = vmatmul.mubr.f32.gmra.mrb[2].mxu1 %v4159_v12 }
 0x16d   : > { %v675_v0 = vmul.f32 %v657_v21, %v638_v59  ;;  %1928 = vmatprep.mubr.f32.mxu1 %v4141_v20 }
 0x16e   : > { %v676_v22 = vmul.f32 %v672_v33, %v4112_v40  ;;  %v3142_v18 = vpop.eup %3141  ;;  %2027 = vmatmul.mubr.f32.vlgmr.msra.gmra.mrb[8].mxu0 %v4157_v4 }
 0x16f   : > { %v688_v23 = vpop.permute.xlu1 %687  ;;  %v679_v30 = vadd.f32 %v677_v31, %v675_v0  ;;  %2032 = vmatprep.mubr.f32.mxu0 %v4130_v38  ;;  %2930 = vmatpush1.bf16.xpose.msra.mxu0 %v4247_v56 }
 0x170   : > { %v699_v63 = vmul.f32 %v698_v10, %v688_v23  ;;  %v678_v1 = vadd.f32 %v676_v22, %v674_v19  ;;  %1932 = vmatmul.mubr.f32.vlgmr.msra.gmra.mrb[4].mxu1 %v4213_v49  ;;  %2936 = vmatprep.subr.bf16.mxu0 %v2935_v47 }
 0x171   : > { %v720_v11 = vmul.f32 %v3142_v18, %v679_v30  ;;  %1939 = vmatprep.mubr.f32.mxu1 %v4193_v61  ;;  %2926 = vmatpush1.bf16.xpose.msra.mxu1 %v4177_v17  ;;  %v4560_v17 = vpack.c.bf16 %v4254_v16, %v4251_v28 }
 0x172   : > { %v702_v62 = vmul.f32 %v3140_v50, %v699_v63  ;;  %v719_v3 = vmul.f32 %v3140_v50, %v678_v1  ;;  %2932 = vmatprep.subr.bf16.mxu1 %v2931_v57  ;;  %2034 = vmatmul.mubr.f32.gmra.mrb[10].mxu0 %v4159_v12 }
 0x173   : > { %v693_v40 = vpop.permute.xlu1 %692  ;;  %v722_v21 = vsub.f32 0.0, %v720_v11  ;;  %2195 = vmatprep.mubr.f32.mxu0 %v2194_v46 }
 0x174   : > { %3143 = vrsqrt.f32 %v702_v62  ;;  %v721_v2 = vsub.f32 0.0, %v719_v3  ;;  %v700_v20 = vmul.f32 %v698_v10, %v693_v40  ;;  %1943 = vmatmul.mubr.f32.gmra.mrb[6].mxu1 %v4219_v42  ;;  %vm707_vm2 = vcmp.eq.f32.partialorder %v702_v62, inf }
 0x175   : > { %2108 = vmatprep.mubr.f32.mxu1 %v4072_v36  ;;  %v725_v49 = vmul.f32 1.442695, %v722_v21  ;;  %v710_v42 = vand.u32 2147483648, %v702_v62  ;;  %vm709_vm3 = vcmp.eq.f32.partialorder %v702_v62, 0.0 }
 0x176   : > { %v723_v29 = vmul.f32 1.442695, %v721_v2  ;;  %v704_v6 = vmul.f32 %v3142_v18, %v700_v20  ;;  %2201 = vmatmul.mubr.f32.vlgmr.msra.gmra.mrb[12].mxu0 %v4286_v45 }
 0x177   : > { %2210 = vmatprep.mubr.f32.mxu0 %v4280_v14  ;;  %2938 = vmatpush1.bf16.xpose.msra.mxu0 %v2937_v55 }
 0x178   : > { %3145 = vpow2.f32 %v723_v29  ;;  %2110 = vmatmul.mubr.f32.vlgmr.msra.gmra.mrb[8].mxu1 %v4157_v4  ;;  %2944 = vmatprep.subr.bf16.mxu0 %v4560_v17  ;;  %vm714_vm5 = vcmp.eq.f32.partialorder %v704_v6, inf  ;;  %vm716_vm6 = vcmp.eq.f32.partialorder %v704_v6, 0.0 }
 0x179   : > { %3147 = vrsqrt.f32 %v704_v6  ;;  %2115 = vmatprep.mubr.f32.mxu1 %v4130_v38  ;;  %2934 = vmatpush1.bf16.xpose.msra.mxu1 %v2933_v32 }
 0x17a   : > { %3149 = vpow2.f32 %v725_v49  ;;  %2940 = vmatprep.subr.bf16.mxu1 %v4240_v35  ;;  %2216 = vmatmul.mubr.f32.gmra.mrb[14].mxu0 %v4288_v43 }
 0x17b   : > { %2394 = vmatprep.mubr.f32.mxu0 %v4182_v26 }
 0x17c   : > { %2117 = vmatmul.mubr.f32.gmra.mrb[10].mxu1 %v4159_v12 }
 0x17d   : > { %2306 = vmatprep.mubr.f32.mxu1 %v4137_v25 }
 0x17e   : > { %v3144_v36 = vpop.eup %3143  ;;  %2397 = vmatmul.mubr.f32.vlgmr.msra.gmra.mrb[16].mxu0 %v4148_v5  ;;  %v717_v5 = vand.u32 2147483648, %v704_v6 }
 0x17f   : > { %v706_v61 = vmul.f32 %v3144_v36, %v702_v62  ;;  %2403 = vmatprep.mubr.f32.mxu0 %v4225_v60  ;;  %2946 = vmatpush1.bf16.xpose.msra.mxu0 %v2945_v9 }
 0x180   : > { %2308 = vmatmul.mubr.f32.vlgmr.msra.gmra.mrb[12].mxu1 %v4117_v52 }
 0x181   : > { %v708_v4 = vsel %vm707_vm2, %v702_v62, %v706_v61  ;;  %2313 = vmatprep.mubr.f32.mxu1 %v4209_v15  ;;  %2942 = vmatpush1.bf16.xpose.msra.mxu1 %v4247_v56 }
 0x182   : > { %v711_v38 = vsel %vm709_vm3, %v710_v42, %v708_v4  ;;  %v3146_v47 = vpop.eup %3145  ;;  %2948 = vmatprep.subr.bf16.mxu1 %v4240_v35  ;;  %2406 = vmatmul.mubr.f32.gmra.mrb[18].mxu0 %v4231_v37  ;;  %v2681_v37 = vld [vmem:[%s3895_s27] sm:$0xff] }
 0x183   : > { %v3148_v43 = vpop.eup %3147  ;;  %v727_v12 = vmul.f32 %v3146_v47, %v711_v38  ;;  %2579 = vmatprep.mubr.f32.mxu0 %v4137_v25 }
 0x184   : > { %v713_v26 = vmul.f32 %v3148_v43, %v704_v6  ;;  %v3150_v55 = vpop.eup %3149  ;;  %2315 = vmatmul.mubr.f32.gmra.mrb[14].mxu1 %v4196_v48 }
 0x185   : > { %729 = vst.msk [vmem:[%s462_s20] sm:$0xff] %vm515_vm4, %v727_v12  ;;  %2482 = vmatprep.mubr.f32.mxu1 %v4251_v28 }
 0x186   : > { %v715_v60 = vsel %vm714_vm5, %v704_v6, %v713_v26  ;;  %2581 = vmatmul.mubr.f32.vlgmr.msra.gmra.mrb[20].mxu0 %v4117_v52 }
 0x187   : > { %v718_v39 = vsel %vm716_vm6, %v717_v5, %v715_v60  ;;  %2586 = vmatprep.mubr.f32.mxu0 %v4209_v15 }
 0x188   : > { %v728_v41 = vmul.f32 %v3150_v55, %v718_v39  ;;  %2486 = vmatmul.mubr.f32.vlgmr.msra.gmra.mrb[16].mxu1 %v4260_v44 }
 0x189   : > { %2493 = vmatprep.mubr.f32.mxu1 %v4254_v16  ;;  %2950 = vmatpush1.bf16.xpose.msra.mxu1 %v4247_v56  ;;  %v4561_v56 = vmov 0.0  }
 0x18a   : > { %730 = vst.msk [vmem:[%s462_s20 + $0x8] sm:$0xff] %vm515_vm4, %v728_v41  ;;  %2588 = vmatmul.mubr.f32.gmra.mrb[22].mxu0 %v4196_v48  ;;  %516 = vst.msk [vmem:[%s4380_s25] sm:$0xff] %vm515_vm4, %v4561_v56 }
 0x18b   : > { %517 = vst.msk [vmem:[%s4380_s25 + $0x8] sm:$0xff] %vm515_vm4, %v4561_v56 }
 0x18c   : > { %2497 = vmatmul.mubr.f32.gmra.mrb[18].mxu1 %v4263_v8 }
 0x18d   : > { %2662 = vmatprep.mubr.f32.mxu1 %v4137_v25 }
 0x190   : > { %2664 = vmatmul.mubr.f32.vlgmr.msra.gmra.mrb[20].mxu1 %v4117_v52  ;;  %v2682_v52 = vld [vmem:[%s3895_s27 + $0x8] sm:$0xff] }
 0x191   : > { %2669 = vmatprep.mubr.f32.mxu1 %v4209_v15 }
 0x194   : > { %2671 = vmatmul.mubr.f32.gmra.mrb[22].mxu1 %v4196_v48 }
 0x1de   : > { %v2716_v35 = vpop.xlane.xlu0 %2715 }
 0x1df   : > { %v2722_v28 = vadd.f32 %v2716_v35, %v2681_v37 }
 0x1e1   : > { %2725 = vst.msk [vmem:[%s3895_s27] sm:$0xff] %vm518_vm0, %v2722_v28 }
 0x1ea   : > { %v2721_v25 = vpop.xlane.xlu1 %2720 }
 0x1eb   : > { %v2723_v48 = vadd.f32 %v2721_v25, %v2682_v52 }
 0x1ed   : > { %2726 = vst.msk [vmem:[%s3895_s27 + $0x8] sm:$0xff] %vm518_vm0, %v2723_v48 }
 0x231   : > { %v1648_v15 = vpop.f32.mrb[0].mxu0 }
 0x232   : > { %v1650_v16 = vpop.f32.mrb[1].mxu0 }
 0x235   : > { %v1663_v44 = vpop.f32.mrb[2].mxu0 }
 0x236   : > { %v1665_v8 = vpop.f32.mrb[3].mxu0 }
 0x239   : > { %v1844_v46 = vpop.f32.mrb[4].mxu0 }
 0x23a   : > { %v1846_v14 = vpop.f32.mrb[5].mxu0 }
 0x23b   : > { %v1755_v9 = vpop.f32.mrb[0].mxu1  ;;  %v1567_v14 = vld [vmem:[%s4380_s25 + $0x8] sm:$0xff] }
 0x23c   : > { %v1756_v34 = vadd.f32 %v1755_v9, %v1648_v15  ;;  %v1757_v45 = vpop.f32.mrb[1].mxu1  ;;  %v1566_v15 = vld [vmem:[%s4380_s25] sm:$0xff] }
 0x23d   : > { %v1853_v24 = vpop.f32.mrb[6].mxu0 }
 0x23e   : > { %v1845_v57 = vadd.f32 %v1844_v46, %v1756_v34  ;;  %v1855_v58 = vpop.f32.mrb[7].mxu0 }
 0x23f   : > { %v1762_v32 = vpop.f32.mrb[2].mxu1 }
 0x240   : > { %v1763_v53 = vadd.f32 %v1762_v32, %v1663_v44  ;;  %v1764_v13 = vpop.f32.mrb[3].mxu1 }
 0x241   : > { %v2028_v7 = vpop.f32.mrb[8].mxu0 }
 0x242   : > { %v1854_v54 = vadd.f32 %v1853_v24, %v1763_v53  ;;  %v2030_v51 = vpop.f32.mrb[9].mxu0 }
 0x243   : > { %v1933_v27 = vpop.f32.mrb[4].mxu1 }
 0x244   : > { %v1934_v59 = vadd.f32 %v1933_v27, %v1845_v57  ;;  %v1935_v10 = vpop.f32.mrb[5].mxu1 }
 0x245   : > { %v2035_v33 = vpop.f32.mrb[10].mxu0 }
 0x246   : > { %v2029_v31 = vadd.f32 %v2028_v7, %v1934_v59  ;;  %v2037_v0 = vpop.f32.mrb[11].mxu0 }
 0x247   : > { %v1944_v50 = vpop.f32.mrb[6].mxu1 }
 0x248   : > { %v1945_v19 = vadd.f32 %v1944_v50, %v1854_v54  ;;  %v1946_v22 = vpop.f32.mrb[7].mxu1 }
 0x249   : > { %v2202_v23 = vpop.f32.mrb[12].mxu0 }
 0x24a   : > { %v2036_v30 = vadd.f32 %v2035_v33, %v1945_v19  ;;  %v2204_v63 = vpop.f32.mrb[13].mxu0 }
 0x24b   : > { %v2111_v18 = vpop.f32.mrb[8].mxu1 }
 0x24c   : > { %v2112_v1 = vadd.f32 %v2111_v18, %v2029_v31  ;;  %v2113_v11 = vpop.f32.mrb[9].mxu1 }
 0x24d   : > { %v2217_v62 = vpop.f32.mrb[14].mxu0 }
 0x24e   : > { %v2203_v3 = vadd.f32 %v2202_v23, %v2112_v1  ;;  %v2219_v40 = vpop.f32.mrb[15].mxu0 }
 0x24f   : > { %v2118_v2 = vpop.f32.mrb[10].mxu1 }
 0x250   : > { %v2119_v20 = vadd.f32 %v2118_v2, %v2036_v30  ;;  %v2120_v21 = vpop.f32.mrb[11].mxu1 }
 0x251   : > { %v2398_v29 = vpop.f32.mrb[16].mxu0 }
 0x252   : > { %v2218_v6 = vadd.f32 %v2217_v62, %v2119_v20  ;;  %v2400_v49 = vpop.f32.mrb[17].mxu0 }
 0x253   : > { %v2309_v17 = vpop.f32.mrb[12].mxu1 }
 0x254   : > { %v2310_v36 = vadd.f32 %v2309_v17, %v2203_v3  ;;  %v2311_v61 = vpop.f32.mrb[13].mxu1 }
 0x255   : > { %v2407_v42 = vpop.f32.mrb[18].mxu0 }
 0x256   : > { %v2399_v4 = vadd.f32 %v2398_v29, %v2310_v36  ;;  %v2409_v38 = vpop.f32.mrb[19].mxu0 }
 0x257   : > { %v2316_v47 = vpop.f32.mrb[14].mxu1 }
 0x258   : > { %v2317_v43 = vadd.f32 %v2316_v47, %v2218_v6  ;;  %v2318_v12 = vpop.f32.mrb[15].mxu1 }
 0x259   : > { %v2582_v26 = vpop.f32.mrb[20].mxu0 }
 0x25a   : > { %v2408_v5 = vadd.f32 %v2407_v42, %v2317_v43  ;;  %v2584_v60 = vpop.f32.mrb[21].mxu0 }
 0x25b   : > { %v2487_v55 = vpop.f32.mrb[16].mxu1 }
 0x25c   : > { %v2488_v39 = vadd.f32 %v2487_v55, %v2399_v4  ;;  %v2489_v41 = vpop.f32.mrb[17].mxu1 }
 0x25d   : > { %v2589_v37 = vpop.f32.mrb[22].mxu0 }
 0x25e   : > { %v2583_v35 = vadd.f32 %v2582_v26, %v2488_v39  ;;  %v2591_v28 = vpop.f32.mrb[23].mxu0 }
 0x25f   : > { %v2498_v56 = vpop.f32.mrb[18].mxu1 }
 0x260   : > { %v2499_v52 = vadd.f32 %v2498_v56, %v2408_v5  ;;  %v2500_v25 = vpop.f32.mrb[19].mxu1 }
 0x262   : > { %v2590_v48 = vadd.f32 %v2589_v37, %v2499_v52 }
 0x263   : > { %v2665_v16 = vpop.f32.mrb[20].mxu1 }
 0x264   : > { %v2666_v44 = vadd.f32 %v2665_v16, %v2583_v35  ;;  %v2667_v8 = vpop.f32.mrb[21].mxu1 }
 0x266   : > { %v2676_v46 = vadd.f32 %v2666_v44, %v1566_v15 }
 0x267   : > { %v2672_v9 = vpop.f32.mrb[22].mxu1 }
 0x268   : > { %2679 = vst.msk [vmem:[%s4380_s25] sm:$0xff] %vm515_vm4, %v2676_v46  ;;  %v2673_v34 = vadd.f32 %v2672_v9, %v2590_v48  ;;  %v2674_v45 = vpop.f32.mrb[23].mxu1 }
 0x26a   : > { %v2677_v24 = vadd.f32 %v2673_v34, %v1567_v14 }
 0x26c   : > { %2680 = vst.msk [vmem:[%s4380_s25 + $0x8] sm:$0xff] %vm515_vm4, %v2677_v24 }
 0x26d PF: > { %s23_s19 = sadd.s32 1, %s3192_s19   ;;  %s4562_s17 = smov %s3188_s18 }
 0x26e   : > { %p20_p3 = scmp.ge.s32.totalorder %s23_s19, 4   ;;  %s4563_s18 = smov %s4565_s21 }
 0x270   :  { %22 = sbr.rel (!%p20_p3) target bundleno = 2 (0x2), region = 122 }
 0x277   :  { %2780 = vsyncpa [#allocation3], 1 }
 0x278   :  { %2782 = vsyncpa [#allocation3 + $0x1], 1 }

</bundles_post_ra>
